<compile_context>
chip_gen: v6e
topology: v6e:2x2x1
jax: 0.10.0
libtpu: 0.0.40
codegen_flags: <defaults>
</compile_context>

<pallas_src>
import jax
import jax.numpy as jnp
from jax.experimental import pallas as pl
from jax.experimental.pallas import tpu as pltpu


# ------------------------- generation-aware sizing --------------------------

_MiB = 1024 * 1024


def _vmem_capacity_bytes():
    try:
        info = pltpu.get_tpu_info()
        cap = int(getattr(info, "vmem_capacity_bytes", 0))
        if cap > 0:
            return cap
    except Exception:
        pass
    return 128 * _MiB  # v5e / v6e default


_VMEM_CAP = _vmem_capacity_bytes()
_SMALL_VMEM = _VMEM_CAP <= 64 * _MiB                      # v7x: 64 MiB per TC
# Leave headroom for compiler-internal scratch: 48 MiB on v7x, 64 MiB otherwise.
_VMEM_LIMIT = max(32 * _MiB, min(_VMEM_CAP - 16 * _MiB, 64 * _MiB))
_TILE_BYTES_CAP = (2 if _SMALL_VMEM else 8) * _MiB        # per (TM, K) bf16 buffer
_TM_MAX = 512 if _SMALL_VMEM else 2048


# ----------------------------- Pallas kernels -------------------------------

def _mm_lrelu_kernel(x_ref, w_ref, o_ref):
    # y = leaky_relu(x @ w, 0.2)   (bf16 inputs, f32 accumulation)
    y = jnp.dot(x_ref[...], w_ref[...], preferred_element_type=jnp.float32)
    o_ref[...] = jnp.where(y >= 0, y, 0.2 * y).astype(o_ref.dtype)


def _mm_sigmoid_kernel(x_ref, w_ref, o_ref):
    y = jnp.dot(x_ref[...], w_ref[...], preferred_element_type=jnp.float32)
    o_ref[...] = jax.nn.sigmoid(y).astype(o_ref.dtype)


def _mm_stats_kernel(x_ref, w_ref, y_ref, stats_ref):
    # Tiled matmul; y is stored in bf16, per-tile partial sum / sum-of-squares
    # are written (f32, from the pre-cast accumulator) to this tile's own
    # stats block -> no resident accumulator, M axis can be "parallel".
    y = jnp.dot(x_ref[...], w_ref[...], preferred_element_type=jnp.float32)
    y_ref[...] = y.astype(y_ref.dtype)
    stats_ref[0:1, :] = jnp.sum(y, axis=0, keepdims=True)
    stats_ref[1:2, :] = jnp.sum(y * y, axis=0, keepdims=True)


def _bn_lrelu_kernel(y_ref, scale_ref, shift_ref, o_ref):
    # z = y * scale + shift  (scale/shift already fold mean/var/gamma/beta)
    z = y_ref[...].astype(jnp.float32) * scale_ref[...] + shift_ref[...]
    o_ref[...] = jnp.where(z >= 0, z, 0.2 * z).astype(o_ref.dtype)


# ------------------------------ JAX glue -------------------------------------

def _round_up(x, m):
    return ((x + m - 1) // m) * m


def _choose_tm(m, kk):
    """M-tile size so a (TM, K) bf16 buffer stays under the per-gen byte cap."""
    cap = max(8, _TILE_BYTES_CAP // (max(kk, 1) * 2))
    cap = max(8, (cap // 8) * 8)
    tm = min(_TM_MAX, cap)
    if m <= tm:
        tm = _round_up(max(m, 1), 8)
    return tm


def _choose_group(n_tiles, tm, c_pad, out_itemsize):
    """How many pass-1 tiles to fuse per pass-2 step (pure elementwise pass)."""
    if n_tiles <= 1:
        return 1
    bytes_per_row = c_pad * (2 + out_itemsize)          # bf16 in + out
    max_rows = max(tm, _TILE_BYTES_CAP // bytes_per_row)
    f = max(1, min(n_tiles, max_rows // tm))
    while n_tiles % f:
        f -= 1
    return f


def _pad2(a, rows, cols):
    r, c = a.shape
    if r == rows and c == cols:
        return a
    return jnp.pad(a, ((0, rows - r), (0, cols - c)))


def _im2col_nhwc(x, k, stride, pad):
    """x: (N, H, W, C) -> patches (N*OH*OW, k*k*C) with (kh, kw, cin) columns."""
    # TODO(synk): move this gather inside the Pallas kernel to avoid the ~4x
    # activation duplication + HBM round trip of the patch matrix.
    if pad > 0:
        x = jnp.pad(x, ((0, 0), (pad, pad), (pad, pad), (0, 0)))
    n, h, w, c = x.shape
    oh = (h - k) // stride + 1
    ow = (w - k) // stride + 1
    cols = []
    for i in range(k):
        for j in range(k):
            cols.append(x[:, i:i + stride * oh:stride, j:j + stride * ow:stride, :])
    p = jnp.concatenate(cols, axis=-1)                    # (N, OH, OW, k*k*C)
    return p.reshape(n * oh * ow, k * k * c), oh, ow


def _conv_layer(x_nhwc, w_oikk, stride, pad, *, bn_gamma=None, bn_beta=None,
                activation="lrelu", out_dtype=jnp.bfloat16):
    """Conv2d (no bias) + optional BatchNorm2d(train) + LeakyReLU(0.2)/Sigmoid."""
    n = x_nhwc.shape[0]
    cout, cin, k, _ = w_oikk.shape
    patches, oh, ow = _im2col_nhwc(x_nhwc, k, stride, pad)
    m, kk = patches.shape

    c_pad = _round_up(cout, 128)      # lane-dense output
    tm = _choose_tm(m, kk)
    m_pad = _round_up(m, tm)
    n_tiles = m_pad // tm
    grid = (n_tiles,)

    # K is NOT padded in HBM: the K block uses the full array extent, which is
    # always legal ("equal the full array dims") and avoids inflating layer 1.
    x_p = _pad2(patches.astype(jnp.bfloat16), m_pad, kk)
    w_mat = jnp.transpose(w_oikk, (2, 3, 1, 0)).reshape(kk, cout)   # (k*k*cin, cout)
    w_p = _pad2(w_mat.astype(jnp.bfloat16), kk, c_pad)

    x_spec = pl.BlockSpec((tm, kk), lambda i: (i, 0))
    w_spec = pl.BlockSpec((kk, c_pad), lambda i: (0, 0))
    o_spec = pl.BlockSpec((tm, c_pad), lambda i: (i, 0))
    flops = 2 * m_pad * kk * c_pad
    bytes_in = x_p.size * 2 + w_p.size * 2

    if bn_gamma is None:
        kernel = _mm_sigmoid_kernel if activation == "sigmoid" else _mm_lrelu_kernel
        out = pl.pallas_call(
            kernel,
            out_shape=jax.ShapeDtypeStruct((m_pad, c_pad), out_dtype),
            grid=grid,
            in_specs=[x_spec, w_spec],
            out_specs=o_spec,
            compiler_params=pltpu.CompilerParams(
                dimension_semantics=("parallel",),
                vmem_limit_bytes=_VMEM_LIMIT),
            cost_estimate=pl.CostEstimate(
                flops=flops,
                transcendentals=m_pad * c_pad if activation == "sigmoid" else 0,
                bytes_accessed=bytes_in
                + m_pad * c_pad * jnp.dtype(out_dtype).itemsize),
        )(x_p, w_p)
    else:
        # Pass 1: tiled matmul, bf16 y + per-tile f32 partial stats.  Every grid
        # step owns its own stats block, so the M axis stays "parallel" (v7x
        # megacore) with no accumulation race.
        y, partials = pl.pallas_call(
            _mm_stats_kernel,
            out_shape=(jax.ShapeDtypeStruct((m_pad, c_pad), jnp.bfloat16),
                       jax.ShapeDtypeStruct((n_tiles, 2, c_pad), jnp.float32)),
            grid=grid,
            in_specs=[x_spec, w_spec],
            out_specs=(o_spec,
                       pl.BlockSpec((None, 2, c_pad), lambda i: (i, 0, 0))),
            compiler_params=pltpu.CompilerParams(
                dimension_semantics=("parallel",),
                vmem_limit_bytes=_VMEM_LIMIT),
            cost_estimate=pl.CostEstimate(
                flops=flops, transcendentals=0,
                bytes_accessed=bytes_in + m_pad * c_pad * 2 + n_tiles * 2 * c_pad * 4),
        )(x_p, w_p)

        # Tiny plain-JAX: reduce per-tile partials, fold batch mean/var +
        # gamma/beta into scale/shift.  Padded patch rows are all-zero, so they
        # contribute 0 to both sums; dividing by the real M gives exact batch
        # statistics.  (E[y^2]-E[y]^2 is cancellation-prone for |mean|>>std;
        # acceptable for this workload.)
        totals = jnp.sum(partials, axis=0)                 # (2, c_pad)
        cnt = jnp.float32(m)
        mean = totals[0:1, :] / cnt
        var = jnp.maximum(totals[1:2, :] / cnt - mean * mean, 0.0)   # biased var
        gamma_p = _pad2(bn_gamma.reshape(1, cout).astype(jnp.float32), 1, c_pad)
        beta_p = _pad2(bn_beta.reshape(1, cout).astype(jnp.float32), 1, c_pad)
        scale = gamma_p * jax.lax.rsqrt(var + 1e-5)
        shift = beta_p - mean * scale

        # Pass 2: tiled elementwise BN-apply + LeakyReLU(0.2), with its own
        # (larger) M tile since only (TM2, C) in + out live in VMEM.
        out_isz = jnp.dtype(out_dtype).itemsize
        f = _choose_group(n_tiles, tm, c_pad, out_isz)
        tm2 = tm * f
        grid2 = (n_tiles // f,)
        out = pl.pallas_call(
            _bn_lrelu_kernel,
            out_shape=jax.ShapeDtypeStruct((m_pad, c_pad), out_dtype),
            grid=grid2,
            in_specs=[pl.BlockSpec((tm2, c_pad), lambda i: (i, 0)),
                      pl.BlockSpec((1, c_pad), lambda i: (0, 0)),
                      pl.BlockSpec((1, c_pad), lambda i: (0, 0))],
            out_specs=pl.BlockSpec((tm2, c_pad), lambda i: (i, 0)),
            compiler_params=pltpu.CompilerParams(
                dimension_semantics=("parallel",),
                vmem_limit_bytes=_VMEM_LIMIT),
            cost_estimate=pl.CostEstimate(
                flops=3 * m_pad * c_pad, transcendentals=0,
                bytes_accessed=m_pad * c_pad * (2 + out_isz)),
        )(y, scale, shift)

    # Drop padding, back to NHWC feature map for the next layer.
    return out[:m, :cout].reshape(n, oh, ow, cout)


def init_params(key, nc, ndf):
    """Deterministic parameter init (shapes from Discriminator.__init__)."""
    ks = jax.random.split(key, 5)
    scale = 0.05
    return {
        "w1": scale * jax.random.normal(ks[0], (ndf, nc, 4, 4), jnp.float32),
        "w2": scale * jax.random.normal(ks[1], (ndf * 2, ndf, 4, 4), jnp.float32),
        "w3": scale * jax.random.normal(ks[2], (ndf * 4, ndf * 2, 4, 4), jnp.float32),
        "w4": scale * jax.random.normal(ks[3], (ndf * 8, ndf * 4, 4, 4), jnp.float32),
        "w5": scale * jax.random.normal(ks[4], (1, ndf * 8, 4, 4), jnp.float32),
        # BatchNorm2d default init: weight=1, bias=0.
        "g2": jnp.ones((ndf * 2,), jnp.float32), "b2": jnp.zeros((ndf * 2,), jnp.float32),
        "g3": jnp.ones((ndf * 4,), jnp.float32), "b3": jnp.zeros((ndf * 4,), jnp.float32),
        "g4": jnp.ones((ndf * 8,), jnp.float32), "b4": jnp.zeros((ndf * 8,), jnp.float32),
    }


@jax.jit
def discriminator_forward(x, params):
    """x: (N, nc, 64, 64) float32 -> (N,) float32 (same as the PyTorch module)."""
    h = jnp.transpose(x, (0, 2, 3, 1))   # NCHW -> NHWC once at the boundary
    # Layer 1: Conv(nc->ndf, 4, 2, 1) + LeakyReLU(0.2)
    h = _conv_layer(h, params["w1"], 2, 1, activation="lrelu")
    # Layers 2-4: Conv + BatchNorm2d(train stats) + LeakyReLU(0.2)
    h = _conv_layer(h, params["w2"], 2, 1, bn_gamma=params["g2"], bn_beta=params["b2"])
    h = _conv_layer(h, params["w3"], 2, 1, bn_gamma=params["g3"], bn_beta=params["b3"])
    h = _conv_layer(h, params["w4"], 2, 1, bn_gamma=params["g4"], bn_beta=params["b4"])
    # Layer 5: Conv(8ndf->1, 4, 1, 0) + Sigmoid -> (N, 1, 1, 1)
    h = _conv_layer(h, params["w5"], 1, 0, activation="sigmoid", out_dtype=jnp.float32)
    # output.view(-1, 1).squeeze(1)
    return h.reshape(-1)


if __name__ == "__main__":
    key = jax.random.PRNGKey(0)
    k_in, k_par = jax.random.split(key)

    # DCGAN discriminator requires 64x64 spatial input (64->32->16->8->4->1).
    N, NC, NDF, HW = 2, 3, 8, 64
    x = jax.random.normal(k_in, (N, NC, HW, HW), jnp.float32)
    params = init_params(k_par, NC, NDF)

    out = discriminator_forward(x, params)
    out = jax.block_until_ready(out)

    assert out.shape == (N,), out.shape
    assert bool(jnp.all(jnp.isfinite(out)))
    assert bool(jnp.all((out >= 0.0) & (out <= 1.0)))
    print("KERNEL_OK")
</pallas_src>

<mosaic_0001>
module attributes {stable_mosaic.version = 11 : i64} {
  func.func @_mm_lrelu_kernel(%arg0: i32, %arg1: memref<2048x48xbf16, #tpu.memory_space<vmem>>, %arg2: memref<48x128xbf16, #tpu.memory_space<vmem>>, %arg3: memref<2048x128xbf16, #tpu.memory_space<vmem>>) attributes {dimension_semantics = [#tpu.dimension_semantics<parallel>], iteration_bounds = array<i64: 1>, scalar_prefetch = 0 : i64, scratch_operands = 0 : i64, tpu.core_type = #tpu.core_type<tc>, window_params = [{transform_indices = @transform_0, window_bounds = array<i64: 2048, 48>}, {pipeline_mode = #tpu.pipeline_mode<synchronous>, transform_indices = @transform_1, window_bounds = array<i64: 48, 128>}, {transform_indices = @transform_2, window_bounds = array<i64: 2048, 128>}]} {
    %c0 = arith.constant 0 : index
    %c0_0 = arith.constant 0 : index
    %0 = vector.load %arg1[%c0, %c0_0] : memref<2048x48xbf16, #tpu.memory_space<vmem>>, vector<2048x48xbf16>
    %c0_1 = arith.constant 0 : index
    %c0_2 = arith.constant 0 : index
    %1 = vector.load %arg2[%c0_1, %c0_2] : memref<48x128xbf16, #tpu.memory_space<vmem>>, vector<48x128xbf16>
    %cst = arith.constant dense<0.000000e+00> : vector<2048x128xf32>
    %2 = tpu.matmul %0, %1, %cst {dimension_numbers = #tpu.dot_dimension_numbers<[1], [0], [0], [1], [0, 0, 1, 1], [], []>} : vector<2048x48xbf16>, vector<48x128xbf16>, vector<2048x128xf32> -> vector<2048x128xf32>
    %cst_3 = arith.constant 0.000000e+00 : f32
    %3 = vector.broadcast %cst_3 : f32 to vector<2048x128xf32>
    %4 = arith.cmpf oge, %2, %3 : vector<2048x128xf32>
    %cst_4 = arith.constant 2.000000e-01 : f32
    %5 = vector.broadcast %cst_4 : f32 to vector<2048x128xf32>
    %6 = arith.mulf %5, %2 : vector<2048x128xf32>
    %7 = arith.select %4, %2, %6 : vector<2048x128xi1>, vector<2048x128xf32>
    %8 = arith.truncf %7 : vector<2048x128xf32> to vector<2048x128xbf16>
    %c0_5 = arith.constant 0 : index
    %c0_6 = arith.constant 0 : index
    %9 = vector.load %arg3[%c0_5, %c0_6] : memref<2048x128xbf16, #tpu.memory_space<vmem>>, vector<2048x128xbf16>
    tpu.vector_store %arg3[%c0_5, %c0_6], %8 {strides = array<i32>} : memref<2048x128xbf16, #tpu.memory_space<vmem>>, vector<2048x128xbf16>,
    return
  }
  func.func @transform_0(%arg0: i32) -> (i32, i32) {
    %c0_i32 = arith.constant 0 : i32
    %c0_i32_0 = arith.constant 0 : i32
    return %arg0, %c0_i32 : i32, i32
  }
  func.func @transform_1(%arg0: i32) -> (i32, i32) {
    %c0_i32 = arith.constant 0 : i32
    %c0_i32_0 = arith.constant 0 : i32
    %c0_i32_1 = arith.constant 0 : i32
    return %c0_i32, %c0_i32_0 : i32, i32
  }
  func.func @transform_2(%arg0: i32) -> (i32, i32) {
    %c0_i32 = arith.constant 0 : i32
    %c0_i32_0 = arith.constant 0 : i32
    return %arg0, %c0_i32 : i32, i32
  }
}

module attributes {stable_mosaic.version = 11 : i64} {
  func.func @_mm_stats_kernel(%arg0: i32, %arg1: memref<512x128xbf16, #tpu.memory_space<vmem>>, %arg2: memref<128x128xbf16, #tpu.memory_space<vmem>>, %arg3: memref<512x128xbf16, #tpu.memory_space<vmem>>, %arg4: memref<1x2x128xf32, #tpu.memory_space<vmem>>) attributes {dimension_semantics = [#tpu.dimension_semantics<parallel>], iteration_bounds = array<i64: 1>, scalar_prefetch = 0 : i64, scratch_operands = 0 : i64, tpu.core_type = #tpu.core_type<tc>, window_params = [{transform_indices = @transform_0, window_bounds = array<i64: 512, 128>}, {pipeline_mode = #tpu.pipeline_mode<synchronous>, transform_indices = @transform_1, window_bounds = array<i64: 128, 128>}, {transform_indices = @transform_2, window_bounds = array<i64: 512, 128>}, {transform_indices = @transform_3, window_bounds = array<i64: 1, 2, 128>}]} {
    %c0 = arith.constant 0 : index
    %c0_0 = arith.constant 0 : index
    %0 = vector.load %arg1[%c0, %c0_0] : memref<512x128xbf16, #tpu.memory_space<vmem>>, vector<512x128xbf16>
    %c0_1 = arith.constant 0 : index
    %c0_2 = arith.constant 0 : index
    %1 = vector.load %arg2[%c0_1, %c0_2] : memref<128x128xbf16, #tpu.memory_space<vmem>>, vector<128x128xbf16>
    %cst = arith.constant dense<0.000000e+00> : vector<512x128xf32>
    %2 = tpu.matmul %0, %1, %cst {dimension_numbers = #tpu.dot_dimension_numbers<[1], [0], [0], [1], [0, 0, 1, 1], [], []>} : vector<512x128xbf16>, vector<128x128xbf16>, vector<512x128xf32> -> vector<512x128xf32>
    %3 = arith.truncf %2 : vector<512x128xf32> to vector<512x128xbf16>
    %c0_3 = arith.constant 0 : index
    %c0_4 = arith.constant 0 : index
    %4 = vector.load %arg3[%c0_3, %c0_4] : memref<512x128xbf16, #tpu.memory_space<vmem>>, vector<512x128xbf16>
    tpu.vector_store %arg3[%c0_3, %c0_4], %3 {strides = array<i32>} : memref<512x128xbf16, #tpu.memory_space<vmem>>, vector<512x128xbf16>,
    %cst_5 = arith.constant dense<0.000000e+00> : vector<128xf32>
    %5 = vector.multi_reduction <add>, %2, %cst_5 [0] : vector<512x128xf32> to vector<128xf32>
    %6 = vector.shape_cast %5 : vector<128xf32> to vector<1x128xf32>
    %c0_6 = arith.constant 0 : index
    %c0_7 = arith.constant 0 : index
    %c0_8 = arith.constant 0 : index
    %7 = vector.load %arg4[%c0_6, %c0_7, %c0_8] : memref<1x2x128xf32, #tpu.memory_space<vmem>>, vector<1x1x128xf32>
    %8 = vector.shape_cast %7 : vector<1x1x128xf32> to vector<1x128xf32>
    %9 = vector.shape_cast %6 : vector<1x128xf32> to vector<1x1x128xf32>
    tpu.vector_store %arg4[%c0_6, %c0_7, %c0_8], %9 {strides = array<i32>} : memref<1x2x128xf32, #tpu.memory_space<vmem>>, vector<1x1x128xf32>,
    %10 = arith.mulf %2, %2 : vector<512x128xf32>
    %cst_9 = arith.constant dense<0.000000e+00> : vector<128xf32>
    %11 = vector.multi_reduction <add>, %10, %cst_9 [0] : vector<512x128xf32> to vector<128xf32>
    %12 = vector.shape_cast %11 : vector<128xf32> to vector<1x128xf32>
    %c0_10 = arith.constant 0 : index
    %c1 = arith.constant 1 : index
    %c0_11 = arith.constant 0 : index
    %13 = vector.load %arg4[%c0_10, %c1, %c0_11] : memref<1x2x128xf32, #tpu.memory_space<vmem>>, vector<1x1x128xf32>
    %14 = vector.shape_cast %13 : vector<1x1x128xf32> to vector<1x128xf32>
    %15 = vector.shape_cast %12 : vector<1x128xf32> to vector<1x1x128xf32>
    tpu.vector_store %arg4[%c0_10, %c1, %c0_11], %15 {strides = array<i32>} : memref<1x2x128xf32, #tpu.memory_space<vmem>>, vector<1x1x128xf32>,
    return
  }
  func.func @transform_0(%arg0: i32) -> (i32, i32) {
    %c0_i32 = arith.constant 0 : i32
    %c0_i32_0 = arith.constant 0 : i32
    return %arg0, %c0_i32 : i32, i32
  }
  func.func @transform_1(%arg0: i32) -> (i32, i32) {
    %c0_i32 = arith.constant 0 : i32
    %c0_i32_0 = arith.constant 0 : i32
    %c0_i32_1 = arith.constant 0 : i32
    return %c0_i32, %c0_i32_0 : i32, i32
  }
  func.func @transform_2(%arg0: i32) -> (i32, i32) {
    %c0_i32 = arith.constant 0 : i32
    %c0_i32_0 = arith.constant 0 : i32
    return %arg0, %c0_i32 : i32, i32
  }
  func.func @transform_3(%arg0: i32) -> (i32, i32, i32) {
    %c0_i32 = arith.constant 0 : i32
    %c0_i32_0 = arith.constant 0 : i32
    %c0_i32_1 = arith.constant 0 : i32
    return %arg0, %c0_i32, %c0_i32_0 : i32, i32, i32
  }
}

module attributes {stable_mosaic.version = 11 : i64} {
  func.func @_bn_lrelu_kernel(%arg0: i32, %arg1: memref<512x128xbf16, #tpu.memory_space<vmem>>, %arg2: memref<1x128xf32, #tpu.memory_space<vmem>>, %arg3: memref<1x128xf32, #tpu.memory_space<vmem>>, %arg4: memref<512x128xbf16, #tpu.memory_space<vmem>>) attributes {dimension_semantics = [#tpu.dimension_semantics<parallel>], iteration_bounds = array<i64: 1>, scalar_prefetch = 0 : i64, scratch_operands = 0 : i64, tpu.core_type = #tpu.core_type<tc>, window_params = [{transform_indices = @transform_0, window_bounds = array<i64: 512, 128>}, {pipeline_mode = #tpu.pipeline_mode<synchronous>, transform_indices = @transform_1, window_bounds = array<i64: 1, 128>}, {pipeline_mode = #tpu.pipeline_mode<synchronous>, transform_indices = @transform_2, window_bounds = array<i64: 1, 128>}, {transform_indices = @transform_3, window_bounds = array<i64: 512, 128>}]} {
    %c0 = arith.constant 0 : index
    %c0_0 = arith.constant 0 : index
    %0 = vector.load %arg1[%c0, %c0_0] : memref<512x128xbf16, #tpu.memory_space<vmem>>, vector<512x128xbf16>
    %1 = arith.extf %0 : vector<512x128xbf16> to vector<512x128xf32>
    %c0_1 = arith.constant 0 : index
    %c0_2 = arith.constant 0 : index
    %2 = vector.load %arg2[%c0_1, %c0_2] : memref<1x128xf32, #tpu.memory_space<vmem>>, vector<1x128xf32>
    %3 = vector.broadcast %2 : vector<1x128xf32> to vector<512x128xf32>
    %4 = arith.mulf %1, %3 : vector<512x128xf32>
    %c0_3 = arith.constant 0 : index
    %c0_4 = arith.constant 0 : index
    %5 = vector.load %arg3[%c0_3, %c0_4] : memref<1x128xf32, #tpu.memory_space<vmem>>, vector<1x128xf32>
    %6 = vector.broadcast %5 : vector<1x128xf32> to vector<512x128xf32>
    %7 = arith.addf %4, %6 : vector<512x128xf32>
    %cst = arith.constant 0.000000e+00 : f32
    %8 = vector.broadcast %cst : f32 to vector<512x128xf32>
    %9 = arith.cmpf oge, %7, %8 : vector<512x128xf32>
    %cst_5 = arith.constant 2.000000e-01 : f32
    %10 = vector.broadcast %cst_5 : f32 to vector<512x128xf32>
    %11 = arith.mulf %10, %7 : vector<512x128xf32>
    %12 = arith.select %9, %7, %11 : vector<512x128xi1>, vector<512x128xf32>
    %13 = arith.truncf %12 : vector<512x128xf32> to vector<512x128xbf16>
    %c0_6 = arith.constant 0 : index
    %c0_7 = arith.constant 0 : index
    %14 = vector.load %arg4[%c0_6, %c0_7] : memref<512x128xbf16, #tpu.memory_space<vmem>>, vector<512x128xbf16>
    tpu.vector_store %arg4[%c0_6, %c0_7], %13 {strides = array<i32>} : memref<512x128xbf16, #tpu.memory_space<vmem>>, vector<512x128xbf16>,
    return
  }
  func.func @transform_0(%arg0: i32) -> (i32, i32) {
    %c0_i32 = arith.constant 0 : i32
    %c0_i32_0 = arith.constant 0 : i32
    return %arg0, %c0_i32 : i32, i32
  }
  func.func @transform_1(%arg0: i32) -> (i32, i32) {
    %c0_i32 = arith.constant 0 : i32
    %c0_i32_0 = arith.constant 0 : i32
    %c0_i32_1 = arith.constant 0 : i32
    return %c0_i32, %c0_i32_0 : i32, i32
  }
  func.func @transform_2(%arg0: i32) -> (i32, i32) {
    %c0_i32 = arith.constant 0 : i32
    %c0_i32_0 = arith.constant 0 : i32
    %c0_i32_1 = arith.constant 0 : i32
    return %c0_i32, %c0_i32_0 : i32, i32
  }
  func.func @transform_3(%arg0: i32) -> (i32, i32) {
    %c0_i32 = arith.constant 0 : i32
    %c0_i32_0 = arith.constant 0 : i32
    return %arg0, %c0_i32 : i32, i32
  }
}

module attributes {stable_mosaic.version = 11 : i64} {
  func.func @_mm_stats_kernel(%arg0: i32, %arg1: memref<128x256xbf16, #tpu.memory_space<vmem>>, %arg2: memref<256x128xbf16, #tpu.memory_space<vmem>>, %arg3: memref<128x128xbf16, #tpu.memory_space<vmem>>, %arg4: memref<1x2x128xf32, #tpu.memory_space<vmem>>) attributes {dimension_semantics = [#tpu.dimension_semantics<parallel>], iteration_bounds = array<i64: 1>, scalar_prefetch = 0 : i64, scratch_operands = 0 : i64, tpu.core_type = #tpu.core_type<tc>, window_params = [{transform_indices = @transform_0, window_bounds = array<i64: 128, 256>}, {pipeline_mode = #tpu.pipeline_mode<synchronous>, transform_indices = @transform_1, window_bounds = array<i64: 256, 128>}, {transform_indices = @transform_2, window_bounds = array<i64: 128, 128>}, {transform_indices = @transform_3, window_bounds = array<i64: 1, 2, 128>}]} {
    %c0 = arith.constant 0 : index
    %c0_0 = arith.constant 0 : index
    %0 = vector.load %arg1[%c0, %c0_0] : memref<128x256xbf16, #tpu.memory_space<vmem>>, vector<128x256xbf16>
    %c0_1 = arith.constant 0 : index
    %c0_2 = arith.constant 0 : index
    %1 = vector.load %arg2[%c0_1, %c0_2] : memref<256x128xbf16, #tpu.memory_space<vmem>>, vector<256x128xbf16>
    %cst = arith.constant dense<0.000000e+00> : vector<128x128xf32>
    %2 = tpu.matmul %0, %1, %cst {dimension_numbers = #tpu.dot_dimension_numbers<[1], [0], [0], [1], [0, 0, 1, 1], [], []>} : vector<128x256xbf16>, vector<256x128xbf16>, vector<128x128xf32> -> vector<128x128xf32>
    %3 = arith.truncf %2 : vector<128x128xf32> to vector<128x128xbf16>
    %c0_3 = arith.constant 0 : index
    %c0_4 = arith.constant 0 : index
    %4 = vector.load %arg3[%c0_3, %c0_4] : memref<128x128xbf16, #tpu.memory_space<vmem>>, vector<128x128xbf16>
    tpu.vector_store %arg3[%c0_3, %c0_4], %3 {strides = array<i32>} : memref<128x128xbf16, #tpu.memory_space<vmem>>, vector<128x128xbf16>,
    %cst_5 = arith.constant dense<0.000000e+00> : vector<128xf32>
    %5 = vector.multi_reduction <add>, %2, %cst_5 [0] : vector<128x128xf32> to vector<128xf32>
    %6 = vector.shape_cast %5 : vector<128xf32> to vector<1x128xf32>
    %c0_6 = arith.constant 0 : index
    %c0_7 = arith.constant 0 : index
    %c0_8 = arith.constant 0 : index
    %7 = vector.load %arg4[%c0_6, %c0_7, %c0_8] : memref<1x2x128xf32, #tpu.memory_space<vmem>>, vector<1x1x128xf32>
    %8 = vector.shape_cast %7 : vector<1x1x128xf32> to vector<1x128xf32>
    %9 = vector.shape_cast %6 : vector<1x128xf32> to vector<1x1x128xf32>
    tpu.vector_store %arg4[%c0_6, %c0_7, %c0_8], %9 {strides = array<i32>} : memref<1x2x128xf32, #tpu.memory_space<vmem>>, vector<1x1x128xf32>,
    %10 = arith.mulf %2, %2 : vector<128x128xf32>
    %cst_9 = arith.constant dense<0.000000e+00> : vector<128xf32>
    %11 = vector.multi_reduction <add>, %10, %cst_9 [0] : vector<128x128xf32> to vector<128xf32>
    %12 = vector.shape_cast %11 : vector<128xf32> to vector<1x128xf32>
    %c0_10 = arith.constant 0 : index
    %c1 = arith.constant 1 : index
    %c0_11 = arith.constant 0 : index
    %13 = vector.load %arg4[%c0_10, %c1, %c0_11] : memref<1x2x128xf32, #tpu.memory_space<vmem>>, vector<1x1x128xf32>
    %14 = vector.shape_cast %13 : vector<1x1x128xf32> to vector<1x128xf32>
    %15 = vector.shape_cast %12 : vector<1x128xf32> to vector<1x1x128xf32>
    tpu.vector_store %arg4[%c0_10, %c1, %c0_11], %15 {strides = array<i32>} : memref<1x2x128xf32, #tpu.memory_space<vmem>>, vector<1x1x128xf32>,
    return
  }
  func.func @transform_0(%arg0: i32) -> (i32, i32) {
    %c0_i32 = arith.constant 0 : i32
    %c0_i32_0 = arith.constant 0 : i32
    return %arg0, %c0_i32 : i32, i32
  }
  func.func @transform_1(%arg0: i32) -> (i32, i32) {
    %c0_i32 = arith.constant 0 : i32
    %c0_i32_0 = arith.constant 0 : i32
    %c0_i32_1 = arith.constant 0 : i32
    return %c0_i32, %c0_i32_0 : i32, i32
  }
  func.func @transform_2(%arg0: i32) -> (i32, i32) {
    %c0_i32 = arith.constant 0 : i32
    %c0_i32_0 = arith.constant 0 : i32
    return %arg0, %c0_i32 : i32, i32
  }
  func.func @transform_3(%arg0: i32) -> (i32, i32, i32) {
    %c0_i32 = arith.constant 0 : i32
    %c0_i32_0 = arith.constant 0 : i32
    %c0_i32_1 = arith.constant 0 : i32
    return %arg0, %c0_i32, %c0_i32_0 : i32, i32, i32
  }
}

module attributes {stable_mosaic.version = 11 : i64} {
  func.func @_bn_lrelu_kernel(%arg0: i32, %arg1: memref<128x128xbf16, #tpu.memory_space<vmem>>, %arg2: memref<1x128xf32, #tpu.memory_space<vmem>>, %arg3: memref<1x128xf32, #tpu.memory_space<vmem>>, %arg4: memref<128x128xbf16, #tpu.memory_space<vmem>>) attributes {dimension_semantics = [#tpu.dimension_semantics<parallel>], iteration_bounds = array<i64: 1>, scalar_prefetch = 0 : i64, scratch_operands = 0 : i64, tpu.core_type = #tpu.core_type<tc>, window_params = [{transform_indices = @transform_0, window_bounds = array<i64: 128, 128>}, {pipeline_mode = #tpu.pipeline_mode<synchronous>, transform_indices = @transform_1, window_bounds = array<i64: 1, 128>}, {pipeline_mode = #tpu.pipeline_mode<synchronous>, transform_indices = @transform_2, window_bounds = array<i64: 1, 128>}, {transform_indices = @transform_3, window_bounds = array<i64: 128, 128>}]} {
    %c0 = arith.constant 0 : index
    %c0_0 = arith.constant 0 : index
    %0 = vector.load %arg1[%c0, %c0_0] : memref<128x128xbf16, #tpu.memory_space<vmem>>, vector<128x128xbf16>
    %1 = arith.extf %0 : vector<128x128xbf16> to vector<128x128xf32>
    %c0_1 = arith.constant 0 : index
    %c0_2 = arith.constant 0 : index
    %2 = vector.load %arg2[%c0_1, %c0_2] : memref<1x128xf32, #tpu.memory_space<vmem>>, vector<1x128xf32>
    %3 = vector.broadcast %2 : vector<1x128xf32> to vector<128x128xf32>
    %4 = arith.mulf %1, %3 : vector<128x128xf32>
    %c0_3 = arith.constant 0 : index
    %c0_4 = arith.constant 0 : index
    %5 = vector.load %arg3[%c0_3, %c0_4] : memref<1x128xf32, #tpu.memory_space<vmem>>, vector<1x128xf32>
    %6 = vector.broadcast %5 : vector<1x128xf32> to vector<128x128xf32>
    %7 = arith.addf %4, %6 : vector<128x128xf32>
    %cst = arith.constant 0.000000e+00 : f32
    %8 = vector.broadcast %cst : f32 to vector<128x128xf32>
    %9 = arith.cmpf oge, %7, %8 : vector<128x128xf32>
    %cst_5 = arith.constant 2.000000e-01 : f32
    %10 = vector.broadcast %cst_5 : f32 to vector<128x128xf32>
    %11 = arith.mulf %10, %7 : vector<128x128xf32>
    %12 = arith.select %9, %7, %11 : vector<128x128xi1>, vector<128x128xf32>
    %13 = arith.truncf %12 : vector<128x128xf32> to vector<128x128xbf16>
    %c0_6 = arith.constant 0 : index
    %c0_7 = arith.constant 0 : index
    %14 = vector.load %arg4[%c0_6, %c0_7] : memref<128x128xbf16, #tpu.memory_space<vmem>>, vector<128x128xbf16>
    tpu.vector_store %arg4[%c0_6, %c0_7], %13 {strides = array<i32>} : memref<128x128xbf16, #tpu.memory_space<vmem>>, vector<128x128xbf16>,
    return
  }
  func.func @transform_0(%arg0: i32) -> (i32, i32) {
    %c0_i32 = arith.constant 0 : i32
    %c0_i32_0 = arith.constant 0 : i32
    return %arg0, %c0_i32 : i32, i32
  }
  func.func @transform_1(%arg0: i32) -> (i32, i32) {
    %c0_i32 = arith.constant 0 : i32
    %c0_i32_0 = arith.constant 0 : i32
    %c0_i32_1 = arith.constant 0 : i32
    return %c0_i32, %c0_i32_0 : i32, i32
  }
  func.func @transform_2(%arg0: i32) -> (i32, i32) {
    %c0_i32 = arith.constant 0 : i32
    %c0_i32_0 = arith.constant 0 : i32
    %c0_i32_1 = arith.constant 0 : i32
    return %c0_i32, %c0_i32_0 : i32, i32
  }
  func.func @transform_3(%arg0: i32) -> (i32, i32) {
    %c0_i32 = arith.constant 0 : i32
    %c0_i32_0 = arith.constant 0 : i32
    return %arg0, %c0_i32 : i32, i32
  }
}

module attributes {stable_mosaic.version = 11 : i64} {
  func.func @_bn_lrelu_kernel(%arg0: i32, %arg1: memref<32x128xbf16, #tpu.memory_space<vmem>>, %arg2: memref<1x128xf32, #tpu.memory_space<vmem>>, %arg3: memref<1x128xf32, #tpu.memory_space<vmem>>, %arg4: memref<32x128xbf16, #tpu.memory_space<vmem>>) attributes {dimension_semantics = [#tpu.dimension_semantics<parallel>], iteration_bounds = array<i64: 1>, scalar_prefetch = 0 : i64, scratch_operands = 0 : i64, tpu.core_type = #tpu.core_type<tc>, window_params = [{transform_indices = @transform_0, window_bounds = array<i64: 32, 128>}, {pipeline_mode = #tpu.pipeline_mode<synchronous>, transform_indices = @transform_1, window_bounds = array<i64: 1, 128>}, {pipeline_mode = #tpu.pipeline_mode<synchronous>, transform_indices = @transform_2, window_bounds = array<i64: 1, 128>}, {transform_indices = @transform_3, window_bounds = array<i64: 32, 128>}]} {
    %c0 = arith.constant 0 : index
    %c0_0 = arith.constant 0 : index
    %0 = vector.load %arg1[%c0, %c0_0] : memref<32x128xbf16, #tpu.memory_space<vmem>>, vector<32x128xbf16>
    %1 = arith.extf %0 : vector<32x128xbf16> to vector<32x128xf32>
    %c0_1 = arith.constant 0 : index
    %c0_2 = arith.constant 0 : index
    %2 = vector.load %arg2[%c0_1, %c0_2] : memref<1x128xf32, #tpu.memory_space<vmem>>, vector<1x128xf32>
    %3 = vector.broadcast %2 : vector<1x128xf32> to vector<32x128xf32>
    %4 = arith.mulf %1, %3 : vector<32x128xf32>
    %c0_3 = arith.constant 0 : index
    %c0_4 = arith.constant 0 : index
    %5 = vector.load %arg3[%c0_3, %c0_4] : memref<1x128xf32, #tpu.memory_space<vmem>>, vector<1x128xf32>
    %6 = vector.broadcast %5 : vector<1x128xf32> to vector<32x128xf32>
    %7 = arith.addf %4, %6 : vector<32x128xf32>
    %cst = arith.constant 0.000000e+00 : f32
    %8 = vector.broadcast %cst : f32 to vector<32x128xf32>
    %9 = arith.cmpf oge, %7, %8 : vector<32x128xf32>
    %cst_5 = arith.constant 2.000000e-01 : f32
    %10 = vector.broadcast %cst_5 : f32 to vector<32x128xf32>
    %11 = arith.mulf %10, %7 : vector<32x128xf32>
    %12 = arith.select %9, %7, %11 : vector<32x128xi1>, vector<32x128xf32>
    %13 = arith.truncf %12 : vector<32x128xf32> to vector<32x128xbf16>
    %c0_6 = arith.constant 0 : index
    %c0_7 = arith.constant 0 : index
    %14 = vector.load %arg4[%c0_6, %c0_7] : memref<32x128xbf16, #tpu.memory_space<vmem>>, vector<32x128xbf16>
    tpu.vector_store %arg4[%c0_6, %c0_7], %13 {strides = array<i32>} : memref<32x128xbf16, #tpu.memory_space<vmem>>, vector<32x128xbf16>,
    return
  }
  func.func @transform_0(%arg0: i32) -> (i32, i32) {
    %c0_i32 = arith.constant 0 : i32
    %c0_i32_0 = arith.constant 0 : i32
    return %arg0, %c0_i32 : i32, i32
  }
  func.func @transform_1(%arg0: i32) -> (i32, i32) {
    %c0_i32 = arith.constant 0 : i32
    %c0_i32_0 = arith.constant 0 : i32
    %c0_i32_1 = arith.constant 0 : i32
    return %c0_i32, %c0_i32_0 : i32, i32
  }
  func.func @transform_2(%arg0: i32) -> (i32, i32) {
    %c0_i32 = arith.constant 0 : i32
    %c0_i32_0 = arith.constant 0 : i32
    %c0_i32_1 = arith.constant 0 : i32
    return %c0_i32, %c0_i32_0 : i32, i32
  }
  func.func @transform_3(%arg0: i32) -> (i32, i32) {
    %c0_i32 = arith.constant 0 : i32
    %c0_i32_0 = arith.constant 0 : i32
    return %arg0, %c0_i32 : i32, i32
  }
}

module attributes {stable_mosaic.version = 11 : i64} {
  func.func @_mm_stats_kernel(%arg0: i32, %arg1: memref<32x512xbf16, #tpu.memory_space<vmem>>, %arg2: memref<512x128xbf16, #tpu.memory_space<vmem>>, %arg3: memref<32x128xbf16, #tpu.memory_space<vmem>>, %arg4: memref<1x2x128xf32, #tpu.memory_space<vmem>>) attributes {dimension_semantics = [#tpu.dimension_semantics<parallel>], iteration_bounds = array<i64: 1>, scalar_prefetch = 0 : i64, scratch_operands = 0 : i64, tpu.core_type = #tpu.core_type<tc>, window_params = [{transform_indices = @transform_0, window_bounds = array<i64: 32, 512>}, {pipeline_mode = #tpu.pipeline_mode<synchronous>, transform_indices = @transform_1, window_bounds = array<i64: 512, 128>}, {transform_indices = @transform_2, window_bounds = array<i64: 32, 128>}, {transform_indices = @transform_3, window_bounds = array<i64: 1, 2, 128>}]} {
    %c0 = arith.constant 0 : index
    %c0_0 = arith.constant 0 : index
    %0 = vector.load %arg1[%c0, %c0_0] : memref<32x512xbf16, #tpu.memory_space<vmem>>, vector<32x512xbf16>
    %c0_1 = arith.constant 0 : index
    %c0_2 = arith.constant 0 : index
    %1 = vector.load %arg2[%c0_1, %c0_2] : memref<512x128xbf16, #tpu.memory_space<vmem>>, vector<512x128xbf16>
    %cst = arith.constant dense<0.000000e+00> : vector<32x128xf32>
    %2 = tpu.matmul %0, %1, %cst {dimension_numbers = #tpu.dot_dimension_numbers<[1], [0], [0], [1], [0, 0, 1, 1], [], []>} : vector<32x512xbf16>, vector<512x128xbf16>, vector<32x128xf32> -> vector<32x128xf32>
    %3 = arith.truncf %2 : vector<32x128xf32> to vector<32x128xbf16>
    %c0_3 = arith.constant 0 : index
    %c0_4 = arith.constant 0 : index
    %4 = vector.load %arg3[%c0_3, %c0_4] : memref<32x128xbf16, #tpu.memory_space<vmem>>, vector<32x128xbf16>
    tpu.vector_store %arg3[%c0_3, %c0_4], %3 {strides = array<i32>} : memref<32x128xbf16, #tpu.memory_space<vmem>>, vector<32x128xbf16>,
    %cst_5 = arith.constant dense<0.000000e+00> : vector<128xf32>
    %5 = vector.multi_reduction <add>, %2, %cst_5 [0] : vector<32x128xf32> to vector<128xf32>
    %6 = vector.shape_cast %5 : vector<128xf32> to vector<1x128xf32>
    %c0_6 = arith.constant 0 : index
    %c0_7 = arith.constant 0 : index
    %c0_8 = arith.constant 0 : index
    %7 = vector.load %arg4[%c0_6, %c0_7, %c0_8] : memref<1x2x128xf32, #tpu.memory_space<vmem>>, vector<1x1x128xf32>
    %8 = vector.shape_cast %7 : vector<1x1x128xf32> to vector<1x128xf32>
    %9 = vector.shape_cast %6 : vector<1x128xf32> to vector<1x1x128xf32>
    tpu.vector_store %arg4[%c0_6, %c0_7, %c0_8], %9 {strides = array<i32>} : memref<1x2x128xf32, #tpu.memory_space<vmem>>, vector<1x1x128xf32>,
    %10 = arith.mulf %2, %2 : vector<32x128xf32>
    %cst_9 = arith.constant dense<0.000000e+00> : vector<128xf32>
    %11 = vector.multi_reduction <add>, %10, %cst_9 [0] : vector<32x128xf32> to vector<128xf32>
    %12 = vector.shape_cast %11 : vector<128xf32> to vector<1x128xf32>
    %c0_10 = arith.constant 0 : index
    %c1 = arith.constant 1 : index
    %c0_11 = arith.constant 0 : index
    %13 = vector.load %arg4[%c0_10, %c1, %c0_11] : memref<1x2x128xf32, #tpu.memory_space<vmem>>, vector<1x1x128xf32>
    %14 = vector.shape_cast %13 : vector<1x1x128xf32> to vector<1x128xf32>
    %15 = vector.shape_cast %12 : vector<1x128xf32> to vector<1x1x128xf32>
    tpu.vector_store %arg4[%c0_10, %c1, %c0_11], %15 {strides = array<i32>} : memref<1x2x128xf32, #tpu.memory_space<vmem>>, vector<1x1x128xf32>,
    return
  }
  func.func @transform_0(%arg0: i32) -> (i32, i32) {
    %c0_i32 = arith.constant 0 : i32
    %c0_i32_0 = arith.constant 0 : i32
    return %arg0, %c0_i32 : i32, i32
  }
  func.func @transform_1(%arg0: i32) -> (i32, i32) {
    %c0_i32 = arith.constant 0 : i32
    %c0_i32_0 = arith.constant 0 : i32
    %c0_i32_1 = arith.constant 0 : i32
    return %c0_i32, %c0_i32_0 : i32, i32
  }
  func.func @transform_2(%arg0: i32) -> (i32, i32) {
    %c0_i32 = arith.constant 0 : i32
    %c0_i32_0 = arith.constant 0 : i32
    return %arg0, %c0_i32 : i32, i32
  }
  func.func @transform_3(%arg0: i32) -> (i32, i32, i32) {
    %c0_i32 = arith.constant 0 : i32
    %c0_i32_0 = arith.constant 0 : i32
    %c0_i32_1 = arith.constant 0 : i32
    return %arg0, %c0_i32, %c0_i32_0 : i32, i32, i32
  }
}

module attributes {stable_mosaic.version = 11 : i64} {
  func.func @_mm_sigmoid_kernel(%arg0: i32, %arg1: memref<8x1024xbf16, #tpu.memory_space<vmem>>, %arg2: memref<1024x128xbf16, #tpu.memory_space<vmem>>, %arg3: memref<8x128xf32, #tpu.memory_space<vmem>>) attributes {dimension_semantics = [#tpu.dimension_semantics<parallel>], iteration_bounds = array<i64: 1>, scalar_prefetch = 0 : i64, scratch_operands = 0 : i64, tpu.core_type = #tpu.core_type<tc>, window_params = [{transform_indices = @transform_0, window_bounds = array<i64: 8, 1024>}, {pipeline_mode = #tpu.pipeline_mode<synchronous>, transform_indices = @transform_1, window_bounds = array<i64: 1024, 128>}, {transform_indices = @transform_2, window_bounds = array<i64: 8, 128>}]} {
    %c0 = arith.constant 0 : index
    %c0_0 = arith.constant 0 : index
    %0 = vector.load %arg1[%c0, %c0_0] : memref<8x1024xbf16, #tpu.memory_space<vmem>>, vector<8x1024xbf16>
    %c0_1 = arith.constant 0 : index
    %c0_2 = arith.constant 0 : index
    %1 = vector.load %arg2[%c0_1, %c0_2] : memref<1024x128xbf16, #tpu.memory_space<vmem>>, vector<1024x128xbf16>
    %cst = arith.constant dense<0.000000e+00> : vector<8x128xf32>
    %2 = tpu.matmul %0, %1, %cst {dimension_numbers = #tpu.dot_dimension_numbers<[1], [0], [0], [1], [0, 0, 1, 1], [], []>} : vector<8x1024xbf16>, vector<1024x128xbf16>, vector<8x128xf32> -> vector<8x128xf32>
    %3 = arith.negf %2 : vector<8x128xf32>
    %4 = math.exp %3 : vector<8x128xf32>
    %cst_3 = arith.constant 1.000000e+00 : f32
    %5 = vector.broadcast %cst_3 : f32 to vector<8x128xf32>
    %6 = arith.addf %5, %4 : vector<8x128xf32>
    %7 = arith.divf %5, %6 : vector<8x128xf32>
    %c0_4 = arith.constant 0 : index
    %c0_5 = arith.constant 0 : index
    %8 = vector.load %arg3[%c0_4, %c0_5] : memref<8x128xf32, #tpu.memory_space<vmem>>, vector<8x128xf32>
    tpu.vector_store %arg3[%c0_4, %c0_5], %7 {strides = array<i32>} : memref<8x128xf32, #tpu.memory_space<vmem>>, vector<8x128xf32>,
    return
  }
  func.func @transform_0(%arg0: i32) -> (i32, i32) {
    %c0_i32 = arith.constant 0 : i32
    %c0_i32_0 = arith.constant 0 : i32
    return %arg0, %c0_i32 : i32, i32
  }
  func.func @transform_1(%arg0: i32) -> (i32, i32) {
    %c0_i32 = arith.constant 0 : i32
    %c0_i32_0 = arith.constant 0 : i32
    %c0_i32_1 = arith.constant 0 : i32
    return %c0_i32, %c0_i32_0 : i32, i32
  }
  func.func @transform_2(%arg0: i32) -> (i32, i32) {
    %c0_i32 = arith.constant 0 : i32
    %c0_i32_0 = arith.constant 0 : i32
    return %arg0, %c0_i32 : i32, i32
  }
}

</mosaic_0001>

<bundles_post_ra>
// kernel: discriminator_forward.8
= control target key start
LH: loop header
LB: loop body
LE: loop exit
PB: predicated region body
PF: predicated region fallthrough
CT: control target
= control target key end

     0   :  { %vm932_vm0 = vcmask 392192   ;;  %s7455_s1 = inlined_call_operand.vmem [shape: bf16[48,128], index: 1, kind: input, shape index: {}]   ;;  %s7456_s0 = inlined_call_operand.vmem [shape: bf16[2048,48], index: 0, kind: input, shape index: {}]   ;;  %s7457_s2 = inlined_call_operand.vmem [shape: bf16[2048,128], index: 2, kind: output, shape index: {}]  }
   0x1   :  { %v6363_v0 = vld [vmem:[%s7455_s1 + $0x10] sm:$0xff]   ;;  %v6364_v1 = vld [vmem:[%s7455_s1 + $0x8] sm:$0xff]   ;;  %v6365_v2 = vld [vmem:[%s7455_s1] sm:$0xff]  }
   0x2   :  { %6095 = vmatprep.subr.bf16.mxu0 %v6363_v0  ;;  %6357 = vmatprep.subr.bf16.mxu1 %v6363_v0  ;;  %v6366_v3 = vld [vmem:[%s7456_s0] sm:$0xff]   ;;  %v6368_v5 = vld [vmem:[%s7456_s0 + $0x8] sm:$0xff]   ;;  %v6370_v7 = vld [vmem:[%s7456_s0 + $0x10] sm:$0xff]  }
   0x3   :  { %6096 = vmatpush3.bf16.msra.mxu0 %v6363_v0  ;;  %6360 = vmatpush3.bf16.msra.mxu1 %v6363_v0  ;;  %v6367_v4 = vld [vmem:[%s7456_s0 + $0x200] sm:$0xff]   ;;  %v6369_v6 = vld [vmem:[%s7456_s0 + $0x208] sm:$0xff]   ;;  %v6371_v8 = vld [vmem:[%s7456_s0 + $0x210] sm:$0xff]  }
   0x4   :  { %6097 = vmatprep.subr.bf16.mxu0 %v6364_v1  ;;  %6358 = vmatprep.subr.bf16.mxu1 %v6364_v1  ;;  %v6372_v9 = vld [vmem:[%s7456_s0 + $0x18] sm:$0xff]   ;;  %v6374_v11 = vld [vmem:[%s7456_s0 + $0x20] sm:$0xff]   ;;  %v6376_v13 = vld [vmem:[%s7456_s0 + $0x28] sm:$0xff]  }
   0x5   :  { %6101 = vmatprep.mubr.msk.bf16.mxu0 %vm932_vm0, %v6366_v3  ;;  %6229 = vmatprep.mubr.msk.bf16.mxu1 %vm932_vm0, %v6367_v4  ;;  %v6373_v10 = vld [vmem:[%s7456_s0 + $0x218] sm:$0xff]   ;;  %v6375_v12 = vld [vmem:[%s7456_s0 + $0x220] sm:$0xff]   ;;  %v6377_v14 = vld [vmem:[%s7456_s0 + $0x228] sm:$0xff]  }
   0x6   :  { %v6378_v15 = vld [vmem:[%s7456_s0 + $0x30] sm:$0xff]   ;;  %v6380_v17 = vld [vmem:[%s7456_s0 + $0x38] sm:$0xff]   ;;  %v6382_v19 = vld [vmem:[%s7456_s0 + $0x40] sm:$0xff]  }
   0x7   :  { %6098 = vmatpush3.bf16.msra.mxu0 %v6364_v1  ;;  %6361 = vmatpush3.bf16.msra.mxu1 %v6364_v1  ;;  %v6379_v16 = vld [vmem:[%s7456_s0 + $0x230] sm:$0xff]   ;;  %v6381_v18 = vld [vmem:[%s7456_s0 + $0x238] sm:$0xff]   ;;  %v6383_v20 = vld [vmem:[%s7456_s0 + $0x240] sm:$0xff]  }
   0x8   :  { %6099 = vmatprep.subr.bf16.mxu0 %v6365_v2  ;;  %6359 = vmatprep.subr.bf16.mxu1 %v6365_v2  ;;  %v6384_v21 = vld [vmem:[%s7456_s0 + $0x48] sm:$0xff]   ;;  %v6386_v23 = vld [vmem:[%s7456_s0 + $0x50] sm:$0xff]   ;;  %v6388_v25 = vld [vmem:[%s7456_s0 + $0x58] sm:$0xff]  }
   0x9   :  { %v6385_v22 = vld [vmem:[%s7456_s0 + $0x248] sm:$0xff]   ;;  %v6387_v24 = vld [vmem:[%s7456_s0 + $0x250] sm:$0xff]   ;;  %v6389_v26 = vld [vmem:[%s7456_s0 + $0x258] sm:$0xff]  }
   0xa   :  { %v6390_v27 = vld [vmem:[%s7456_s0 + $0x60] sm:$0xff]   ;;  %v6392_v29 = vld [vmem:[%s7456_s0 + $0x68] sm:$0xff]   ;;  %v6394_v31 = vld [vmem:[%s7456_s0 + $0x70] sm:$0xff]  }
   0xb   :  { %6100 = vmatpush3.bf16.msra.mxu0 %v6365_v2  ;;  %6362 = vmatpush3.bf16.msra.mxu1 %v6365_v2  ;;  %v6391_v28 = vld [vmem:[%s7456_s0 + $0x260] sm:$0xff]   ;;  %v6393_v30 = vld [vmem:[%s7456_s0 + $0x268] sm:$0xff]   ;;  %v6395_v32 = vld [vmem:[%s7456_s0 + $0x270] sm:$0xff]  }
   0xc   :  { %v6396_v33 = vld [vmem:[%s7456_s0 + $0x78] sm:$0xff]   ;;  %v6398_v35 = vld [vmem:[%s7456_s0 + $0x80] sm:$0xff]   ;;  %v6400_v37 = vld [vmem:[%s7456_s0 + $0x88] sm:$0xff]  }
   0xd   :  { %v6397_v34 = vld [vmem:[%s7456_s0 + $0x278] sm:$0xff]   ;;  %v6399_v36 = vld [vmem:[%s7456_s0 + $0x280] sm:$0xff]   ;;  %v6401_v38 = vld [vmem:[%s7456_s0 + $0x288] sm:$0xff]  }
   0xe   :  { %6102 = vmatmul.mubr.msk.bf16.vlgmr.msra.gmra.mxu0 %vm932_vm0, %v6368_v5  ;;  %6230 = vmatmul.mubr.msk.bf16.vlgmr.msra.gmra.mxu1 %vm932_vm0, %v6369_v6  ;;  %v6402_v39 = vld [vmem:[%s7456_s0 + $0x90] sm:$0xff]   ;;  %v6404_v41 = vld [vmem:[%s7456_s0 + $0x98] sm:$0xff]   ;;  %v6406_v43 = vld [vmem:[%s7456_s0 + $0xa0] sm:$0xff]  }
   0xf   :  { %6105 = vmatprep.mubr.msk.bf16.mxu0 %vm932_vm0, %v6370_v7  ;;  %6233 = vmatprep.mubr.msk.bf16.mxu1 %vm932_vm0, %v6371_v8  ;;  %v6403_v40 = vld [vmem:[%s7456_s0 + $0x290] sm:$0xff]   ;;  %v6405_v42 = vld [vmem:[%s7456_s0 + $0x298] sm:$0xff]   ;;  %v6407_v44 = vld [vmem:[%s7456_s0 + $0x2a0] sm:$0xff]  }
  0x10   :  { %v6408_v45 = vld [vmem:[%s7456_s0 + $0xa8] sm:$0xff]   ;;  %v6410_v47 = vld [vmem:[%s7456_s0 + $0xb0] sm:$0xff]   ;;  %v6412_v49 = vld [vmem:[%s7456_s0 + $0xb8] sm:$0xff]  }
  0x11   :  { %v6409_v46 = vld [vmem:[%s7456_s0 + $0x2a8] sm:$0xff]   ;;  %v6411_v48 = vld [vmem:[%s7456_s0 + $0x2b0] sm:$0xff]   ;;  %v6413_v50 = vld [vmem:[%s7456_s0 + $0x2b8] sm:$0xff]  }
  0x12   :  { %v6414_v51 = vld [vmem:[%s7456_s0 + $0xc0] sm:$0xff]   ;;  %v6416_v53 = vld [vmem:[%s7456_s0 + $0xc8] sm:$0xff]   ;;  %v6418_v55 = vld [vmem:[%s7456_s0 + $0xd0] sm:$0xff]  }
  0x13   :  { %v6415_v52 = vld [vmem:[%s7456_s0 + $0x2c0] sm:$0xff]   ;;  %v6417_v54 = vld [vmem:[%s7456_s0 + $0x2c8] sm:$0xff]   ;;  %v6419_v56 = vld [vmem:[%s7456_s0 + $0x2d0] sm:$0xff]  }
  0x14   :  { %v6420_v57 = vld [vmem:[%s7456_s0 + $0xd8] sm:$0xff]   ;;  %v6422_v59 = vld [vmem:[%s7456_s0 + $0xe0] sm:$0xff]   ;;  %v6424_v61 = vld [vmem:[%s7456_s0 + $0xe8] sm:$0xff]  }
  0x15   :  { %v6421_v58 = vld [vmem:[%s7456_s0 + $0x2d8] sm:$0xff]   ;;  %v6423_v60 = vld [vmem:[%s7456_s0 + $0x2e0] sm:$0xff]   ;;  %v6425_v62 = vld [vmem:[%s7456_s0 + $0x2e8] sm:$0xff]  }
  0x16   :  { %6106 = vmatmul.mubr.msk.bf16.gmra.mxu0 %vm932_vm0, %v6372_v9  ;;  %6234 = vmatmul.mubr.msk.bf16.gmra.mxu1 %vm932_vm0, %v6373_v10  ;;  %v6426_v63 = vld [vmem:[%s7456_s0 + $0xf0] sm:$0xff]   ;;  %v6428_v1 = vld [vmem:[%s7456_s0 + $0xf8] sm:$0xff]   ;;  %v6430_v3 = vld [vmem:[%s7456_s0 + $0x100] sm:$0xff]  }
  0x17   :  { %6109 = vmatprep.mubr.msk.bf16.mxu0 %vm932_vm0, %v6374_v11  ;;  %6237 = vmatprep.mubr.msk.bf16.mxu1 %vm932_vm0, %v6375_v12  ;;  %v6427_v0 = vld [vmem:[%s7456_s0 + $0x2f0] sm:$0xff]   ;;  %v6429_v2 = vld [vmem:[%s7456_s0 + $0x2f8] sm:$0xff]   ;;  %v6431_v4 = vld [vmem:[%s7456_s0 + $0x300] sm:$0xff]  }
  0x18   :  { %v6432_v5 = vld [vmem:[%s7456_s0 + $0x108] sm:$0xff]   ;;  %v6434_v7 = vld [vmem:[%s7456_s0 + $0x110] sm:$0xff]   ;;  %v6436_v9 = vld [vmem:[%s7456_s0 + $0x118] sm:$0xff]  }
  0x19   :  { %v6433_v6 = vld [vmem:[%s7456_s0 + $0x308] sm:$0xff]   ;;  %v6435_v8 = vld [vmem:[%s7456_s0 + $0x310] sm:$0xff]   ;;  %v6437_v10 = vld [vmem:[%s7456_s0 + $0x318] sm:$0xff]  }
  0x1a   :  { %v6438_v11 = vld [vmem:[%s7456_s0 + $0x120] sm:$0xff]  }
  0x1b   :  { %v6439_v12 = vld [vmem:[%s7456_s0 + $0x320] sm:$0xff]  }
  0x1e   :  { %6110 = vmatmul.mubr.msk.bf16.gmra.mxu0 %vm932_vm0, %v6376_v13  ;;  %6238 = vmatmul.mubr.msk.bf16.gmra.mxu1 %vm932_vm0, %v6377_v14  ;;  %v6440_v13 = vld [vmem:[%s7456_s0 + $0x128] sm:$0xff]  }
  0x1f   :  { %6113 = vmatprep.mubr.msk.bf16.mxu0 %vm932_vm0, %v6378_v15  ;;  %6241 = vmatprep.mubr.msk.bf16.mxu1 %vm932_vm0, %v6379_v16  ;;  %v6441_v14 = vld [vmem:[%s7456_s0 + $0x328] sm:$0xff]   ;;  %v6442_v15 = vld [vmem:[%s7456_s0 + $0x130] sm:$0xff]  }
  0x20   :  { %v6443_v16 = vld [vmem:[%s7456_s0 + $0x330] sm:$0xff]  }
  0x26   :  { %6114 = vmatmul.mubr.msk.bf16.gmra.mxu0 %vm932_vm0, %v6380_v17  ;;  %6242 = vmatmul.mubr.msk.bf16.gmra.mxu1 %vm932_vm0, %v6381_v18  ;;  %v6444_v17 = vld [vmem:[%s7456_s0 + $0x138] sm:$0xff]  }
  0x27   :  { %6117 = vmatprep.mubr.msk.bf16.mxu0 %vm932_vm0, %v6382_v19  ;;  %6245 = vmatprep.mubr.msk.bf16.mxu1 %vm932_vm0, %v6383_v20  ;;  %v6445_v18 = vld [vmem:[%s7456_s0 + $0x338] sm:$0xff]   ;;  %v6446_v19 = vld [vmem:[%s7456_s0 + $0x140] sm:$0xff]  }
  0x28   :  { %v6447_v20 = vld [vmem:[%s7456_s0 + $0x340] sm:$0xff]  }
  0x2e   :  { %6118 = vmatmul.mubr.msk.bf16.gmra.mxu0 %vm932_vm0, %v6384_v21  ;;  %6246 = vmatmul.mubr.msk.bf16.gmra.mxu1 %vm932_vm0, %v6385_v22  ;;  %v6448_v21 = vld [vmem:[%s7456_s0 + $0x148] sm:$0xff]  }
  0x2f   :  { %6121 = vmatprep.mubr.msk.bf16.mxu0 %vm932_vm0, %v6386_v23  ;;  %6249 = vmatprep.mubr.msk.bf16.mxu1 %vm932_vm0, %v6387_v24  ;;  %v6449_v22 = vld [vmem:[%s7456_s0 + $0x348] sm:$0xff]   ;;  %v6450_v23 = vld [vmem:[%s7456_s0 + $0x150] sm:$0xff]  }
  0x30   :  { %v6451_v24 = vld [vmem:[%s7456_s0 + $0x350] sm:$0xff]  }
  0x36   :  { %6122 = vmatmul.mubr.msk.bf16.gmra.mxu0 %vm932_vm0, %v6388_v25  ;;  %6250 = vmatmul.mubr.msk.bf16.gmra.mxu1 %vm932_vm0, %v6389_v26  ;;  %v6452_v25 = vld [vmem:[%s7456_s0 + $0x158] sm:$0xff]  }
  0x37   :  { %6125 = vmatprep.mubr.msk.bf16.mxu0 %vm932_vm0, %v6390_v27  ;;  %6253 = vmatprep.mubr.msk.bf16.mxu1 %vm932_vm0, %v6391_v28  ;;  %v6453_v26 = vld [vmem:[%s7456_s0 + $0x358] sm:$0xff]   ;;  %v6454_v27 = vld [vmem:[%s7456_s0 + $0x160] sm:$0xff]  }
  0x38   :  { %v6455_v28 = vld [vmem:[%s7456_s0 + $0x360] sm:$0xff]  }
  0x3e   :  { %6126 = vmatmul.mubr.msk.bf16.gmra.mxu0 %vm932_vm0, %v6392_v29  ;;  %6254 = vmatmul.mubr.msk.bf16.gmra.mxu1 %vm932_vm0, %v6393_v30  ;;  %v6456_v29 = vld [vmem:[%s7456_s0 + $0x168] sm:$0xff]  }
  0x3f   :  { %6129 = vmatprep.mubr.msk.bf16.mxu0 %vm932_vm0, %v6394_v31  ;;  %6257 = vmatprep.mubr.msk.bf16.mxu1 %vm932_vm0, %v6395_v32  ;;  %v6457_v30 = vld [vmem:[%s7456_s0 + $0x368] sm:$0xff]   ;;  %v6458_v31 = vld [vmem:[%s7456_s0 + $0x170] sm:$0xff]  }
  0x40   :  { %v6459_v32 = vld [vmem:[%s7456_s0 + $0x370] sm:$0xff]  }
  0x46   :  { %6130 = vmatmul.mubr.msk.bf16.gmra.mxu0 %vm932_vm0, %v6396_v33  ;;  %6258 = vmatmul.mubr.msk.bf16.gmra.mxu1 %vm932_vm0, %v6397_v34  ;;  %v6460_v33 = vld [vmem:[%s7456_s0 + $0x178] sm:$0xff]  }
  0x47   :  { %6133 = vmatprep.mubr.msk.bf16.mxu0 %vm932_vm0, %v6398_v35  ;;  %6261 = vmatprep.mubr.msk.bf16.mxu1 %vm932_vm0, %v6399_v36  ;;  %v6461_v34 = vld [vmem:[%s7456_s0 + $0x378] sm:$0xff]   ;;  %v6462_v35 = vld [vmem:[%s7456_s0 + $0x180] sm:$0xff]  }
  0x48   :  { %v6463_v36 = vld [vmem:[%s7456_s0 + $0x380] sm:$0xff]  }
  0x4e   :  { %6134 = vmatmul.mubr.msk.bf16.gmra.mxu0 %vm932_vm0, %v6400_v37  ;;  %6262 = vmatmul.mubr.msk.bf16.gmra.mxu1 %vm932_vm0, %v6401_v38  ;;  %v6464_v37 = vld [vmem:[%s7456_s0 + $0x188] sm:$0xff]  }
  0x4f   :  { %6137 = vmatprep.mubr.msk.bf16.mxu0 %vm932_vm0, %v6402_v39  ;;  %6265 = vmatprep.mubr.msk.bf16.mxu1 %vm932_vm0, %v6403_v40  ;;  %v6465_v38 = vld [vmem:[%s7456_s0 + $0x388] sm:$0xff]   ;;  %v6466_v39 = vld [vmem:[%s7456_s0 + $0x190] sm:$0xff]  }
  0x50   :  { %v6467_v40 = vld [vmem:[%s7456_s0 + $0x390] sm:$0xff]  }
  0x56   :  { %6138 = vmatmul.mubr.msk.bf16.gmra.mxu0 %vm932_vm0, %v6404_v41  ;;  %6266 = vmatmul.mubr.msk.bf16.gmra.mxu1 %vm932_vm0, %v6405_v42 }
  0x57   :  { %6141 = vmatprep.mubr.msk.bf16.mxu0 %vm932_vm0, %v6406_v43  ;;  %6269 = vmatprep.mubr.msk.bf16.mxu1 %vm932_vm0, %v6407_v44 }
  0x5e   :  { %6142 = vmatmul.mubr.msk.bf16.gmra.mxu0 %vm932_vm0, %v6408_v45  ;;  %6270 = vmatmul.mubr.msk.bf16.gmra.mxu1 %vm932_vm0, %v6409_v46 }
  0x5f   :  { %6145 = vmatprep.mubr.msk.bf16.mxu0 %vm932_vm0, %v6410_v47  ;;  %6273 = vmatprep.mubr.msk.bf16.mxu1 %vm932_vm0, %v6411_v48 }
  0x66   :  { %6146 = vmatmul.mubr.msk.bf16.gmra.mxu0 %vm932_vm0, %v6412_v49  ;;  %6274 = vmatmul.mubr.msk.bf16.gmra.mxu1 %vm932_vm0, %v6413_v50 }
  0x67   :  { %6149 = vmatprep.mubr.msk.bf16.mxu0 %vm932_vm0, %v6414_v51  ;;  %6277 = vmatprep.mubr.msk.bf16.mxu1 %vm932_vm0, %v6415_v52  ;;  %v6468_v51 = vld [vmem:[%s7456_s0 + $0x198] sm:$0xff]  }
  0x68   :  { %v6469_v52 = vld [vmem:[%s7456_s0 + $0x398] sm:$0xff]  }
  0x6e   :  { %6150 = vmatmul.mubr.msk.bf16.gmra.mxu0 %vm932_vm0, %v6416_v53  ;;  %6278 = vmatmul.mubr.msk.bf16.gmra.mxu1 %vm932_vm0, %v6417_v54  ;;  %v6470_v53 = vld [vmem:[%s7456_s0 + $0x1a0] sm:$0xff]  }
  0x6f   :  { %6153 = vmatprep.mubr.msk.bf16.mxu0 %vm932_vm0, %v6418_v55  ;;  %6281 = vmatprep.mubr.msk.bf16.mxu1 %vm932_vm0, %v6419_v56  ;;  %v6471_v55 = vld [vmem:[%s7456_s0 + $0x3a0] sm:$0xff]  }
  0x76   :  { %6154 = vmatmul.mubr.msk.bf16.gmra.mxu0 %vm932_vm0, %v6420_v57  ;;  %6282 = vmatmul.mubr.msk.bf16.gmra.mxu1 %vm932_vm0, %v6421_v58 }
  0x77   :  { %6157 = vmatprep.mubr.msk.bf16.mxu0 %vm932_vm0, %v6422_v59  ;;  %6285 = vmatprep.mubr.msk.bf16.mxu1 %vm932_vm0, %v6423_v60 }
  0x7e   :  { %6158 = vmatmul.mubr.msk.bf16.gmra.mxu0 %vm932_vm0, %v6424_v61  ;;  %6286 = vmatmul.mubr.msk.bf16.gmra.mxu1 %vm932_vm0, %v6425_v62 }
  0x7f   :  { %6161 = vmatprep.mubr.msk.bf16.mxu0 %vm932_vm0, %v6426_v63  ;;  %6289 = vmatprep.mubr.msk.bf16.mxu1 %vm932_vm0, %v6427_v0 }
  0x86   :  { %6162 = vmatmul.mubr.msk.bf16.gmra.mxu0 %vm932_vm0, %v6428_v1  ;;  %6290 = vmatmul.mubr.msk.bf16.gmra.mxu1 %vm932_vm0, %v6429_v2 }
  0x87   :  { %6165 = vmatprep.mubr.msk.bf16.mxu0 %vm932_vm0, %v6430_v3  ;;  %6293 = vmatprep.mubr.msk.bf16.mxu1 %vm932_vm0, %v6431_v4 }
  0x8e   :  { %6166 = vmatmul.mubr.msk.bf16.gmra.mxu0 %vm932_vm0, %v6432_v5  ;;  %6294 = vmatmul.mubr.msk.bf16.gmra.mxu1 %vm932_vm0, %v6433_v6 }
  0x8f   :  { %6169 = vmatprep.mubr.msk.bf16.mxu0 %vm932_vm0, %v6434_v7  ;;  %6297 = vmatprep.mubr.msk.bf16.mxu1 %vm932_vm0, %v6435_v8 }
  0x96   :  { %6170 = vmatmul.mubr.msk.bf16.gmra.mxu0 %vm932_vm0, %v6436_v9  ;;  %6298 = vmatmul.mubr.msk.bf16.gmra.mxu1 %vm932_vm0, %v6437_v10 }
  0x97   :  { %6173 = vmatprep.mubr.msk.bf16.mxu0 %vm932_vm0, %v6438_v11  ;;  %6301 = vmatprep.mubr.msk.bf16.mxu1 %vm932_vm0, %v6439_v12 }
  0x9e   :  { %6174 = vmatmul.mubr.msk.bf16.gmra.mxu0 %vm932_vm0, %v6440_v13  ;;  %6302 = vmatmul.mubr.msk.bf16.gmra.mxu1 %vm932_vm0, %v6441_v14 }
  0x9f   :  { %6177 = vmatprep.mubr.msk.bf16.mxu0 %vm932_vm0, %v6442_v15  ;;  %6305 = vmatprep.mubr.msk.bf16.mxu1 %vm932_vm0, %v6443_v16 }
  0xa6   :  { %6178 = vmatmul.mubr.msk.bf16.gmra.mxu0 %vm932_vm0, %v6444_v17  ;;  %6306 = vmatmul.mubr.msk.bf16.gmra.mxu1 %vm932_vm0, %v6445_v18 }
  0xa7   :  { %6181 = vmatprep.mubr.msk.bf16.mxu0 %vm932_vm0, %v6446_v19  ;;  %6309 = vmatprep.mubr.msk.bf16.mxu1 %vm932_vm0, %v6447_v20  ;;  %v6472_v19 = vld [vmem:[%s7456_s0 + $0x1a8] sm:$0xff]  }
  0xa8   :  { %v6473_v20 = vld [vmem:[%s7456_s0 + $0x3a8] sm:$0xff]  }
  0xae   :  { %6182 = vmatmul.mubr.msk.bf16.gmra.mxu0 %vm932_vm0, %v6448_v21  ;;  %6310 = vmatmul.mubr.msk.bf16.gmra.mxu1 %vm932_vm0, %v6449_v22  ;;  %v6474_v21 = vld [vmem:[%s7456_s0 + $0x1b0] sm:$0xff]  }
  0xaf   :  { %6185 = vmatprep.mubr.msk.bf16.mxu0 %vm932_vm0, %v6450_v23  ;;  %6313 = vmatprep.mubr.msk.bf16.mxu1 %vm932_vm0, %v6451_v24  ;;  %v6475_v23 = vld [vmem:[%s7456_s0 + $0x3b0] sm:$0xff]  }
  0xb6   :  { %6186 = vmatmul.mubr.msk.bf16.gmra.mxu0 %vm932_vm0, %v6452_v25  ;;  %6314 = vmatmul.mubr.msk.bf16.gmra.mxu1 %vm932_vm0, %v6453_v26 }
  0xb7   :  { %6189 = vmatprep.mubr.msk.bf16.mxu0 %vm932_vm0, %v6454_v27  ;;  %6317 = vmatprep.mubr.msk.bf16.mxu1 %vm932_vm0, %v6455_v28 }
  0xbe   :  { %6190 = vmatmul.mubr.msk.bf16.gmra.mxu0 %vm932_vm0, %v6456_v29  ;;  %6318 = vmatmul.mubr.msk.bf16.gmra.mxu1 %vm932_vm0, %v6457_v30 }
  0xbf   :  { %6193 = vmatprep.mubr.msk.bf16.mxu0 %vm932_vm0, %v6458_v31  ;;  %6321 = vmatprep.mubr.msk.bf16.mxu1 %vm932_vm0, %v6459_v32 }
  0xc6   :  { %6194 = vmatmul.mubr.msk.bf16.gmra.mxu0 %vm932_vm0, %v6460_v33  ;;  %6322 = vmatmul.mubr.msk.bf16.gmra.mxu1 %vm932_vm0, %v6461_v34 }
  0xc7   :  { %6197 = vmatprep.mubr.msk.bf16.mxu0 %vm932_vm0, %v6462_v35  ;;  %6325 = vmatprep.mubr.msk.bf16.mxu1 %vm932_vm0, %v6463_v36 }
  0xce   :  { %v6103_v41 = vpop.f32.mrf.mxu0  ;;  %6198 = vmatmul.mubr.msk.bf16.gmra.mxu0 %vm932_vm0, %v6464_v37  ;;  %v6231_v42 = vpop.f32.mrf.mxu1  ;;  %6326 = vmatmul.mubr.msk.bf16.gmra.mxu1 %vm932_vm0, %v6465_v38 }
  0xcf   :  { %vm2376_vm1 = vcmp.ge.f32.partialorder %v6103_v41, 0.0  ;;  %v2632_v43 = vmul.f32 0.2, %v6103_v41  ;;  %6201 = vmatprep.mubr.msk.bf16.mxu0 %vm932_vm0, %v6466_v39  ;;  %6329 = vmatprep.mubr.msk.bf16.mxu1 %vm932_vm0, %v6467_v40  ;;  %v2760_v44 = vmul.f32 0.2, %v6231_v42  ;;  %vm2504_vm2 = vcmp.ge.f32.partialorder %v6231_v42, 0.0 }
  0xd0   :  { %v1351_v45 = vpop.f32.mrf.mxu0  ;;  %v1863_v46 = vpop.f32.mrf.mxu1 }
  0xd1   :  { %v2888_v47 = vsel %vm2376_vm1, %v6103_v41, %v2632_v43  ;;  %v2630_v48 = vmul.f32 0.2, %v1351_v45  ;;  %vm2374_vm3 = vcmp.ge.f32.partialorder %v1351_v45, 0.0  ;;  %v3016_v56 = vsel %vm2504_vm2, %v6231_v42, %v2760_v44 }
  0xd2   :  { %v6104_v49 = vpop.f32.mrf.mxu0  ;;  %v6232_v50 = vpop.f32.mrf.mxu1  ;;  %vm2502_vm6 = vcmp.ge.f32.partialorder %v1863_v46, 0.0  ;;  %v2758_v57 = vmul.f32 0.2, %v1863_v46 }
  0xd3   :  { %vm2377_vm4 = vcmp.ge.f32.partialorder %v6104_v49, 0.0  ;;  %v2633_v54 = vmul.f32 0.2, %v6104_v49  ;;  %vm2505_vm5 = vcmp.ge.f32.partialorder %v6232_v50, 0.0  ;;  %v2761_v58 = vmul.f32 0.2, %v6232_v50 }
  0xd4   :  { %v1354_v59 = vpop.f32.mrf.mxu0  ;;  %v1866_v60 = vpop.f32.mrf.mxu1  ;;  %v2886_v63 = vsel %vm2374_vm3, %v1351_v45, %v2630_v48  ;;  %v3014_v8 = vsel %vm2502_vm6, %v1863_v46, %v2758_v57 }
  0xd5   :  { %v2889_v61 = vsel %vm2377_vm4, %v6104_v49, %v2633_v54  ;;  %vm2375_vm7 = vcmp.ge.f32.partialorder %v1354_v59, 0.0  ;;  %v2631_v62 = vmul.f32 0.2, %v1354_v59  ;;  %vm2503_vm8 = vcmp.ge.f32.partialorder %v1866_v60, 0.0 }
  0xd6   :  { %v5205_v0 = vpack.c.bf16 %v2889_v61, %v2888_v47  ;;  %v3017_v1 = vsel %vm2505_vm5, %v6232_v50, %v2761_v58  ;;  %v2759_v2 = vmul.f32 0.2, %v1866_v60  ;;  %v6107_v3 = vpop.f32.mrf.mxu0  ;;  %6202 = vmatmul.mubr.msk.bf16.gmra.mxu0 %vm932_vm0, %v6468_v51  ;;  %v6235_v4 = vpop.f32.mrf.mxu1  ;;  %6330 = vmatmul.mubr.msk.bf16.gmra.mxu1 %vm932_vm0, %v6469_v52  ;;  %v6476_v51 = vld [vmem:[%s7456_s0 + $0x1b8] sm:$0xff]  }
  0xd7   :  { %v5525_v5 = vpack.c.bf16 %v3017_v1, %v3016_v56  ;;  %v2887_v6 = vsel %vm2375_vm7, %v1354_v59, %v2631_v62  ;;  %vm2380_vm9 = vcmp.ge.f32.partialorder %v6107_v3, 0.0  ;;  %v2636_v7 = vmul.f32 0.2, %v6107_v3  ;;  %6205 = vmatprep.mubr.msk.bf16.mxu0 %vm932_vm0, %v6470_v53  ;;  %6333 = vmatprep.mubr.msk.bf16.mxu1 %vm932_vm0, %v6471_v55  ;;  %v6477_v52 = vld [vmem:[%s7456_s0 + $0x3b8] sm:$0xff]   ;;  %v6478_v53 = vld [vmem:[%s7456_s0 + $0x1c0] sm:$0xff]  }
  0xd8   :  { %5837 = vst [vmem:[%s7457_s2 + $0x8] sm:$0xff] %v5205_v0   ;;  %v5200_v9 = vpack.c.bf16 %v2887_v6, %v2886_v63  ;;  %v3015_v10 = vsel %vm2503_vm8, %v1866_v60, %v2759_v2  ;;  %v2764_v11 = vmul.f32 0.2, %v6235_v4  ;;  %v1367_v12 = vpop.f32.mrf.mxu0  ;;  %v1879_v13 = vpop.f32.mrf.mxu1  ;;  %vm2508_vm10 = vcmp.ge.f32.partialorder %v6235_v4, 0.0  ;;  %v6479_v55 = vld [vmem:[%s7456_s0 + $0x3c0] sm:$0xff]  }
  0xd9   :  { %5901 = vst [vmem:[%s7457_s2 + $0x208] sm:$0xff] %v5525_v5   ;;  %v5520_v14 = vpack.c.bf16 %v3015_v10, %v3014_v8  ;;  %v2892_v15 = vsel %vm2380_vm9, %v6107_v3, %v2636_v7  ;;  %v2634_v16 = vmul.f32 0.2, %v1367_v12  ;;  %vm2378_vm11 = vcmp.ge.f32.partialorder %v1367_v12, 0.0 }
  0xda   :  { %5201 = vst [vmem:[%s7457_s2] sm:$0xff] %v5200_v9   ;;  %v6108_v17 = vpop.f32.mrf.mxu0  ;;  %v6236_v18 = vpop.f32.mrf.mxu1  ;;  %v3020_v24 = vsel %vm2508_vm10, %v6235_v4, %v2764_v11  ;;  %vm2506_vm14 = vcmp.ge.f32.partialorder %v1879_v13, 0.0  ;;  %v2762_v25 = vmul.f32 0.2, %v1879_v13 }
  0xdb   :  { %5900 = vst [vmem:[%s7457_s2 + $0x200] sm:$0xff] %v5520_v14   ;;  %vm2381_vm12 = vcmp.ge.f32.partialorder %v6108_v17, 0.0  ;;  %v2637_v22 = vmul.f32 0.2, %v6108_v17  ;;  %vm2509_vm13 = vcmp.ge.f32.partialorder %v6236_v18, 0.0  ;;  %v2890_v31 = vsel %vm2378_vm11, %v1367_v12, %v2634_v16 }
  0xdc   :  { %v2765_v26 = vmul.f32 0.2, %v6236_v18  ;;  %v1370_v27 = vpop.f32.mrf.mxu0  ;;  %v1882_v28 = vpop.f32.mrf.mxu1  ;;  %v3018_v40 = vsel %vm2506_vm14, %v1879_v13, %v2762_v25 }
  0xdd   :  { %v2893_v29 = vsel %vm2381_vm12, %v6108_v17, %v2637_v22  ;;  %vm2379_vm15 = vcmp.ge.f32.partialorder %v1370_v27, 0.0  ;;  %v2635_v30 = vmul.f32 0.2, %v1370_v27  ;;  %vm2507_vm1 = vcmp.ge.f32.partialorder %v1882_v28, 0.0 }
  0xde   :  { %v5215_v32 = vpack.c.bf16 %v2893_v29, %v2892_v15  ;;  %v3021_v33 = vsel %vm2509_vm13, %v6236_v18, %v2765_v26  ;;  %v2763_v34 = vmul.f32 0.2, %v1882_v28  ;;  %v6111_v35 = vpop.f32.mrf.mxu0  ;;  %6206 = vmatmul.mubr.msk.bf16.gmra.mxu0 %vm932_vm0, %v6472_v19  ;;  %v6239_v36 = vpop.f32.mrf.mxu1  ;;  %6334 = vmatmul.mubr.msk.bf16.gmra.mxu1 %vm932_vm0, %v6473_v20  ;;  %v6480_v19 = vld [vmem:[%s7456_s0 + $0x1c8] sm:$0xff]  }
  0xdf   :  { %v5535_v37 = vpack.c.bf16 %v3021_v33, %v3020_v24  ;;  %v2891_v38 = vsel %vm2379_vm15, %v1370_v27, %v2635_v30  ;;  %vm2384_vm2 = vcmp.ge.f32.partialorder %v6111_v35, 0.0  ;;  %v2640_v39 = vmul.f32 0.2, %v6111_v35  ;;  %6209 = vmatprep.mubr.msk.bf16.mxu0 %vm932_vm0, %v6474_v21  ;;  %6337 = vmatprep.mubr.msk.bf16.mxu1 %vm932_vm0, %v6475_v23  ;;  %v6481_v20 = vld [vmem:[%s7456_s0 + $0x3c8] sm:$0xff]   ;;  %v6482_v21 = vld [vmem:[%s7456_s0 + $0x1d0] sm:$0xff]  }
  0xe0   :  { %5839 = vst [vmem:[%s7457_s2 + $0x18] sm:$0xff] %v5215_v32   ;;  %v5210_v41 = vpack.c.bf16 %v2891_v38, %v2890_v31  ;;  %v3019_v42 = vsel %vm2507_vm1, %v1882_v28, %v2763_v34  ;;  %v2768_v43 = vmul.f32 0.2, %v6239_v36  ;;  %v1383_v44 = vpop.f32.mrf.mxu0  ;;  %v1895_v45 = vpop.f32.mrf.mxu1  ;;  %vm2512_vm3 = vcmp.ge.f32.partialorder %v6239_v36, 0.0  ;;  %v6483_v23 = vld [vmem:[%s7456_s0 + $0x3d0] sm:$0xff]  }
  0xe1   :  { %5903 = vst [vmem:[%s7457_s2 + $0x218] sm:$0xff] %v5535_v37   ;;  %v5530_v46 = vpack.c.bf16 %v3019_v42, %v3018_v40  ;;  %v2896_v47 = vsel %vm2384_vm2, %v6111_v35, %v2640_v39  ;;  %v2638_v48 = vmul.f32 0.2, %v1383_v44  ;;  %vm2382_vm4 = vcmp.ge.f32.partialorder %v1383_v44, 0.0 }
  0xe2   :  { %5838 = vst [vmem:[%s7457_s2 + $0x10] sm:$0xff] %v5210_v41   ;;  %v6112_v49 = vpop.f32.mrf.mxu0  ;;  %v6240_v50 = vpop.f32.mrf.mxu1  ;;  %v3024_v56 = vsel %vm2512_vm3, %v6239_v36, %v2768_v43  ;;  %vm2510_vm7 = vcmp.ge.f32.partialorder %v1895_v45, 0.0  ;;  %v2766_v57 = vmul.f32 0.2, %v1895_v45 }
  0xe3   :  { %5902 = vst [vmem:[%s7457_s2 + $0x210] sm:$0xff] %v5530_v46   ;;  %vm2385_vm5 = vcmp.ge.f32.partialorder %v6112_v49, 0.0  ;;  %v2641_v54 = vmul.f32 0.2, %v6112_v49  ;;  %vm2513_vm6 = vcmp.ge.f32.partialorder %v6240_v50, 0.0  ;;  %v2894_v63 = vsel %vm2382_vm4, %v1383_v44, %v2638_v48 }
  0xe4   :  { %v2769_v58 = vmul.f32 0.2, %v6240_v50  ;;  %v1386_v59 = vpop.f32.mrf.mxu0  ;;  %v1898_v60 = vpop.f32.mrf.mxu1  ;;  %v3022_v8 = vsel %vm2510_vm7, %v1895_v45, %v2766_v57 }
  0xe5   :  { %v2897_v61 = vsel %vm2385_vm5, %v6112_v49, %v2641_v54  ;;  %vm2383_vm8 = vcmp.ge.f32.partialorder %v1386_v59, 0.0  ;;  %v2639_v62 = vmul.f32 0.2, %v1386_v59  ;;  %vm2511_vm9 = vcmp.ge.f32.partialorder %v1898_v60, 0.0 }
  0xe6   :  { %v5225_v0 = vpack.c.bf16 %v2897_v61, %v2896_v47  ;;  %v3025_v1 = vsel %vm2513_vm6, %v6240_v50, %v2769_v58  ;;  %v2767_v2 = vmul.f32 0.2, %v1898_v60  ;;  %v6115_v3 = vpop.f32.mrf.mxu0  ;;  %6210 = vmatmul.mubr.msk.bf16.gmra.mxu0 %vm932_vm0, %v6476_v51  ;;  %v6243_v4 = vpop.f32.mrf.mxu1  ;;  %6338 = vmatmul.mubr.msk.bf16.gmra.mxu1 %vm932_vm0, %v6477_v52  ;;  %v6484_v51 = vld [vmem:[%s7456_s0 + $0x1d8] sm:$0xff]  }
  0xe7   :  { %v5545_v5 = vpack.c.bf16 %v3025_v1, %v3024_v56  ;;  %v2895_v6 = vsel %vm2383_vm8, %v1386_v59, %v2639_v62  ;;  %vm2388_vm10 = vcmp.ge.f32.partialorder %v6115_v3, 0.0  ;;  %v2644_v7 = vmul.f32 0.2, %v6115_v3  ;;  %6213 = vmatprep.mubr.msk.bf16.mxu0 %vm932_vm0, %v6478_v53  ;;  %6341 = vmatprep.mubr.msk.bf16.mxu1 %vm932_vm0, %v6479_v55  ;;  %v6485_v52 = vld [vmem:[%s7456_s0 + $0x3d8] sm:$0xff]   ;;  %v6486_v53 = vld [vmem:[%s7456_s0 + $0x1e0] sm:$0xff]  }
  0xe8   :  { %5841 = vst [vmem:[%s7457_s2 + $0x28] sm:$0xff] %v5225_v0   ;;  %v5220_v9 = vpack.c.bf16 %v2895_v6, %v2894_v63  ;;  %v3023_v10 = vsel %vm2511_vm9, %v1898_v60, %v2767_v2  ;;  %v2772_v11 = vmul.f32 0.2, %v6243_v4  ;;  %v1399_v12 = vpop.f32.mrf.mxu0  ;;  %v1911_v13 = vpop.f32.mrf.mxu1  ;;  %vm2516_vm11 = vcmp.ge.f32.partialorder %v6243_v4, 0.0  ;;  %v6487_v55 = vld [vmem:[%s7456_s0 + $0x3e0] sm:$0xff]  }
  0xe9   :  { %5905 = vst [vmem:[%s7457_s2 + $0x228] sm:$0xff] %v5545_v5   ;;  %v5540_v14 = vpack.c.bf16 %v3023_v10, %v3022_v8  ;;  %v2900_v15 = vsel %vm2388_vm10, %v6115_v3, %v2644_v7  ;;  %v2642_v16 = vmul.f32 0.2, %v1399_v12  ;;  %vm2386_vm12 = vcmp.ge.f32.partialorder %v1399_v12, 0.0 }
  0xea   :  { %5840 = vst [vmem:[%s7457_s2 + $0x20] sm:$0xff] %v5220_v9   ;;  %v6116_v17 = vpop.f32.mrf.mxu0  ;;  %v6244_v18 = vpop.f32.mrf.mxu1  ;;  %v3028_v24 = vsel %vm2516_vm11, %v6243_v4, %v2772_v11  ;;  %vm2514_vm15 = vcmp.ge.f32.partialorder %v1911_v13, 0.0  ;;  %v2770_v25 = vmul.f32 0.2, %v1911_v13 }
  0xeb   :  { %5904 = vst [vmem:[%s7457_s2 + $0x220] sm:$0xff] %v5540_v14   ;;  %vm2389_vm13 = vcmp.ge.f32.partialorder %v6116_v17, 0.0  ;;  %v2645_v22 = vmul.f32 0.2, %v6116_v17  ;;  %vm2517_vm14 = vcmp.ge.f32.partialorder %v6244_v18, 0.0  ;;  %v2898_v31 = vsel %vm2386_vm12, %v1399_v12, %v2642_v16 }
  0xec   :  { %v2773_v26 = vmul.f32 0.2, %v6244_v18  ;;  %v1402_v27 = vpop.f32.mrf.mxu0  ;;  %v1914_v28 = vpop.f32.mrf.mxu1  ;;  %v3026_v40 = vsel %vm2514_vm15, %v1911_v13, %v2770_v25 }
  0xed   :  { %v2901_v29 = vsel %vm2389_vm13, %v6116_v17, %v2645_v22  ;;  %vm2387_vm1 = vcmp.ge.f32.partialorder %v1402_v27, 0.0  ;;  %v2643_v30 = vmul.f32 0.2, %v1402_v27  ;;  %vm2515_vm2 = vcmp.ge.f32.partialorder %v1914_v28, 0.0 }
  0xee   :  { %v5235_v32 = vpack.c.bf16 %v2901_v29, %v2900_v15  ;;  %v3029_v33 = vsel %vm2517_vm14, %v6244_v18, %v2773_v26  ;;  %v2771_v34 = vmul.f32 0.2, %v1914_v28  ;;  %v6119_v35 = vpop.f32.mrf.mxu0  ;;  %6214 = vmatmul.mubr.msk.bf16.gmra.mxu0 %vm932_vm0, %v6480_v19  ;;  %v6247_v36 = vpop.f32.mrf.mxu1  ;;  %6342 = vmatmul.mubr.msk.bf16.gmra.mxu1 %vm932_vm0, %v6481_v20  ;;  %v6488_v19 = vld [vmem:[%s7456_s0 + $0x1e8] sm:$0xff]  }
  0xef   :  { %v5555_v37 = vpack.c.bf16 %v3029_v33, %v3028_v24  ;;  %v2899_v38 = vsel %vm2387_vm1, %v1402_v27, %v2643_v30  ;;  %vm2392_vm3 = vcmp.ge.f32.partialorder %v6119_v35, 0.0  ;;  %v2648_v39 = vmul.f32 0.2, %v6119_v35  ;;  %6217 = vmatprep.mubr.msk.bf16.mxu0 %vm932_vm0, %v6482_v21  ;;  %6345 = vmatprep.mubr.msk.bf16.mxu1 %vm932_vm0, %v6483_v23  ;;  %v6489_v20 = vld [vmem:[%s7456_s0 + $0x3e8] sm:$0xff]   ;;  %v6490_v21 = vld [vmem:[%s7456_s0 + $0x1f0] sm:$0xff]  }
  0xf0   :  { %5843 = vst [vmem:[%s7457_s2 + $0x38] sm:$0xff] %v5235_v32   ;;  %v5230_v41 = vpack.c.bf16 %v2899_v38, %v2898_v31  ;;  %v3027_v42 = vsel %vm2515_vm2, %v1914_v28, %v2771_v34  ;;  %v2776_v43 = vmul.f32 0.2, %v6247_v36  ;;  %v1415_v44 = vpop.f32.mrf.mxu0  ;;  %v1927_v45 = vpop.f32.mrf.mxu1  ;;  %vm2520_vm4 = vcmp.ge.f32.partialorder %v6247_v36, 0.0  ;;  %v6491_v23 = vld [vmem:[%s7456_s0 + $0x3f0] sm:$0xff]  }
  0xf1   :  { %5907 = vst [vmem:[%s7457_s2 + $0x238] sm:$0xff] %v5555_v37   ;;  %v5550_v46 = vpack.c.bf16 %v3027_v42, %v3026_v40  ;;  %v2904_v47 = vsel %vm2392_vm3, %v6119_v35, %v2648_v39  ;;  %v2646_v48 = vmul.f32 0.2, %v1415_v44  ;;  %vm2390_vm5 = vcmp.ge.f32.partialorder %v1415_v44, 0.0 }
  0xf2   :  { %5842 = vst [vmem:[%s7457_s2 + $0x30] sm:$0xff] %v5230_v41   ;;  %v6120_v49 = vpop.f32.mrf.mxu0  ;;  %v6248_v50 = vpop.f32.mrf.mxu1  ;;  %v3032_v56 = vsel %vm2520_vm4, %v6247_v36, %v2776_v43  ;;  %vm2518_vm8 = vcmp.ge.f32.partialorder %v1927_v45, 0.0  ;;  %v2774_v57 = vmul.f32 0.2, %v1927_v45 }
  0xf3   :  { %5906 = vst [vmem:[%s7457_s2 + $0x230] sm:$0xff] %v5550_v46   ;;  %vm2393_vm6 = vcmp.ge.f32.partialorder %v6120_v49, 0.0  ;;  %v2649_v54 = vmul.f32 0.2, %v6120_v49  ;;  %vm2521_vm7 = vcmp.ge.f32.partialorder %v6248_v50, 0.0  ;;  %v2902_v63 = vsel %vm2390_vm5, %v1415_v44, %v2646_v48 }
  0xf4   :  { %v2777_v58 = vmul.f32 0.2, %v6248_v50  ;;  %v1418_v59 = vpop.f32.mrf.mxu0  ;;  %v1930_v60 = vpop.f32.mrf.mxu1  ;;  %v3030_v8 = vsel %vm2518_vm8, %v1927_v45, %v2774_v57 }
  0xf5   :  { %v2905_v61 = vsel %vm2393_vm6, %v6120_v49, %v2649_v54  ;;  %vm2391_vm9 = vcmp.ge.f32.partialorder %v1418_v59, 0.0  ;;  %v2647_v62 = vmul.f32 0.2, %v1418_v59  ;;  %vm2519_vm10 = vcmp.ge.f32.partialorder %v1930_v60, 0.0 }
  0xf6   :  { %v5245_v0 = vpack.c.bf16 %v2905_v61, %v2904_v47  ;;  %v3033_v1 = vsel %vm2521_vm7, %v6248_v50, %v2777_v58  ;;  %v2775_v2 = vmul.f32 0.2, %v1930_v60  ;;  %v6123_v3 = vpop.f32.mrf.mxu0  ;;  %6218 = vmatmul.mubr.msk.bf16.gmra.mxu0 %vm932_vm0, %v6484_v51  ;;  %v6251_v4 = vpop.f32.mrf.mxu1  ;;  %6346 = vmatmul.mubr.msk.bf16.gmra.mxu1 %vm932_vm0, %v6485_v52  ;;  %v6492_v51 = vld [vmem:[%s7456_s0 + $0x1f8] sm:$0xff]  }
  0xf7   :  { %v5565_v5 = vpack.c.bf16 %v3033_v1, %v3032_v56  ;;  %v2903_v6 = vsel %vm2391_vm9, %v1418_v59, %v2647_v62  ;;  %vm2396_vm11 = vcmp.ge.f32.partialorder %v6123_v3, 0.0  ;;  %v2652_v7 = vmul.f32 0.2, %v6123_v3  ;;  %6221 = vmatprep.mubr.msk.bf16.mxu0 %vm932_vm0, %v6486_v53  ;;  %6349 = vmatprep.mubr.msk.bf16.mxu1 %vm932_vm0, %v6487_v55  ;;  %v6493_v52 = vld [vmem:[%s7456_s0 + $0x3f8] sm:$0xff]  }
  0xf8   :  { %5845 = vst [vmem:[%s7457_s2 + $0x48] sm:$0xff] %v5245_v0   ;;  %v5240_v9 = vpack.c.bf16 %v2903_v6, %v2902_v63  ;;  %v3031_v10 = vsel %vm2519_vm10, %v1930_v60, %v2775_v2  ;;  %v2780_v11 = vmul.f32 0.2, %v6251_v4  ;;  %v1431_v12 = vpop.f32.mrf.mxu0  ;;  %v1943_v13 = vpop.f32.mrf.mxu1  ;;  %vm2524_vm12 = vcmp.ge.f32.partialorder %v6251_v4, 0.0 }
  0xf9   :  { %5909 = vst [vmem:[%s7457_s2 + $0x248] sm:$0xff] %v5565_v5   ;;  %v5560_v14 = vpack.c.bf16 %v3031_v10, %v3030_v8  ;;  %v2908_v15 = vsel %vm2396_vm11, %v6123_v3, %v2652_v7  ;;  %v2650_v16 = vmul.f32 0.2, %v1431_v12  ;;  %vm2394_vm13 = vcmp.ge.f32.partialorder %v1431_v12, 0.0 }
  0xfa   :  { %5844 = vst [vmem:[%s7457_s2 + $0x40] sm:$0xff] %v5240_v9   ;;  %v6124_v17 = vpop.f32.mrf.mxu0  ;;  %v6252_v18 = vpop.f32.mrf.mxu1  ;;  %v3036_v24 = vsel %vm2524_vm12, %v6251_v4, %v2780_v11  ;;  %vm2522_vm1 = vcmp.ge.f32.partialorder %v1943_v13, 0.0  ;;  %v2778_v25 = vmul.f32 0.2, %v1943_v13 }
  0xfb   :  { %5908 = vst [vmem:[%s7457_s2 + $0x240] sm:$0xff] %v5560_v14   ;;  %vm2397_vm14 = vcmp.ge.f32.partialorder %v6124_v17, 0.0  ;;  %v2653_v22 = vmul.f32 0.2, %v6124_v17  ;;  %vm2525_vm15 = vcmp.ge.f32.partialorder %v6252_v18, 0.0  ;;  %v2906_v31 = vsel %vm2394_vm13, %v1431_v12, %v2650_v16 }
  0xfc   :  { %v2781_v26 = vmul.f32 0.2, %v6252_v18  ;;  %v1434_v27 = vpop.f32.mrf.mxu0  ;;  %v1946_v28 = vpop.f32.mrf.mxu1  ;;  %v3034_v40 = vsel %vm2522_vm1, %v1943_v13, %v2778_v25 }
  0xfd   :  { %v2909_v29 = vsel %vm2397_vm14, %v6124_v17, %v2653_v22  ;;  %vm2395_vm2 = vcmp.ge.f32.partialorder %v1434_v27, 0.0  ;;  %v2651_v30 = vmul.f32 0.2, %v1434_v27  ;;  %vm2523_vm3 = vcmp.ge.f32.partialorder %v1946_v28, 0.0 }
  0xfe   :  { %v5255_v32 = vpack.c.bf16 %v2909_v29, %v2908_v15  ;;  %v3037_v33 = vsel %vm2525_vm15, %v6252_v18, %v2781_v26  ;;  %v2779_v34 = vmul.f32 0.2, %v1946_v28  ;;  %v6127_v35 = vpop.f32.mrf.mxu0  ;;  %6222 = vmatmul.mubr.msk.bf16.gmra.mxu0 %vm932_vm0, %v6488_v19  ;;  %v6255_v36 = vpop.f32.mrf.mxu1  ;;  %6350 = vmatmul.mubr.msk.bf16.gmra.mxu1 %vm932_vm0, %v6489_v20 }
  0xff   :  { %v5575_v37 = vpack.c.bf16 %v3037_v33, %v3036_v24  ;;  %v2907_v38 = vsel %vm2395_vm2, %v1434_v27, %v2651_v30  ;;  %vm2400_vm4 = vcmp.ge.f32.partialorder %v6127_v35, 0.0  ;;  %v2656_v39 = vmul.f32 0.2, %v6127_v35  ;;  %6225 = vmatprep.mubr.msk.bf16.mxu0 %vm932_vm0, %v6490_v21  ;;  %6353 = vmatprep.mubr.msk.bf16.mxu1 %vm932_vm0, %v6491_v23 }
 0x100   :  { %5847 = vst [vmem:[%s7457_s2 + $0x58] sm:$0xff] %v5255_v32   ;;  %v5250_v41 = vpack.c.bf16 %v2907_v38, %v2906_v31  ;;  %v3035_v42 = vsel %vm2523_vm3, %v1946_v28, %v2779_v34  ;;  %v2784_v43 = vmul.f32 0.2, %v6255_v36  ;;  %v1447_v44 = vpop.f32.mrf.mxu0  ;;  %v1959_v45 = vpop.f32.mrf.mxu1  ;;  %vm2528_vm5 = vcmp.ge.f32.partialorder %v6255_v36, 0.0 }
 0x101   :  { %5911 = vst [vmem:[%s7457_s2 + $0x258] sm:$0xff] %v5575_v37   ;;  %v5570_v46 = vpack.c.bf16 %v3035_v42, %v3034_v40  ;;  %v2912_v47 = vsel %vm2400_vm4, %v6127_v35, %v2656_v39  ;;  %v2654_v48 = vmul.f32 0.2, %v1447_v44  ;;  %vm2398_vm6 = vcmp.ge.f32.partialorder %v1447_v44, 0.0 }
 0x102   :  { %5846 = vst [vmem:[%s7457_s2 + $0x50] sm:$0xff] %v5250_v41   ;;  %v6128_v49 = vpop.f32.mrf.mxu0  ;;  %v6256_v50 = vpop.f32.mrf.mxu1  ;;  %v3040_v54 = vsel %vm2528_vm5, %v6255_v36, %v2784_v43  ;;  %vm2526_vm9 = vcmp.ge.f32.partialorder %v1959_v45, 0.0  ;;  %v2782_v55 = vmul.f32 0.2, %v1959_v45 }
 0x103   :  { %5910 = vst [vmem:[%s7457_s2 + $0x250] sm:$0xff] %v5570_v46   ;;  %vm2401_vm7 = vcmp.ge.f32.partialorder %v6128_v49, 0.0  ;;  %v2657_v53 = vmul.f32 0.2, %v6128_v49  ;;  %vm2529_vm8 = vcmp.ge.f32.partialorder %v6256_v50, 0.0  ;;  %v2910_v61 = vsel %vm2398_vm6, %v1447_v44, %v2654_v48 }
 0x104   :  { %v2785_v56 = vmul.f32 0.2, %v6256_v50  ;;  %v1450_v57 = vpop.f32.mrf.mxu0  ;;  %v1962_v58 = vpop.f32.mrf.mxu1  ;;  %v3038_v6 = vsel %vm2526_vm9, %v1959_v45, %v2782_v55 }
 0x105   :  { %v2913_v59 = vsel %vm2401_vm7, %v6128_v49, %v2657_v53  ;;  %vm2399_vm10 = vcmp.ge.f32.partialorder %v1450_v57, 0.0  ;;  %v2655_v60 = vmul.f32 0.2, %v1450_v57  ;;  %vm2527_vm11 = vcmp.ge.f32.partialorder %v1962_v58, 0.0 }
 0x106   :  { %v5265_v62 = vpack.c.bf16 %v2913_v59, %v2912_v47  ;;  %v3041_v63 = vsel %vm2529_vm8, %v6256_v50, %v2785_v56  ;;  %v2783_v0 = vmul.f32 0.2, %v1962_v58  ;;  %v6131_v1 = vpop.f32.mrf.mxu0  ;;  %6226 = vmatmul.mubr.msk.bf16.gmra.mxu0 %vm932_vm0, %v6492_v51  ;;  %v6259_v2 = vpop.f32.mrf.mxu1  ;;  %6354 = vmatmul.mubr.msk.bf16.gmra.mxu1 %vm932_vm0, %v6493_v52 }
 0x107   :  { %v5585_v3 = vpack.c.bf16 %v3041_v63, %v3040_v54  ;;  %v2911_v4 = vsel %vm2399_vm10, %v1450_v57, %v2655_v60  ;;  %vm2404_vm12 = vcmp.ge.f32.partialorder %v6131_v1, 0.0  ;;  %v2660_v5 = vmul.f32 0.2, %v6131_v1 }
 0x108   :  { %5849 = vst [vmem:[%s7457_s2 + $0x68] sm:$0xff] %v5265_v62   ;;  %v5260_v7 = vpack.c.bf16 %v2911_v4, %v2910_v61  ;;  %v3039_v8 = vsel %vm2527_vm11, %v1962_v58, %v2783_v0  ;;  %v2788_v9 = vmul.f32 0.2, %v6259_v2  ;;  %v1463_v10 = vpop.f32.mrf.mxu0  ;;  %v1975_v11 = vpop.f32.mrf.mxu1  ;;  %vm2532_vm0 = vcmp.ge.f32.partialorder %v6259_v2, 0.0 }
 0x109   :  { %5913 = vst [vmem:[%s7457_s2 + $0x268] sm:$0xff] %v5585_v3   ;;  %v5580_v12 = vpack.c.bf16 %v3039_v8, %v3038_v6  ;;  %v2916_v13 = vsel %vm2404_vm12, %v6131_v1, %v2660_v5  ;;  %v2658_v14 = vmul.f32 0.2, %v1463_v10  ;;  %vm2402_vm13 = vcmp.ge.f32.partialorder %v1463_v10, 0.0 }
 0x10a   :  { %5848 = vst [vmem:[%s7457_s2 + $0x60] sm:$0xff] %v5260_v7   ;;  %v6132_v15 = vpop.f32.mrf.mxu0  ;;  %v6260_v16 = vpop.f32.mrf.mxu1  ;;  %v3044_v18 = vsel %vm2532_vm0, %v6259_v2, %v2788_v9  ;;  %vm2530_vm1 = vcmp.ge.f32.partialorder %v1975_v11, 0.0  ;;  %v2786_v19 = vmul.f32 0.2, %v1975_v11 }
 0x10b   :  { %5912 = vst [vmem:[%s7457_s2 + $0x260] sm:$0xff] %v5580_v12   ;;  %vm2405_vm14 = vcmp.ge.f32.partialorder %v6132_v15, 0.0  ;;  %v2661_v17 = vmul.f32 0.2, %v6132_v15  ;;  %vm2533_vm15 = vcmp.ge.f32.partialorder %v6260_v16, 0.0  ;;  %v2914_v25 = vsel %vm2402_vm13, %v1463_v10, %v2658_v14 }
 0x10c   :  { %v2789_v20 = vmul.f32 0.2, %v6260_v16  ;;  %v1466_v21 = vpop.f32.mrf.mxu0  ;;  %v1978_v22 = vpop.f32.mrf.mxu1  ;;  %v3042_v34 = vsel %vm2530_vm1, %v1975_v11, %v2786_v19 }
 0x10d   :  { %v2917_v23 = vsel %vm2405_vm14, %v6132_v15, %v2661_v17  ;;  %vm2403_vm2 = vcmp.ge.f32.partialorder %v1466_v21, 0.0  ;;  %v2659_v24 = vmul.f32 0.2, %v1466_v21  ;;  %vm2531_vm3 = vcmp.ge.f32.partialorder %v1978_v22, 0.0 }
 0x10e   :  { %v5275_v26 = vpack.c.bf16 %v2917_v23, %v2916_v13  ;;  %v3045_v27 = vsel %vm2533_vm15, %v6260_v16, %v2789_v20  ;;  %v2787_v28 = vmul.f32 0.2, %v1978_v22  ;;  %v6135_v29 = vpop.f32.mrf.mxu0  ;;  %v6263_v30 = vpop.f32.mrf.mxu1 }
 0x10f   :  { %v5595_v31 = vpack.c.bf16 %v3045_v27, %v3044_v18  ;;  %v2915_v32 = vsel %vm2403_vm2, %v1466_v21, %v2659_v24  ;;  %vm2408_vm4 = vcmp.ge.f32.partialorder %v6135_v29, 0.0  ;;  %v2664_v33 = vmul.f32 0.2, %v6135_v29 }
 0x110   :  { %5851 = vst [vmem:[%s7457_s2 + $0x78] sm:$0xff] %v5275_v26   ;;  %v5270_v35 = vpack.c.bf16 %v2915_v32, %v2914_v25  ;;  %v3043_v36 = vsel %vm2531_vm3, %v1978_v22, %v2787_v28  ;;  %v2792_v37 = vmul.f32 0.2, %v6263_v30  ;;  %v1479_v38 = vpop.f32.mrf.mxu0  ;;  %v1991_v39 = vpop.f32.mrf.mxu1  ;;  %vm2536_vm5 = vcmp.ge.f32.partialorder %v6263_v30, 0.0 }
 0x111   :  { %5915 = vst [vmem:[%s7457_s2 + $0x278] sm:$0xff] %v5595_v31   ;;  %v5590_v40 = vpack.c.bf16 %v3043_v36, %v3042_v34  ;;  %v2920_v41 = vsel %vm2408_vm4, %v6135_v29, %v2664_v33  ;;  %v2662_v42 = vmul.f32 0.2, %v1479_v38  ;;  %vm2406_vm6 = vcmp.ge.f32.partialorder %v1479_v38, 0.0 }
 0x112   :  { %5850 = vst [vmem:[%s7457_s2 + $0x70] sm:$0xff] %v5270_v35   ;;  %v6136_v43 = vpop.f32.mrf.mxu0  ;;  %v6264_v44 = vpop.f32.mrf.mxu1  ;;  %v3048_v46 = vsel %vm2536_vm5, %v6263_v30, %v2792_v37  ;;  %vm2534_vm9 = vcmp.ge.f32.partialorder %v1991_v39, 0.0  ;;  %v2790_v47 = vmul.f32 0.2, %v1991_v39 }
 0x113   :  { %5914 = vst [vmem:[%s7457_s2 + $0x270] sm:$0xff] %v5590_v40   ;;  %vm2409_vm7 = vcmp.ge.f32.partialorder %v6136_v43, 0.0  ;;  %v2665_v45 = vmul.f32 0.2, %v6136_v43  ;;  %vm2537_vm8 = vcmp.ge.f32.partialorder %v6264_v44, 0.0  ;;  %v2918_v53 = vsel %vm2406_vm6, %v1479_v38, %v2662_v42 }
 0x114   :  { %v2793_v48 = vmul.f32 0.2, %v6264_v44  ;;  %v1482_v49 = vpop.f32.mrf.mxu0  ;;  %v1994_v50 = vpop.f32.mrf.mxu1  ;;  %v3046_v62 = vsel %vm2534_vm9, %v1991_v39, %v2790_v47 }
 0x115   :  { %v2921_v51 = vsel %vm2409_vm7, %v6136_v43, %v2665_v45  ;;  %vm2407_vm10 = vcmp.ge.f32.partialorder %v1482_v49, 0.0  ;;  %v2663_v52 = vmul.f32 0.2, %v1482_v49  ;;  %vm2535_vm11 = vcmp.ge.f32.partialorder %v1994_v50, 0.0 }
 0x116   :  { %v5285_v54 = vpack.c.bf16 %v2921_v51, %v2920_v41  ;;  %v3049_v55 = vsel %vm2537_vm8, %v6264_v44, %v2793_v48  ;;  %v2791_v56 = vmul.f32 0.2, %v1994_v50  ;;  %v6139_v57 = vpop.f32.mrf.mxu0  ;;  %v6267_v58 = vpop.f32.mrf.mxu1 }
 0x117   :  { %v5605_v59 = vpack.c.bf16 %v3049_v55, %v3048_v46  ;;  %v2919_v60 = vsel %vm2407_vm10, %v1482_v49, %v2663_v52  ;;  %vm2412_vm12 = vcmp.ge.f32.partialorder %v6139_v57, 0.0  ;;  %v2668_v61 = vmul.f32 0.2, %v6139_v57 }
 0x118   :  { %5853 = vst [vmem:[%s7457_s2 + $0x88] sm:$0xff] %v5285_v54   ;;  %v5280_v63 = vpack.c.bf16 %v2919_v60, %v2918_v53  ;;  %v3047_v0 = vsel %vm2535_vm11, %v1994_v50, %v2791_v56  ;;  %v2796_v1 = vmul.f32 0.2, %v6267_v58  ;;  %v1495_v2 = vpop.f32.mrf.mxu0  ;;  %v2007_v3 = vpop.f32.mrf.mxu1  ;;  %vm2540_vm0 = vcmp.ge.f32.partialorder %v6267_v58, 0.0 }
 0x119   :  { %5917 = vst [vmem:[%s7457_s2 + $0x288] sm:$0xff] %v5605_v59   ;;  %v5600_v4 = vpack.c.bf16 %v3047_v0, %v3046_v62  ;;  %v2924_v5 = vsel %vm2412_vm12, %v6139_v57, %v2668_v61  ;;  %v2666_v6 = vmul.f32 0.2, %v1495_v2  ;;  %vm2410_vm13 = vcmp.ge.f32.partialorder %v1495_v2, 0.0 }
 0x11a   :  { %5852 = vst [vmem:[%s7457_s2 + $0x80] sm:$0xff] %v5280_v63   ;;  %v6140_v7 = vpop.f32.mrf.mxu0  ;;  %v6268_v8 = vpop.f32.mrf.mxu1  ;;  %v3052_v10 = vsel %vm2540_vm0, %v6267_v58, %v2796_v1  ;;  %vm2538_vm1 = vcmp.ge.f32.partialorder %v2007_v3, 0.0  ;;  %v2794_v11 = vmul.f32 0.2, %v2007_v3 }
 0x11b   :  { %5916 = vst [vmem:[%s7457_s2 + $0x280] sm:$0xff] %v5600_v4   ;;  %vm2413_vm14 = vcmp.ge.f32.partialorder %v6140_v7, 0.0  ;;  %v2669_v9 = vmul.f32 0.2, %v6140_v7  ;;  %vm2541_vm15 = vcmp.ge.f32.partialorder %v6268_v8, 0.0  ;;  %v2922_v17 = vsel %vm2410_vm13, %v1495_v2, %v2666_v6 }
 0x11c   :  { %v2797_v12 = vmul.f32 0.2, %v6268_v8  ;;  %v1498_v13 = vpop.f32.mrf.mxu0  ;;  %v2010_v14 = vpop.f32.mrf.mxu1  ;;  %v3050_v26 = vsel %vm2538_vm1, %v2007_v3, %v2794_v11 }
 0x11d   :  { %v2925_v15 = vsel %vm2413_vm14, %v6140_v7, %v2669_v9  ;;  %vm2411_vm2 = vcmp.ge.f32.partialorder %v1498_v13, 0.0  ;;  %v2667_v16 = vmul.f32 0.2, %v1498_v13  ;;  %vm2539_vm3 = vcmp.ge.f32.partialorder %v2010_v14, 0.0 }
 0x11e   :  { %v5295_v18 = vpack.c.bf16 %v2925_v15, %v2924_v5  ;;  %v3053_v19 = vsel %vm2541_vm15, %v6268_v8, %v2797_v12  ;;  %v2795_v20 = vmul.f32 0.2, %v2010_v14  ;;  %v6143_v21 = vpop.f32.mrf.mxu0  ;;  %v6271_v22 = vpop.f32.mrf.mxu1 }
 0x11f   :  { %v5615_v23 = vpack.c.bf16 %v3053_v19, %v3052_v10  ;;  %v2923_v24 = vsel %vm2411_vm2, %v1498_v13, %v2667_v16  ;;  %vm2416_vm4 = vcmp.ge.f32.partialorder %v6143_v21, 0.0  ;;  %v2672_v25 = vmul.f32 0.2, %v6143_v21 }
 0x120   :  { %5855 = vst [vmem:[%s7457_s2 + $0x98] sm:$0xff] %v5295_v18   ;;  %v5290_v27 = vpack.c.bf16 %v2923_v24, %v2922_v17  ;;  %v3051_v28 = vsel %vm2539_vm3, %v2010_v14, %v2795_v20  ;;  %v2800_v29 = vmul.f32 0.2, %v6271_v22  ;;  %v1511_v30 = vpop.f32.mrf.mxu0  ;;  %v2023_v31 = vpop.f32.mrf.mxu1  ;;  %vm2544_vm5 = vcmp.ge.f32.partialorder %v6271_v22, 0.0 }
 0x121   :  { %5919 = vst [vmem:[%s7457_s2 + $0x298] sm:$0xff] %v5615_v23   ;;  %v5610_v32 = vpack.c.bf16 %v3051_v28, %v3050_v26  ;;  %v2928_v33 = vsel %vm2416_vm4, %v6143_v21, %v2672_v25  ;;  %v2670_v34 = vmul.f32 0.2, %v1511_v30  ;;  %vm2414_vm6 = vcmp.ge.f32.partialorder %v1511_v30, 0.0 }
 0x122   :  { %5854 = vst [vmem:[%s7457_s2 + $0x90] sm:$0xff] %v5290_v27   ;;  %v6144_v35 = vpop.f32.mrf.mxu0  ;;  %v6272_v36 = vpop.f32.mrf.mxu1  ;;  %v3056_v38 = vsel %vm2544_vm5, %v6271_v22, %v2800_v29  ;;  %vm2542_vm9 = vcmp.ge.f32.partialorder %v2023_v31, 0.0  ;;  %v2798_v39 = vmul.f32 0.2, %v2023_v31 }
 0x123   :  { %5918 = vst [vmem:[%s7457_s2 + $0x290] sm:$0xff] %v5610_v32   ;;  %vm2417_vm7 = vcmp.ge.f32.partialorder %v6144_v35, 0.0  ;;  %v2673_v37 = vmul.f32 0.2, %v6144_v35  ;;  %vm2545_vm8 = vcmp.ge.f32.partialorder %v6272_v36, 0.0  ;;  %v2926_v45 = vsel %vm2414_vm6, %v1511_v30, %v2670_v34 }
 0x124   :  { %v2801_v40 = vmul.f32 0.2, %v6272_v36  ;;  %v1514_v41 = vpop.f32.mrf.mxu0  ;;  %v2026_v42 = vpop.f32.mrf.mxu1  ;;  %v3054_v54 = vsel %vm2542_vm9, %v2023_v31, %v2798_v39 }
 0x125   :  { %v2929_v43 = vsel %vm2417_vm7, %v6144_v35, %v2673_v37  ;;  %vm2415_vm10 = vcmp.ge.f32.partialorder %v1514_v41, 0.0  ;;  %v2671_v44 = vmul.f32 0.2, %v1514_v41  ;;  %vm2543_vm11 = vcmp.ge.f32.partialorder %v2026_v42, 0.0 }
 0x126   :  { %v5305_v46 = vpack.c.bf16 %v2929_v43, %v2928_v33  ;;  %v3057_v47 = vsel %vm2545_vm8, %v6272_v36, %v2801_v40  ;;  %v2799_v48 = vmul.f32 0.2, %v2026_v42  ;;  %v6147_v49 = vpop.f32.mrf.mxu0  ;;  %v6275_v50 = vpop.f32.mrf.mxu1 }
 0x127   :  { %v5625_v51 = vpack.c.bf16 %v3057_v47, %v3056_v38  ;;  %v2927_v52 = vsel %vm2415_vm10, %v1514_v41, %v2671_v44  ;;  %vm2420_vm12 = vcmp.ge.f32.partialorder %v6147_v49, 0.0  ;;  %v2676_v53 = vmul.f32 0.2, %v6147_v49 }
 0x128   :  { %5857 = vst [vmem:[%s7457_s2 + $0xa8] sm:$0xff] %v5305_v46   ;;  %v5300_v55 = vpack.c.bf16 %v2927_v52, %v2926_v45  ;;  %v3055_v56 = vsel %vm2543_vm11, %v2026_v42, %v2799_v48  ;;  %v2804_v57 = vmul.f32 0.2, %v6275_v50  ;;  %v1527_v58 = vpop.f32.mrf.mxu0  ;;  %v2039_v59 = vpop.f32.mrf.mxu1  ;;  %vm2548_vm0 = vcmp.ge.f32.partialorder %v6275_v50, 0.0 }
 0x129   :  { %5921 = vst [vmem:[%s7457_s2 + $0x2a8] sm:$0xff] %v5625_v51   ;;  %v5620_v60 = vpack.c.bf16 %v3055_v56, %v3054_v54  ;;  %v2932_v61 = vsel %vm2420_vm12, %v6147_v49, %v2676_v53  ;;  %v2674_v62 = vmul.f32 0.2, %v1527_v58  ;;  %vm2418_vm13 = vcmp.ge.f32.partialorder %v1527_v58, 0.0 }
 0x12a   :  { %5856 = vst [vmem:[%s7457_s2 + $0xa0] sm:$0xff] %v5300_v55   ;;  %v6148_v63 = vpop.f32.mrf.mxu0  ;;  %v6276_v0 = vpop.f32.mrf.mxu1  ;;  %v3060_v2 = vsel %vm2548_vm0, %v6275_v50, %v2804_v57  ;;  %vm2546_vm1 = vcmp.ge.f32.partialorder %v2039_v59, 0.0  ;;  %v2802_v3 = vmul.f32 0.2, %v2039_v59 }
 0x12b   :  { %5920 = vst [vmem:[%s7457_s2 + $0x2a0] sm:$0xff] %v5620_v60   ;;  %vm2421_vm14 = vcmp.ge.f32.partialorder %v6148_v63, 0.0  ;;  %v2677_v1 = vmul.f32 0.2, %v6148_v63  ;;  %vm2549_vm15 = vcmp.ge.f32.partialorder %v6276_v0, 0.0  ;;  %v2930_v9 = vsel %vm2418_vm13, %v1527_v58, %v2674_v62 }
 0x12c   :  { %v2805_v4 = vmul.f32 0.2, %v6276_v0  ;;  %v1530_v5 = vpop.f32.mrf.mxu0  ;;  %v2042_v6 = vpop.f32.mrf.mxu1  ;;  %v3058_v18 = vsel %vm2546_vm1, %v2039_v59, %v2802_v3 }
 0x12d   :  { %v2933_v7 = vsel %vm2421_vm14, %v6148_v63, %v2677_v1  ;;  %vm2419_vm2 = vcmp.ge.f32.partialorder %v1530_v5, 0.0  ;;  %v2675_v8 = vmul.f32 0.2, %v1530_v5  ;;  %vm2547_vm3 = vcmp.ge.f32.partialorder %v2042_v6, 0.0 }
 0x12e   :  { %v5315_v10 = vpack.c.bf16 %v2933_v7, %v2932_v61  ;;  %v3061_v11 = vsel %vm2549_vm15, %v6276_v0, %v2805_v4  ;;  %v2803_v12 = vmul.f32 0.2, %v2042_v6  ;;  %v6151_v13 = vpop.f32.mrf.mxu0  ;;  %v6279_v14 = vpop.f32.mrf.mxu1 }
 0x12f   :  { %v5635_v15 = vpack.c.bf16 %v3061_v11, %v3060_v2  ;;  %v2931_v16 = vsel %vm2419_vm2, %v1530_v5, %v2675_v8  ;;  %vm2424_vm4 = vcmp.ge.f32.partialorder %v6151_v13, 0.0  ;;  %v2680_v17 = vmul.f32 0.2, %v6151_v13 }
 0x130   :  { %5859 = vst [vmem:[%s7457_s2 + $0xb8] sm:$0xff] %v5315_v10   ;;  %v5310_v19 = vpack.c.bf16 %v2931_v16, %v2930_v9  ;;  %v3059_v20 = vsel %vm2547_vm3, %v2042_v6, %v2803_v12  ;;  %v2808_v21 = vmul.f32 0.2, %v6279_v14  ;;  %v1543_v22 = vpop.f32.mrf.mxu0  ;;  %v2055_v23 = vpop.f32.mrf.mxu1  ;;  %vm2552_vm5 = vcmp.ge.f32.partialorder %v6279_v14, 0.0 }
 0x131   :  { %5923 = vst [vmem:[%s7457_s2 + $0x2b8] sm:$0xff] %v5635_v15   ;;  %v5630_v24 = vpack.c.bf16 %v3059_v20, %v3058_v18  ;;  %v2936_v25 = vsel %vm2424_vm4, %v6151_v13, %v2680_v17  ;;  %v2678_v26 = vmul.f32 0.2, %v1543_v22  ;;  %vm2422_vm6 = vcmp.ge.f32.partialorder %v1543_v22, 0.0 }
 0x132   :  { %5858 = vst [vmem:[%s7457_s2 + $0xb0] sm:$0xff] %v5310_v19   ;;  %v6152_v27 = vpop.f32.mrf.mxu0  ;;  %v6280_v28 = vpop.f32.mrf.mxu1  ;;  %v3064_v30 = vsel %vm2552_vm5, %v6279_v14, %v2808_v21  ;;  %vm2550_vm9 = vcmp.ge.f32.partialorder %v2055_v23, 0.0  ;;  %v2806_v31 = vmul.f32 0.2, %v2055_v23 }
 0x133   :  { %5922 = vst [vmem:[%s7457_s2 + $0x2b0] sm:$0xff] %v5630_v24   ;;  %vm2425_vm7 = vcmp.ge.f32.partialorder %v6152_v27, 0.0  ;;  %v2681_v29 = vmul.f32 0.2, %v6152_v27  ;;  %vm2553_vm8 = vcmp.ge.f32.partialorder %v6280_v28, 0.0  ;;  %v2934_v37 = vsel %vm2422_vm6, %v1543_v22, %v2678_v26 }
 0x134   :  { %v2809_v32 = vmul.f32 0.2, %v6280_v28  ;;  %v1546_v33 = vpop.f32.mrf.mxu0  ;;  %v2058_v34 = vpop.f32.mrf.mxu1  ;;  %v3062_v46 = vsel %vm2550_vm9, %v2055_v23, %v2806_v31 }
 0x135   :  { %v2937_v35 = vsel %vm2425_vm7, %v6152_v27, %v2681_v29  ;;  %vm2423_vm10 = vcmp.ge.f32.partialorder %v1546_v33, 0.0  ;;  %v2679_v36 = vmul.f32 0.2, %v1546_v33  ;;  %vm2551_vm11 = vcmp.ge.f32.partialorder %v2058_v34, 0.0 }
 0x136   :  { %v5325_v38 = vpack.c.bf16 %v2937_v35, %v2936_v25  ;;  %v3065_v39 = vsel %vm2553_vm8, %v6280_v28, %v2809_v32  ;;  %v2807_v40 = vmul.f32 0.2, %v2058_v34  ;;  %v6155_v41 = vpop.f32.mrf.mxu0  ;;  %v6283_v42 = vpop.f32.mrf.mxu1 }
 0x137   :  { %v5645_v43 = vpack.c.bf16 %v3065_v39, %v3064_v30  ;;  %v2935_v44 = vsel %vm2423_vm10, %v1546_v33, %v2679_v36  ;;  %vm2428_vm12 = vcmp.ge.f32.partialorder %v6155_v41, 0.0  ;;  %v2684_v45 = vmul.f32 0.2, %v6155_v41 }
 0x138   :  { %5861 = vst [vmem:[%s7457_s2 + $0xc8] sm:$0xff] %v5325_v38   ;;  %v5320_v47 = vpack.c.bf16 %v2935_v44, %v2934_v37  ;;  %v3063_v48 = vsel %vm2551_vm11, %v2058_v34, %v2807_v40  ;;  %v2812_v49 = vmul.f32 0.2, %v6283_v42  ;;  %v1559_v50 = vpop.f32.mrf.mxu0  ;;  %v2071_v51 = vpop.f32.mrf.mxu1  ;;  %vm2556_vm0 = vcmp.ge.f32.partialorder %v6283_v42, 0.0 }
 0x139   :  { %5925 = vst [vmem:[%s7457_s2 + $0x2c8] sm:$0xff] %v5645_v43   ;;  %v5640_v52 = vpack.c.bf16 %v3063_v48, %v3062_v46  ;;  %v2940_v53 = vsel %vm2428_vm12, %v6155_v41, %v2684_v45  ;;  %v2682_v54 = vmul.f32 0.2, %v1559_v50  ;;  %vm2426_vm13 = vcmp.ge.f32.partialorder %v1559_v50, 0.0 }
 0x13a   :  { %5860 = vst [vmem:[%s7457_s2 + $0xc0] sm:$0xff] %v5320_v47   ;;  %v6156_v55 = vpop.f32.mrf.mxu0  ;;  %v6284_v56 = vpop.f32.mrf.mxu1  ;;  %v3068_v58 = vsel %vm2556_vm0, %v6283_v42, %v2812_v49  ;;  %vm2554_vm1 = vcmp.ge.f32.partialorder %v2071_v51, 0.0  ;;  %v2810_v59 = vmul.f32 0.2, %v2071_v51 }
 0x13b   :  { %5924 = vst [vmem:[%s7457_s2 + $0x2c0] sm:$0xff] %v5640_v52   ;;  %vm2429_vm14 = vcmp.ge.f32.partialorder %v6156_v55, 0.0  ;;  %v2685_v57 = vmul.f32 0.2, %v6156_v55  ;;  %vm2557_vm15 = vcmp.ge.f32.partialorder %v6284_v56, 0.0  ;;  %v2938_v1 = vsel %vm2426_vm13, %v1559_v50, %v2682_v54 }
 0x13c   :  { %v2813_v60 = vmul.f32 0.2, %v6284_v56  ;;  %v1562_v61 = vpop.f32.mrf.mxu0  ;;  %v2074_v62 = vpop.f32.mrf.mxu1  ;;  %v3066_v10 = vsel %vm2554_vm1, %v2071_v51, %v2810_v59 }
 0x13d   :  { %v2941_v63 = vsel %vm2429_vm14, %v6156_v55, %v2685_v57  ;;  %vm2427_vm2 = vcmp.ge.f32.partialorder %v1562_v61, 0.0  ;;  %v2683_v0 = vmul.f32 0.2, %v1562_v61  ;;  %vm2555_vm3 = vcmp.ge.f32.partialorder %v2074_v62, 0.0 }
 0x13e   :  { %v5335_v2 = vpack.c.bf16 %v2941_v63, %v2940_v53  ;;  %v3069_v3 = vsel %vm2557_vm15, %v6284_v56, %v2813_v60  ;;  %v2811_v4 = vmul.f32 0.2, %v2074_v62  ;;  %v6159_v5 = vpop.f32.mrf.mxu0  ;;  %v6287_v6 = vpop.f32.mrf.mxu1 }
 0x13f   :  { %v5655_v7 = vpack.c.bf16 %v3069_v3, %v3068_v58  ;;  %v2939_v8 = vsel %vm2427_vm2, %v1562_v61, %v2683_v0  ;;  %vm2432_vm4 = vcmp.ge.f32.partialorder %v6159_v5, 0.0  ;;  %v2688_v9 = vmul.f32 0.2, %v6159_v5 }
 0x140   :  { %5863 = vst [vmem:[%s7457_s2 + $0xd8] sm:$0xff] %v5335_v2   ;;  %v5330_v11 = vpack.c.bf16 %v2939_v8, %v2938_v1  ;;  %v3067_v12 = vsel %vm2555_vm3, %v2074_v62, %v2811_v4  ;;  %v2816_v13 = vmul.f32 0.2, %v6287_v6  ;;  %v1575_v14 = vpop.f32.mrf.mxu0  ;;  %v2087_v15 = vpop.f32.mrf.mxu1  ;;  %vm2560_vm5 = vcmp.ge.f32.partialorder %v6287_v6, 0.0 }
 0x141   :  { %5927 = vst [vmem:[%s7457_s2 + $0x2d8] sm:$0xff] %v5655_v7   ;;  %v5650_v16 = vpack.c.bf16 %v3067_v12, %v3066_v10  ;;  %v2944_v17 = vsel %vm2432_vm4, %v6159_v5, %v2688_v9  ;;  %v2686_v18 = vmul.f32 0.2, %v1575_v14  ;;  %vm2430_vm6 = vcmp.ge.f32.partialorder %v1575_v14, 0.0 }
 0x142   :  { %5862 = vst [vmem:[%s7457_s2 + $0xd0] sm:$0xff] %v5330_v11   ;;  %v6160_v19 = vpop.f32.mrf.mxu0  ;;  %v6288_v20 = vpop.f32.mrf.mxu1  ;;  %v3072_v22 = vsel %vm2560_vm5, %v6287_v6, %v2816_v13  ;;  %vm2558_vm9 = vcmp.ge.f32.partialorder %v2087_v15, 0.0  ;;  %v2814_v23 = vmul.f32 0.2, %v2087_v15 }
 0x143   :  { %5926 = vst [vmem:[%s7457_s2 + $0x2d0] sm:$0xff] %v5650_v16   ;;  %vm2433_vm7 = vcmp.ge.f32.partialorder %v6160_v19, 0.0  ;;  %v2689_v21 = vmul.f32 0.2, %v6160_v19  ;;  %vm2561_vm8 = vcmp.ge.f32.partialorder %v6288_v20, 0.0  ;;  %v2942_v29 = vsel %vm2430_vm6, %v1575_v14, %v2686_v18 }
 0x144   :  { %v2817_v24 = vmul.f32 0.2, %v6288_v20  ;;  %v1578_v25 = vpop.f32.mrf.mxu0  ;;  %v2090_v26 = vpop.f32.mrf.mxu1  ;;  %v3070_v38 = vsel %vm2558_vm9, %v2087_v15, %v2814_v23 }
 0x145   :  { %v2945_v27 = vsel %vm2433_vm7, %v6160_v19, %v2689_v21  ;;  %vm2431_vm10 = vcmp.ge.f32.partialorder %v1578_v25, 0.0  ;;  %v2687_v28 = vmul.f32 0.2, %v1578_v25  ;;  %vm2559_vm11 = vcmp.ge.f32.partialorder %v2090_v26, 0.0 }
 0x146   :  { %v5345_v30 = vpack.c.bf16 %v2945_v27, %v2944_v17  ;;  %v3073_v31 = vsel %vm2561_vm8, %v6288_v20, %v2817_v24  ;;  %v2815_v32 = vmul.f32 0.2, %v2090_v26  ;;  %v6163_v33 = vpop.f32.mrf.mxu0  ;;  %v6291_v34 = vpop.f32.mrf.mxu1 }
 0x147   :  { %v5665_v35 = vpack.c.bf16 %v3073_v31, %v3072_v22  ;;  %v2943_v36 = vsel %vm2431_vm10, %v1578_v25, %v2687_v28  ;;  %vm2436_vm12 = vcmp.ge.f32.partialorder %v6163_v33, 0.0  ;;  %v2692_v37 = vmul.f32 0.2, %v6163_v33 }
 0x148   :  { %5865 = vst [vmem:[%s7457_s2 + $0xe8] sm:$0xff] %v5345_v30   ;;  %v5340_v39 = vpack.c.bf16 %v2943_v36, %v2942_v29  ;;  %v3071_v40 = vsel %vm2559_vm11, %v2090_v26, %v2815_v32  ;;  %v2820_v41 = vmul.f32 0.2, %v6291_v34  ;;  %v1591_v42 = vpop.f32.mrf.mxu0  ;;  %v2103_v43 = vpop.f32.mrf.mxu1  ;;  %vm2564_vm0 = vcmp.ge.f32.partialorder %v6291_v34, 0.0 }
 0x149   :  { %5929 = vst [vmem:[%s7457_s2 + $0x2e8] sm:$0xff] %v5665_v35   ;;  %v5660_v44 = vpack.c.bf16 %v3071_v40, %v3070_v38  ;;  %v2948_v45 = vsel %vm2436_vm12, %v6163_v33, %v2692_v37  ;;  %v2690_v46 = vmul.f32 0.2, %v1591_v42  ;;  %vm2434_vm13 = vcmp.ge.f32.partialorder %v1591_v42, 0.0 }
 0x14a   :  { %5864 = vst [vmem:[%s7457_s2 + $0xe0] sm:$0xff] %v5340_v39   ;;  %v6164_v47 = vpop.f32.mrf.mxu0  ;;  %v6292_v48 = vpop.f32.mrf.mxu1  ;;  %v3076_v50 = vsel %vm2564_vm0, %v6291_v34, %v2820_v41  ;;  %vm2562_vm1 = vcmp.ge.f32.partialorder %v2103_v43, 0.0  ;;  %v2818_v51 = vmul.f32 0.2, %v2103_v43 }
 0x14b   :  { %5928 = vst [vmem:[%s7457_s2 + $0x2e0] sm:$0xff] %v5660_v44   ;;  %vm2437_vm14 = vcmp.ge.f32.partialorder %v6164_v47, 0.0  ;;  %v2693_v49 = vmul.f32 0.2, %v6164_v47  ;;  %vm2565_vm15 = vcmp.ge.f32.partialorder %v6292_v48, 0.0  ;;  %v2946_v57 = vsel %vm2434_vm13, %v1591_v42, %v2690_v46 }
 0x14c   :  { %v2821_v52 = vmul.f32 0.2, %v6292_v48  ;;  %v1594_v53 = vpop.f32.mrf.mxu0  ;;  %v2106_v54 = vpop.f32.mrf.mxu1  ;;  %v3074_v2 = vsel %vm2562_vm1, %v2103_v43, %v2818_v51 }
 0x14d   :  { %v2949_v55 = vsel %vm2437_vm14, %v6164_v47, %v2693_v49  ;;  %vm2435_vm2 = vcmp.ge.f32.partialorder %v1594_v53, 0.0  ;;  %v2691_v56 = vmul.f32 0.2, %v1594_v53  ;;  %vm2563_vm3 = vcmp.ge.f32.partialorder %v2106_v54, 0.0 }
 0x14e   :  { %v5355_v58 = vpack.c.bf16 %v2949_v55, %v2948_v45  ;;  %v3077_v59 = vsel %vm2565_vm15, %v6292_v48, %v2821_v52  ;;  %v2819_v60 = vmul.f32 0.2, %v2106_v54  ;;  %v6167_v61 = vpop.f32.mrf.mxu0  ;;  %v6295_v62 = vpop.f32.mrf.mxu1 }
 0x14f   :  { %v5675_v63 = vpack.c.bf16 %v3077_v59, %v3076_v50  ;;  %v2947_v0 = vsel %vm2435_vm2, %v1594_v53, %v2691_v56  ;;  %vm2440_vm4 = vcmp.ge.f32.partialorder %v6167_v61, 0.0  ;;  %v2696_v1 = vmul.f32 0.2, %v6167_v61 }
 0x150   :  { %5867 = vst [vmem:[%s7457_s2 + $0xf8] sm:$0xff] %v5355_v58   ;;  %v5350_v3 = vpack.c.bf16 %v2947_v0, %v2946_v57  ;;  %v3075_v4 = vsel %vm2563_vm3, %v2106_v54, %v2819_v60  ;;  %v2824_v5 = vmul.f32 0.2, %v6295_v62  ;;  %v1607_v6 = vpop.f32.mrf.mxu0  ;;  %v2119_v7 = vpop.f32.mrf.mxu1  ;;  %vm2568_vm5 = vcmp.ge.f32.partialorder %v6295_v62, 0.0 }
 0x151   :  { %5931 = vst [vmem:[%s7457_s2 + $0x2f8] sm:$0xff] %v5675_v63   ;;  %v5670_v8 = vpack.c.bf16 %v3075_v4, %v3074_v2  ;;  %v2952_v9 = vsel %vm2440_vm4, %v6167_v61, %v2696_v1  ;;  %v2694_v10 = vmul.f32 0.2, %v1607_v6  ;;  %vm2438_vm6 = vcmp.ge.f32.partialorder %v1607_v6, 0.0 }
 0x152   :  { %5866 = vst [vmem:[%s7457_s2 + $0xf0] sm:$0xff] %v5350_v3   ;;  %v6168_v11 = vpop.f32.mrf.mxu0  ;;  %v6296_v12 = vpop.f32.mrf.mxu1  ;;  %v3080_v14 = vsel %vm2568_vm5, %v6295_v62, %v2824_v5  ;;  %vm2566_vm9 = vcmp.ge.f32.partialorder %v2119_v7, 0.0  ;;  %v2822_v15 = vmul.f32 0.2, %v2119_v7 }
 0x153   :  { %5930 = vst [vmem:[%s7457_s2 + $0x2f0] sm:$0xff] %v5670_v8   ;;  %vm2441_vm7 = vcmp.ge.f32.partialorder %v6168_v11, 0.0  ;;  %v2697_v13 = vmul.f32 0.2, %v6168_v11  ;;  %vm2569_vm8 = vcmp.ge.f32.partialorder %v6296_v12, 0.0  ;;  %v2950_v21 = vsel %vm2438_vm6, %v1607_v6, %v2694_v10 }
 0x154   :  { %v2825_v16 = vmul.f32 0.2, %v6296_v12  ;;  %v1610_v17 = vpop.f32.mrf.mxu0  ;;  %v2122_v18 = vpop.f32.mrf.mxu1  ;;  %v3078_v30 = vsel %vm2566_vm9, %v2119_v7, %v2822_v15 }
 0x155   :  { %v2953_v19 = vsel %vm2441_vm7, %v6168_v11, %v2697_v13  ;;  %vm2439_vm10 = vcmp.ge.f32.partialorder %v1610_v17, 0.0  ;;  %v2695_v20 = vmul.f32 0.2, %v1610_v17  ;;  %vm2567_vm11 = vcmp.ge.f32.partialorder %v2122_v18, 0.0 }
 0x156   :  { %v5365_v22 = vpack.c.bf16 %v2953_v19, %v2952_v9  ;;  %v3081_v23 = vsel %vm2569_vm8, %v6296_v12, %v2825_v16  ;;  %v2823_v24 = vmul.f32 0.2, %v2122_v18  ;;  %v6171_v25 = vpop.f32.mrf.mxu0  ;;  %v6299_v26 = vpop.f32.mrf.mxu1 }
 0x157   :  { %v5685_v27 = vpack.c.bf16 %v3081_v23, %v3080_v14  ;;  %v2951_v28 = vsel %vm2439_vm10, %v1610_v17, %v2695_v20  ;;  %vm2444_vm12 = vcmp.ge.f32.partialorder %v6171_v25, 0.0  ;;  %v2700_v29 = vmul.f32 0.2, %v6171_v25 }
 0x158   :  { %5869 = vst [vmem:[%s7457_s2 + $0x108] sm:$0xff] %v5365_v22   ;;  %v5360_v31 = vpack.c.bf16 %v2951_v28, %v2950_v21  ;;  %v3079_v32 = vsel %vm2567_vm11, %v2122_v18, %v2823_v24  ;;  %v2828_v33 = vmul.f32 0.2, %v6299_v26  ;;  %v1623_v34 = vpop.f32.mrf.mxu0  ;;  %v2135_v35 = vpop.f32.mrf.mxu1  ;;  %vm2572_vm0 = vcmp.ge.f32.partialorder %v6299_v26, 0.0 }
 0x159   :  { %5933 = vst [vmem:[%s7457_s2 + $0x308] sm:$0xff] %v5685_v27   ;;  %v5680_v36 = vpack.c.bf16 %v3079_v32, %v3078_v30  ;;  %v2956_v37 = vsel %vm2444_vm12, %v6171_v25, %v2700_v29  ;;  %v2698_v38 = vmul.f32 0.2, %v1623_v34  ;;  %vm2442_vm13 = vcmp.ge.f32.partialorder %v1623_v34, 0.0 }
 0x15a   :  { %5868 = vst [vmem:[%s7457_s2 + $0x100] sm:$0xff] %v5360_v31   ;;  %v6172_v39 = vpop.f32.mrf.mxu0  ;;  %v6300_v40 = vpop.f32.mrf.mxu1  ;;  %v3084_v42 = vsel %vm2572_vm0, %v6299_v26, %v2828_v33  ;;  %vm2570_vm1 = vcmp.ge.f32.partialorder %v2135_v35, 0.0  ;;  %v2826_v43 = vmul.f32 0.2, %v2135_v35 }
 0x15b   :  { %5932 = vst [vmem:[%s7457_s2 + $0x300] sm:$0xff] %v5680_v36   ;;  %vm2445_vm14 = vcmp.ge.f32.partialorder %v6172_v39, 0.0  ;;  %v2701_v41 = vmul.f32 0.2, %v6172_v39  ;;  %vm2573_vm15 = vcmp.ge.f32.partialorder %v6300_v40, 0.0  ;;  %v2954_v49 = vsel %vm2442_vm13, %v1623_v34, %v2698_v38 }
 0x15c   :  { %v2829_v44 = vmul.f32 0.2, %v6300_v40  ;;  %v1626_v45 = vpop.f32.mrf.mxu0  ;;  %v2138_v46 = vpop.f32.mrf.mxu1  ;;  %v3082_v58 = vsel %vm2570_vm1, %v2135_v35, %v2826_v43 }
 0x15d   :  { %v2957_v47 = vsel %vm2445_vm14, %v6172_v39, %v2701_v41  ;;  %vm2443_vm2 = vcmp.ge.f32.partialorder %v1626_v45, 0.0  ;;  %v2699_v48 = vmul.f32 0.2, %v1626_v45  ;;  %vm2571_vm3 = vcmp.ge.f32.partialorder %v2138_v46, 0.0 }
 0x15e   :  { %v5375_v50 = vpack.c.bf16 %v2957_v47, %v2956_v37  ;;  %v3085_v51 = vsel %vm2573_vm15, %v6300_v40, %v2829_v44  ;;  %v2827_v52 = vmul.f32 0.2, %v2138_v46  ;;  %v6175_v53 = vpop.f32.mrf.mxu0  ;;  %v6303_v54 = vpop.f32.mrf.mxu1 }
 0x15f   :  { %v5695_v55 = vpack.c.bf16 %v3085_v51, %v3084_v42  ;;  %v2955_v56 = vsel %vm2443_vm2, %v1626_v45, %v2699_v48  ;;  %vm2448_vm4 = vcmp.ge.f32.partialorder %v6175_v53, 0.0  ;;  %v2704_v57 = vmul.f32 0.2, %v6175_v53 }
 0x160   :  { %5871 = vst [vmem:[%s7457_s2 + $0x118] sm:$0xff] %v5375_v50   ;;  %v5370_v59 = vpack.c.bf16 %v2955_v56, %v2954_v49  ;;  %v3083_v60 = vsel %vm2571_vm3, %v2138_v46, %v2827_v52  ;;  %v2832_v61 = vmul.f32 0.2, %v6303_v54  ;;  %v1639_v62 = vpop.f32.mrf.mxu0  ;;  %v2151_v63 = vpop.f32.mrf.mxu1  ;;  %vm2576_vm5 = vcmp.ge.f32.partialorder %v6303_v54, 0.0 }
 0x161   :  { %5935 = vst [vmem:[%s7457_s2 + $0x318] sm:$0xff] %v5695_v55   ;;  %v5690_v0 = vpack.c.bf16 %v3083_v60, %v3082_v58  ;;  %v2960_v1 = vsel %vm2448_vm4, %v6175_v53, %v2704_v57  ;;  %v2702_v2 = vmul.f32 0.2, %v1639_v62  ;;  %vm2446_vm6 = vcmp.ge.f32.partialorder %v1639_v62, 0.0 }
 0x162   :  { %5870 = vst [vmem:[%s7457_s2 + $0x110] sm:$0xff] %v5370_v59   ;;  %v6176_v3 = vpop.f32.mrf.mxu0  ;;  %v6304_v4 = vpop.f32.mrf.mxu1  ;;  %v3088_v6 = vsel %vm2576_vm5, %v6303_v54, %v2832_v61  ;;  %vm2574_vm9 = vcmp.ge.f32.partialorder %v2151_v63, 0.0  ;;  %v2830_v7 = vmul.f32 0.2, %v2151_v63 }
 0x163   :  { %5934 = vst [vmem:[%s7457_s2 + $0x310] sm:$0xff] %v5690_v0   ;;  %vm2449_vm7 = vcmp.ge.f32.partialorder %v6176_v3, 0.0  ;;  %v2705_v5 = vmul.f32 0.2, %v6176_v3  ;;  %vm2577_vm8 = vcmp.ge.f32.partialorder %v6304_v4, 0.0  ;;  %v2958_v13 = vsel %vm2446_vm6, %v1639_v62, %v2702_v2 }
 0x164   :  { %v2833_v8 = vmul.f32 0.2, %v6304_v4  ;;  %v1642_v9 = vpop.f32.mrf.mxu0  ;;  %v2154_v10 = vpop.f32.mrf.mxu1  ;;  %v3086_v22 = vsel %vm2574_vm9, %v2151_v63, %v2830_v7 }
 0x165   :  { %v2961_v11 = vsel %vm2449_vm7, %v6176_v3, %v2705_v5  ;;  %vm2447_vm10 = vcmp.ge.f32.partialorder %v1642_v9, 0.0  ;;  %v2703_v12 = vmul.f32 0.2, %v1642_v9  ;;  %vm2575_vm11 = vcmp.ge.f32.partialorder %v2154_v10, 0.0 }
 0x166   :  { %v5385_v14 = vpack.c.bf16 %v2961_v11, %v2960_v1  ;;  %v3089_v15 = vsel %vm2577_vm8, %v6304_v4, %v2833_v8  ;;  %v2831_v16 = vmul.f32 0.2, %v2154_v10  ;;  %v6179_v17 = vpop.f32.mrf.mxu0  ;;  %v6307_v18 = vpop.f32.mrf.mxu1 }
 0x167   :  { %v5705_v19 = vpack.c.bf16 %v3089_v15, %v3088_v6  ;;  %v2959_v20 = vsel %vm2447_vm10, %v1642_v9, %v2703_v12  ;;  %vm2452_vm12 = vcmp.ge.f32.partialorder %v6179_v17, 0.0  ;;  %v2708_v21 = vmul.f32 0.2, %v6179_v17 }
 0x168   :  { %5873 = vst [vmem:[%s7457_s2 + $0x128] sm:$0xff] %v5385_v14   ;;  %v5380_v23 = vpack.c.bf16 %v2959_v20, %v2958_v13  ;;  %v3087_v24 = vsel %vm2575_vm11, %v2154_v10, %v2831_v16  ;;  %v2836_v25 = vmul.f32 0.2, %v6307_v18  ;;  %v1655_v26 = vpop.f32.mrf.mxu0  ;;  %v2167_v27 = vpop.f32.mrf.mxu1  ;;  %vm2580_vm0 = vcmp.ge.f32.partialorder %v6307_v18, 0.0 }
 0x169   :  { %5937 = vst [vmem:[%s7457_s2 + $0x328] sm:$0xff] %v5705_v19   ;;  %v5700_v28 = vpack.c.bf16 %v3087_v24, %v3086_v22  ;;  %v2964_v29 = vsel %vm2452_vm12, %v6179_v17, %v2708_v21  ;;  %v2706_v30 = vmul.f32 0.2, %v1655_v26  ;;  %vm2450_vm13 = vcmp.ge.f32.partialorder %v1655_v26, 0.0 }
 0x16a   :  { %5872 = vst [vmem:[%s7457_s2 + $0x120] sm:$0xff] %v5380_v23   ;;  %v6180_v31 = vpop.f32.mrf.mxu0  ;;  %v6308_v32 = vpop.f32.mrf.mxu1  ;;  %v3092_v34 = vsel %vm2580_vm0, %v6307_v18, %v2836_v25  ;;  %vm2578_vm1 = vcmp.ge.f32.partialorder %v2167_v27, 0.0  ;;  %v2834_v35 = vmul.f32 0.2, %v2167_v27 }
 0x16b   :  { %5936 = vst [vmem:[%s7457_s2 + $0x320] sm:$0xff] %v5700_v28   ;;  %vm2453_vm14 = vcmp.ge.f32.partialorder %v6180_v31, 0.0  ;;  %v2709_v33 = vmul.f32 0.2, %v6180_v31  ;;  %vm2581_vm15 = vcmp.ge.f32.partialorder %v6308_v32, 0.0  ;;  %v2962_v41 = vsel %vm2450_vm13, %v1655_v26, %v2706_v30 }
 0x16c   :  { %v2837_v36 = vmul.f32 0.2, %v6308_v32  ;;  %v1658_v37 = vpop.f32.mrf.mxu0  ;;  %v2170_v38 = vpop.f32.mrf.mxu1  ;;  %v3090_v50 = vsel %vm2578_vm1, %v2167_v27, %v2834_v35 }
 0x16d   :  { %v2965_v39 = vsel %vm2453_vm14, %v6180_v31, %v2709_v33  ;;  %vm2451_vm2 = vcmp.ge.f32.partialorder %v1658_v37, 0.0  ;;  %v2707_v40 = vmul.f32 0.2, %v1658_v37  ;;  %vm2579_vm3 = vcmp.ge.f32.partialorder %v2170_v38, 0.0 }
 0x16e   :  { %v5395_v42 = vpack.c.bf16 %v2965_v39, %v2964_v29  ;;  %v3093_v43 = vsel %vm2581_vm15, %v6308_v32, %v2837_v36  ;;  %v2835_v44 = vmul.f32 0.2, %v2170_v38  ;;  %v6183_v45 = vpop.f32.mrf.mxu0  ;;  %v6311_v46 = vpop.f32.mrf.mxu1 }
 0x16f   :  { %v5715_v47 = vpack.c.bf16 %v3093_v43, %v3092_v34  ;;  %v2963_v48 = vsel %vm2451_vm2, %v1658_v37, %v2707_v40  ;;  %vm2456_vm4 = vcmp.ge.f32.partialorder %v6183_v45, 0.0  ;;  %v2712_v49 = vmul.f32 0.2, %v6183_v45 }
 0x170   :  { %5875 = vst [vmem:[%s7457_s2 + $0x138] sm:$0xff] %v5395_v42   ;;  %v5390_v51 = vpack.c.bf16 %v2963_v48, %v2962_v41  ;;  %v3091_v52 = vsel %vm2579_vm3, %v2170_v38, %v2835_v44  ;;  %v2840_v53 = vmul.f32 0.2, %v6311_v46  ;;  %v1671_v54 = vpop.f32.mrf.mxu0  ;;  %v2183_v55 = vpop.f32.mrf.mxu1  ;;  %vm2584_vm5 = vcmp.ge.f32.partialorder %v6311_v46, 0.0 }
 0x171   :  { %5939 = vst [vmem:[%s7457_s2 + $0x338] sm:$0xff] %v5715_v47   ;;  %v5710_v56 = vpack.c.bf16 %v3091_v52, %v3090_v50  ;;  %v2968_v57 = vsel %vm2456_vm4, %v6183_v45, %v2712_v49  ;;  %v2710_v58 = vmul.f32 0.2, %v1671_v54  ;;  %vm2454_vm6 = vcmp.ge.f32.partialorder %v1671_v54, 0.0 }
 0x172   :  { %5874 = vst [vmem:[%s7457_s2 + $0x130] sm:$0xff] %v5390_v51   ;;  %v6184_v59 = vpop.f32.mrf.mxu0  ;;  %v6312_v60 = vpop.f32.mrf.mxu1  ;;  %v3096_v62 = vsel %vm2584_vm5, %v6311_v46, %v2840_v53  ;;  %vm2582_vm9 = vcmp.ge.f32.partialorder %v2183_v55, 0.0  ;;  %v2838_v63 = vmul.f32 0.2, %v2183_v55 }
 0x173   :  { %5938 = vst [vmem:[%s7457_s2 + $0x330] sm:$0xff] %v5710_v56   ;;  %vm2457_vm7 = vcmp.ge.f32.partialorder %v6184_v59, 0.0  ;;  %v2713_v61 = vmul.f32 0.2, %v6184_v59  ;;  %vm2585_vm8 = vcmp.ge.f32.partialorder %v6312_v60, 0.0  ;;  %v2966_v5 = vsel %vm2454_vm6, %v1671_v54, %v2710_v58 }
 0x174   :  { %v2841_v0 = vmul.f32 0.2, %v6312_v60  ;;  %v1674_v1 = vpop.f32.mrf.mxu0  ;;  %v2186_v2 = vpop.f32.mrf.mxu1  ;;  %v3094_v14 = vsel %vm2582_vm9, %v2183_v55, %v2838_v63 }
 0x175   :  { %v2969_v3 = vsel %vm2457_vm7, %v6184_v59, %v2713_v61  ;;  %vm2455_vm10 = vcmp.ge.f32.partialorder %v1674_v1, 0.0  ;;  %v2711_v4 = vmul.f32 0.2, %v1674_v1  ;;  %vm2583_vm11 = vcmp.ge.f32.partialorder %v2186_v2, 0.0 }
 0x176   :  { %v5405_v6 = vpack.c.bf16 %v2969_v3, %v2968_v57  ;;  %v3097_v7 = vsel %vm2585_vm8, %v6312_v60, %v2841_v0  ;;  %v2839_v8 = vmul.f32 0.2, %v2186_v2  ;;  %v6187_v9 = vpop.f32.mrf.mxu0  ;;  %v6315_v10 = vpop.f32.mrf.mxu1 }
 0x177   :  { %v5725_v11 = vpack.c.bf16 %v3097_v7, %v3096_v62  ;;  %v2967_v12 = vsel %vm2455_vm10, %v1674_v1, %v2711_v4  ;;  %vm2460_vm12 = vcmp.ge.f32.partialorder %v6187_v9, 0.0  ;;  %v2716_v13 = vmul.f32 0.2, %v6187_v9 }
 0x178   :  { %5877 = vst [vmem:[%s7457_s2 + $0x148] sm:$0xff] %v5405_v6   ;;  %v5400_v15 = vpack.c.bf16 %v2967_v12, %v2966_v5  ;;  %v3095_v16 = vsel %vm2583_vm11, %v2186_v2, %v2839_v8  ;;  %v2844_v17 = vmul.f32 0.2, %v6315_v10  ;;  %v1687_v18 = vpop.f32.mrf.mxu0  ;;  %v2199_v19 = vpop.f32.mrf.mxu1  ;;  %vm2588_vm0 = vcmp.ge.f32.partialorder %v6315_v10, 0.0 }
 0x179   :  { %5941 = vst [vmem:[%s7457_s2 + $0x348] sm:$0xff] %v5725_v11   ;;  %v5720_v20 = vpack.c.bf16 %v3095_v16, %v3094_v14  ;;  %v2972_v21 = vsel %vm2460_vm12, %v6187_v9, %v2716_v13  ;;  %v2714_v22 = vmul.f32 0.2, %v1687_v18  ;;  %vm2458_vm13 = vcmp.ge.f32.partialorder %v1687_v18, 0.0 }
 0x17a   :  { %5876 = vst [vmem:[%s7457_s2 + $0x140] sm:$0xff] %v5400_v15   ;;  %v6188_v23 = vpop.f32.mrf.mxu0  ;;  %v6316_v24 = vpop.f32.mrf.mxu1  ;;  %v3100_v26 = vsel %vm2588_vm0, %v6315_v10, %v2844_v17  ;;  %vm2586_vm1 = vcmp.ge.f32.partialorder %v2199_v19, 0.0  ;;  %v2842_v27 = vmul.f32 0.2, %v2199_v19 }
 0x17b   :  { %5940 = vst [vmem:[%s7457_s2 + $0x340] sm:$0xff] %v5720_v20   ;;  %vm2461_vm14 = vcmp.ge.f32.partialorder %v6188_v23, 0.0  ;;  %v2717_v25 = vmul.f32 0.2, %v6188_v23  ;;  %vm2589_vm15 = vcmp.ge.f32.partialorder %v6316_v24, 0.0  ;;  %v2970_v33 = vsel %vm2458_vm13, %v1687_v18, %v2714_v22 }
 0x17c   :  { %v2845_v28 = vmul.f32 0.2, %v6316_v24  ;;  %v1690_v29 = vpop.f32.mrf.mxu0  ;;  %v2202_v30 = vpop.f32.mrf.mxu1  ;;  %v3098_v42 = vsel %vm2586_vm1, %v2199_v19, %v2842_v27 }
 0x17d   :  { %v2973_v31 = vsel %vm2461_vm14, %v6188_v23, %v2717_v25  ;;  %vm2459_vm2 = vcmp.ge.f32.partialorder %v1690_v29, 0.0  ;;  %v2715_v32 = vmul.f32 0.2, %v1690_v29  ;;  %vm2587_vm3 = vcmp.ge.f32.partialorder %v2202_v30, 0.0 }
 0x17e   :  { %v5415_v34 = vpack.c.bf16 %v2973_v31, %v2972_v21  ;;  %v3101_v35 = vsel %vm2589_vm15, %v6316_v24, %v2845_v28  ;;  %v2843_v36 = vmul.f32 0.2, %v2202_v30  ;;  %v6191_v37 = vpop.f32.mrf.mxu0  ;;  %v6319_v38 = vpop.f32.mrf.mxu1 }
 0x17f   :  { %v5735_v39 = vpack.c.bf16 %v3101_v35, %v3100_v26  ;;  %v2971_v40 = vsel %vm2459_vm2, %v1690_v29, %v2715_v32  ;;  %vm2464_vm4 = vcmp.ge.f32.partialorder %v6191_v37, 0.0  ;;  %v2720_v41 = vmul.f32 0.2, %v6191_v37 }
 0x180   :  { %5879 = vst [vmem:[%s7457_s2 + $0x158] sm:$0xff] %v5415_v34   ;;  %v5410_v43 = vpack.c.bf16 %v2971_v40, %v2970_v33  ;;  %v3099_v44 = vsel %vm2587_vm3, %v2202_v30, %v2843_v36  ;;  %v2848_v45 = vmul.f32 0.2, %v6319_v38  ;;  %v1703_v46 = vpop.f32.mrf.mxu0  ;;  %v2215_v47 = vpop.f32.mrf.mxu1  ;;  %vm2592_vm5 = vcmp.ge.f32.partialorder %v6319_v38, 0.0 }
 0x181   :  { %5943 = vst [vmem:[%s7457_s2 + $0x358] sm:$0xff] %v5735_v39   ;;  %v5730_v48 = vpack.c.bf16 %v3099_v44, %v3098_v42  ;;  %v2976_v49 = vsel %vm2464_vm4, %v6191_v37, %v2720_v41  ;;  %v2718_v50 = vmul.f32 0.2, %v1703_v46  ;;  %vm2462_vm6 = vcmp.ge.f32.partialorder %v1703_v46, 0.0 }
 0x182   :  { %5878 = vst [vmem:[%s7457_s2 + $0x150] sm:$0xff] %v5410_v43   ;;  %v6192_v51 = vpop.f32.mrf.mxu0  ;;  %v6320_v52 = vpop.f32.mrf.mxu1  ;;  %v3104_v54 = vsel %vm2592_vm5, %v6319_v38, %v2848_v45  ;;  %vm2590_vm9 = vcmp.ge.f32.partialorder %v2215_v47, 0.0  ;;  %v2846_v55 = vmul.f32 0.2, %v2215_v47 }
 0x183   :  { %5942 = vst [vmem:[%s7457_s2 + $0x350] sm:$0xff] %v5730_v48   ;;  %vm2465_vm7 = vcmp.ge.f32.partialorder %v6192_v51, 0.0  ;;  %v2721_v53 = vmul.f32 0.2, %v6192_v51  ;;  %vm2593_vm8 = vcmp.ge.f32.partialorder %v6320_v52, 0.0  ;;  %v2974_v61 = vsel %vm2462_vm6, %v1703_v46, %v2718_v50 }
 0x184   :  { %v2849_v56 = vmul.f32 0.2, %v6320_v52  ;;  %v1706_v57 = vpop.f32.mrf.mxu0  ;;  %v2218_v58 = vpop.f32.mrf.mxu1  ;;  %v3102_v6 = vsel %vm2590_vm9, %v2215_v47, %v2846_v55 }
 0x185   :  { %v2977_v59 = vsel %vm2465_vm7, %v6192_v51, %v2721_v53  ;;  %vm2463_vm10 = vcmp.ge.f32.partialorder %v1706_v57, 0.0  ;;  %v2719_v60 = vmul.f32 0.2, %v1706_v57  ;;  %vm2591_vm11 = vcmp.ge.f32.partialorder %v2218_v58, 0.0 }
 0x186   :  { %v5425_v62 = vpack.c.bf16 %v2977_v59, %v2976_v49  ;;  %v3105_v63 = vsel %vm2593_vm8, %v6320_v52, %v2849_v56  ;;  %v2847_v0 = vmul.f32 0.2, %v2218_v58  ;;  %v6195_v1 = vpop.f32.mrf.mxu0  ;;  %v6323_v2 = vpop.f32.mrf.mxu1 }
 0x187   :  { %v5745_v3 = vpack.c.bf16 %v3105_v63, %v3104_v54  ;;  %v2975_v4 = vsel %vm2463_vm10, %v1706_v57, %v2719_v60  ;;  %vm2468_vm12 = vcmp.ge.f32.partialorder %v6195_v1, 0.0  ;;  %v2724_v5 = vmul.f32 0.2, %v6195_v1 }
 0x188   :  { %5881 = vst [vmem:[%s7457_s2 + $0x168] sm:$0xff] %v5425_v62   ;;  %v5420_v7 = vpack.c.bf16 %v2975_v4, %v2974_v61  ;;  %v3103_v8 = vsel %vm2591_vm11, %v2218_v58, %v2847_v0  ;;  %v2852_v9 = vmul.f32 0.2, %v6323_v2  ;;  %v1719_v10 = vpop.f32.mrf.mxu0  ;;  %v2231_v11 = vpop.f32.mrf.mxu1  ;;  %vm2596_vm0 = vcmp.ge.f32.partialorder %v6323_v2, 0.0 }
 0x189   :  { %5945 = vst [vmem:[%s7457_s2 + $0x368] sm:$0xff] %v5745_v3   ;;  %v5740_v12 = vpack.c.bf16 %v3103_v8, %v3102_v6  ;;  %v2980_v13 = vsel %vm2468_vm12, %v6195_v1, %v2724_v5  ;;  %v2722_v14 = vmul.f32 0.2, %v1719_v10  ;;  %vm2466_vm13 = vcmp.ge.f32.partialorder %v1719_v10, 0.0 }
 0x18a   :  { %5880 = vst [vmem:[%s7457_s2 + $0x160] sm:$0xff] %v5420_v7   ;;  %v6196_v15 = vpop.f32.mrf.mxu0  ;;  %v6324_v16 = vpop.f32.mrf.mxu1  ;;  %v3108_v18 = vsel %vm2596_vm0, %v6323_v2, %v2852_v9  ;;  %vm2594_vm1 = vcmp.ge.f32.partialorder %v2231_v11, 0.0  ;;  %v2850_v19 = vmul.f32 0.2, %v2231_v11 }
 0x18b   :  { %5944 = vst [vmem:[%s7457_s2 + $0x360] sm:$0xff] %v5740_v12   ;;  %vm2469_vm14 = vcmp.ge.f32.partialorder %v6196_v15, 0.0  ;;  %v2725_v17 = vmul.f32 0.2, %v6196_v15  ;;  %vm2597_vm15 = vcmp.ge.f32.partialorder %v6324_v16, 0.0  ;;  %v2978_v25 = vsel %vm2466_vm13, %v1719_v10, %v2722_v14 }
 0x18c   :  { %v2853_v20 = vmul.f32 0.2, %v6324_v16  ;;  %v1722_v21 = vpop.f32.mrf.mxu0  ;;  %v2234_v22 = vpop.f32.mrf.mxu1  ;;  %v3106_v34 = vsel %vm2594_vm1, %v2231_v11, %v2850_v19 }
 0x18d   :  { %v2981_v23 = vsel %vm2469_vm14, %v6196_v15, %v2725_v17  ;;  %vm2467_vm2 = vcmp.ge.f32.partialorder %v1722_v21, 0.0  ;;  %v2723_v24 = vmul.f32 0.2, %v1722_v21  ;;  %vm2595_vm3 = vcmp.ge.f32.partialorder %v2234_v22, 0.0 }
 0x18e   :  { %v5435_v26 = vpack.c.bf16 %v2981_v23, %v2980_v13  ;;  %v3109_v27 = vsel %vm2597_vm15, %v6324_v16, %v2853_v20  ;;  %v2851_v28 = vmul.f32 0.2, %v2234_v22  ;;  %v6199_v29 = vpop.f32.mrf.mxu0  ;;  %v6327_v30 = vpop.f32.mrf.mxu1 }
 0x18f   :  { %v5755_v31 = vpack.c.bf16 %v3109_v27, %v3108_v18  ;;  %v2979_v32 = vsel %vm2467_vm2, %v1722_v21, %v2723_v24  ;;  %vm2472_vm4 = vcmp.ge.f32.partialorder %v6199_v29, 0.0  ;;  %v2728_v33 = vmul.f32 0.2, %v6199_v29 }
 0x190   :  { %5883 = vst [vmem:[%s7457_s2 + $0x178] sm:$0xff] %v5435_v26   ;;  %v5430_v35 = vpack.c.bf16 %v2979_v32, %v2978_v25  ;;  %v3107_v36 = vsel %vm2595_vm3, %v2234_v22, %v2851_v28  ;;  %v2856_v37 = vmul.f32 0.2, %v6327_v30  ;;  %v1735_v38 = vpop.f32.mrf.mxu0  ;;  %v2247_v39 = vpop.f32.mrf.mxu1  ;;  %vm2600_vm5 = vcmp.ge.f32.partialorder %v6327_v30, 0.0 }
 0x191   :  { %5947 = vst [vmem:[%s7457_s2 + $0x378] sm:$0xff] %v5755_v31   ;;  %v5750_v40 = vpack.c.bf16 %v3107_v36, %v3106_v34  ;;  %v2984_v41 = vsel %vm2472_vm4, %v6199_v29, %v2728_v33  ;;  %v2726_v42 = vmul.f32 0.2, %v1735_v38  ;;  %vm2470_vm6 = vcmp.ge.f32.partialorder %v1735_v38, 0.0 }
 0x192   :  { %5882 = vst [vmem:[%s7457_s2 + $0x170] sm:$0xff] %v5430_v35   ;;  %v6200_v43 = vpop.f32.mrf.mxu0  ;;  %v6328_v44 = vpop.f32.mrf.mxu1  ;;  %v3112_v46 = vsel %vm2600_vm5, %v6327_v30, %v2856_v37  ;;  %vm2598_vm9 = vcmp.ge.f32.partialorder %v2247_v39, 0.0  ;;  %v2854_v47 = vmul.f32 0.2, %v2247_v39 }
 0x193   :  { %5946 = vst [vmem:[%s7457_s2 + $0x370] sm:$0xff] %v5750_v40   ;;  %vm2473_vm7 = vcmp.ge.f32.partialorder %v6200_v43, 0.0  ;;  %v2729_v45 = vmul.f32 0.2, %v6200_v43  ;;  %vm2601_vm8 = vcmp.ge.f32.partialorder %v6328_v44, 0.0  ;;  %v2982_v53 = vsel %vm2470_vm6, %v1735_v38, %v2726_v42 }
 0x194   :  { %v2857_v48 = vmul.f32 0.2, %v6328_v44  ;;  %v1738_v49 = vpop.f32.mrf.mxu0  ;;  %v2250_v50 = vpop.f32.mrf.mxu1  ;;  %v3110_v62 = vsel %vm2598_vm9, %v2247_v39, %v2854_v47 }
 0x195   :  { %v2985_v51 = vsel %vm2473_vm7, %v6200_v43, %v2729_v45  ;;  %vm2471_vm10 = vcmp.ge.f32.partialorder %v1738_v49, 0.0  ;;  %v2727_v52 = vmul.f32 0.2, %v1738_v49  ;;  %vm2599_vm11 = vcmp.ge.f32.partialorder %v2250_v50, 0.0 }
 0x196   :  { %v5445_v54 = vpack.c.bf16 %v2985_v51, %v2984_v41  ;;  %v3113_v55 = vsel %vm2601_vm8, %v6328_v44, %v2857_v48  ;;  %v2855_v56 = vmul.f32 0.2, %v2250_v50  ;;  %v6203_v57 = vpop.f32.mrf.mxu0  ;;  %v6331_v58 = vpop.f32.mrf.mxu1 }
 0x197   :  { %v5765_v59 = vpack.c.bf16 %v3113_v55, %v3112_v46  ;;  %v2983_v60 = vsel %vm2471_vm10, %v1738_v49, %v2727_v52  ;;  %vm2476_vm12 = vcmp.ge.f32.partialorder %v6203_v57, 0.0  ;;  %v2732_v61 = vmul.f32 0.2, %v6203_v57 }
 0x198   :  { %5885 = vst [vmem:[%s7457_s2 + $0x188] sm:$0xff] %v5445_v54   ;;  %v5440_v63 = vpack.c.bf16 %v2983_v60, %v2982_v53  ;;  %v3111_v0 = vsel %vm2599_vm11, %v2250_v50, %v2855_v56  ;;  %v2860_v1 = vmul.f32 0.2, %v6331_v58  ;;  %v1751_v2 = vpop.f32.mrf.mxu0  ;;  %v2263_v3 = vpop.f32.mrf.mxu1  ;;  %vm2604_vm0 = vcmp.ge.f32.partialorder %v6331_v58, 0.0 }
 0x199   :  { %5949 = vst [vmem:[%s7457_s2 + $0x388] sm:$0xff] %v5765_v59   ;;  %v5760_v4 = vpack.c.bf16 %v3111_v0, %v3110_v62  ;;  %v2988_v5 = vsel %vm2476_vm12, %v6203_v57, %v2732_v61  ;;  %v2730_v6 = vmul.f32 0.2, %v1751_v2  ;;  %vm2474_vm13 = vcmp.ge.f32.partialorder %v1751_v2, 0.0 }
 0x19a   :  { %5884 = vst [vmem:[%s7457_s2 + $0x180] sm:$0xff] %v5440_v63   ;;  %v6204_v7 = vpop.f32.mrf.mxu0  ;;  %v6332_v8 = vpop.f32.mrf.mxu1  ;;  %v3116_v10 = vsel %vm2604_vm0, %v6331_v58, %v2860_v1  ;;  %vm2602_vm1 = vcmp.ge.f32.partialorder %v2263_v3, 0.0  ;;  %v2858_v11 = vmul.f32 0.2, %v2263_v3 }
 0x19b   :  { %5948 = vst [vmem:[%s7457_s2 + $0x380] sm:$0xff] %v5760_v4   ;;  %vm2477_vm14 = vcmp.ge.f32.partialorder %v6204_v7, 0.0  ;;  %v2733_v9 = vmul.f32 0.2, %v6204_v7  ;;  %vm2605_vm15 = vcmp.ge.f32.partialorder %v6332_v8, 0.0  ;;  %v2986_v17 = vsel %vm2474_vm13, %v1751_v2, %v2730_v6 }
 0x19c   :  { %v2861_v12 = vmul.f32 0.2, %v6332_v8  ;;  %v1754_v13 = vpop.f32.mrf.mxu0  ;;  %v2266_v14 = vpop.f32.mrf.mxu1  ;;  %v3114_v26 = vsel %vm2602_vm1, %v2263_v3, %v2858_v11 }
 0x19d   :  { %v2989_v15 = vsel %vm2477_vm14, %v6204_v7, %v2733_v9  ;;  %vm2475_vm2 = vcmp.ge.f32.partialorder %v1754_v13, 0.0  ;;  %v2731_v16 = vmul.f32 0.2, %v1754_v13  ;;  %vm2603_vm3 = vcmp.ge.f32.partialorder %v2266_v14, 0.0 }
 0x19e   :  { %v5455_v18 = vpack.c.bf16 %v2989_v15, %v2988_v5  ;;  %v3117_v19 = vsel %vm2605_vm15, %v6332_v8, %v2861_v12  ;;  %v2859_v20 = vmul.f32 0.2, %v2266_v14  ;;  %v6207_v21 = vpop.f32.mrf.mxu0  ;;  %v6335_v22 = vpop.f32.mrf.mxu1 }
 0x19f   :  { %v5775_v23 = vpack.c.bf16 %v3117_v19, %v3116_v10  ;;  %v2987_v24 = vsel %vm2475_vm2, %v1754_v13, %v2731_v16  ;;  %vm2480_vm4 = vcmp.ge.f32.partialorder %v6207_v21, 0.0  ;;  %v2736_v25 = vmul.f32 0.2, %v6207_v21 }
 0x1a0   :  { %5887 = vst [vmem:[%s7457_s2 + $0x198] sm:$0xff] %v5455_v18   ;;  %v5450_v27 = vpack.c.bf16 %v2987_v24, %v2986_v17  ;;  %v3115_v28 = vsel %vm2603_vm3, %v2266_v14, %v2859_v20  ;;  %v2864_v29 = vmul.f32 0.2, %v6335_v22  ;;  %v1767_v30 = vpop.f32.mrf.mxu0  ;;  %v2279_v31 = vpop.f32.mrf.mxu1  ;;  %vm2608_vm5 = vcmp.ge.f32.partialorder %v6335_v22, 0.0 }
 0x1a1   :  { %5951 = vst [vmem:[%s7457_s2 + $0x398] sm:$0xff] %v5775_v23   ;;  %v5770_v32 = vpack.c.bf16 %v3115_v28, %v3114_v26  ;;  %v2992_v33 = vsel %vm2480_vm4, %v6207_v21, %v2736_v25  ;;  %v2734_v34 = vmul.f32 0.2, %v1767_v30  ;;  %vm2478_vm6 = vcmp.ge.f32.partialorder %v1767_v30, 0.0 }
 0x1a2   :  { %5886 = vst [vmem:[%s7457_s2 + $0x190] sm:$0xff] %v5450_v27   ;;  %v6208_v35 = vpop.f32.mrf.mxu0  ;;  %v6336_v36 = vpop.f32.mrf.mxu1  ;;  %v3120_v38 = vsel %vm2608_vm5, %v6335_v22, %v2864_v29  ;;  %vm2606_vm9 = vcmp.ge.f32.partialorder %v2279_v31, 0.0  ;;  %v2862_v39 = vmul.f32 0.2, %v2279_v31 }
 0x1a3   :  { %5950 = vst [vmem:[%s7457_s2 + $0x390] sm:$0xff] %v5770_v32   ;;  %vm2481_vm7 = vcmp.ge.f32.partialorder %v6208_v35, 0.0  ;;  %v2737_v37 = vmul.f32 0.2, %v6208_v35  ;;  %vm2609_vm8 = vcmp.ge.f32.partialorder %v6336_v36, 0.0  ;;  %v2990_v45 = vsel %vm2478_vm6, %v1767_v30, %v2734_v34 }
 0x1a4   :  { %v2865_v40 = vmul.f32 0.2, %v6336_v36  ;;  %v1770_v41 = vpop.f32.mrf.mxu0  ;;  %v2282_v42 = vpop.f32.mrf.mxu1  ;;  %v3118_v54 = vsel %vm2606_vm9, %v2279_v31, %v2862_v39 }
 0x1a5   :  { %v2993_v43 = vsel %vm2481_vm7, %v6208_v35, %v2737_v37  ;;  %vm2479_vm10 = vcmp.ge.f32.partialorder %v1770_v41, 0.0  ;;  %v2735_v44 = vmul.f32 0.2, %v1770_v41  ;;  %vm2607_vm11 = vcmp.ge.f32.partialorder %v2282_v42, 0.0 }
 0x1a6   :  { %v5465_v46 = vpack.c.bf16 %v2993_v43, %v2992_v33  ;;  %v3121_v47 = vsel %vm2609_vm8, %v6336_v36, %v2865_v40  ;;  %v2863_v48 = vmul.f32 0.2, %v2282_v42  ;;  %v6211_v49 = vpop.f32.mrf.mxu0  ;;  %v6339_v50 = vpop.f32.mrf.mxu1 }
 0x1a7   :  { %v5785_v51 = vpack.c.bf16 %v3121_v47, %v3120_v38  ;;  %v2991_v52 = vsel %vm2479_vm10, %v1770_v41, %v2735_v44  ;;  %vm2484_vm12 = vcmp.ge.f32.partialorder %v6211_v49, 0.0  ;;  %v2740_v53 = vmul.f32 0.2, %v6211_v49 }
 0x1a8   :  { %5889 = vst [vmem:[%s7457_s2 + $0x1a8] sm:$0xff] %v5465_v46   ;;  %v5460_v55 = vpack.c.bf16 %v2991_v52, %v2990_v45  ;;  %v3119_v56 = vsel %vm2607_vm11, %v2282_v42, %v2863_v48  ;;  %v2868_v57 = vmul.f32 0.2, %v6339_v50  ;;  %v1783_v58 = vpop.f32.mrf.mxu0  ;;  %v2295_v59 = vpop.f32.mrf.mxu1  ;;  %vm2612_vm0 = vcmp.ge.f32.partialorder %v6339_v50, 0.0 }
 0x1a9   :  { %5953 = vst [vmem:[%s7457_s2 + $0x3a8] sm:$0xff] %v5785_v51   ;;  %v5780_v60 = vpack.c.bf16 %v3119_v56, %v3118_v54  ;;  %v2996_v61 = vsel %vm2484_vm12, %v6211_v49, %v2740_v53  ;;  %v2738_v62 = vmul.f32 0.2, %v1783_v58  ;;  %vm2482_vm13 = vcmp.ge.f32.partialorder %v1783_v58, 0.0 }
 0x1aa   :  { %5888 = vst [vmem:[%s7457_s2 + $0x1a0] sm:$0xff] %v5460_v55   ;;  %v6212_v63 = vpop.f32.mrf.mxu0  ;;  %v6340_v0 = vpop.f32.mrf.mxu1  ;;  %v3124_v2 = vsel %vm2612_vm0, %v6339_v50, %v2868_v57  ;;  %vm2610_vm1 = vcmp.ge.f32.partialorder %v2295_v59, 0.0  ;;  %v2866_v3 = vmul.f32 0.2, %v2295_v59 }
 0x1ab   :  { %5952 = vst [vmem:[%s7457_s2 + $0x3a0] sm:$0xff] %v5780_v60   ;;  %vm2485_vm14 = vcmp.ge.f32.partialorder %v6212_v63, 0.0  ;;  %v2741_v1 = vmul.f32 0.2, %v6212_v63  ;;  %vm2613_vm15 = vcmp.ge.f32.partialorder %v6340_v0, 0.0  ;;  %v2994_v9 = vsel %vm2482_vm13, %v1783_v58, %v2738_v62 }
 0x1ac   :  { %v2869_v4 = vmul.f32 0.2, %v6340_v0  ;;  %v1786_v5 = vpop.f32.mrf.mxu0  ;;  %v2298_v6 = vpop.f32.mrf.mxu1  ;;  %v3122_v18 = vsel %vm2610_vm1, %v2295_v59, %v2866_v3 }
 0x1ad   :  { %v2997_v7 = vsel %vm2485_vm14, %v6212_v63, %v2741_v1  ;;  %vm2483_vm2 = vcmp.ge.f32.partialorder %v1786_v5, 0.0  ;;  %v2739_v8 = vmul.f32 0.2, %v1786_v5  ;;  %vm2611_vm3 = vcmp.ge.f32.partialorder %v2298_v6, 0.0 }
 0x1ae   :  { %v5475_v10 = vpack.c.bf16 %v2997_v7, %v2996_v61  ;;  %v3125_v11 = vsel %vm2613_vm15, %v6340_v0, %v2869_v4  ;;  %v2867_v12 = vmul.f32 0.2, %v2298_v6  ;;  %v6215_v13 = vpop.f32.mrf.mxu0  ;;  %v6343_v14 = vpop.f32.mrf.mxu1 }
 0x1af   :  { %v5795_v15 = vpack.c.bf16 %v3125_v11, %v3124_v2  ;;  %v2995_v16 = vsel %vm2483_vm2, %v1786_v5, %v2739_v8  ;;  %vm2488_vm4 = vcmp.ge.f32.partialorder %v6215_v13, 0.0  ;;  %v2744_v17 = vmul.f32 0.2, %v6215_v13 }
 0x1b0   :  { %5891 = vst [vmem:[%s7457_s2 + $0x1b8] sm:$0xff] %v5475_v10   ;;  %v5470_v19 = vpack.c.bf16 %v2995_v16, %v2994_v9  ;;  %v3123_v20 = vsel %vm2611_vm3, %v2298_v6, %v2867_v12  ;;  %v2872_v21 = vmul.f32 0.2, %v6343_v14  ;;  %v1799_v22 = vpop.f32.mrf.mxu0  ;;  %v2311_v23 = vpop.f32.mrf.mxu1  ;;  %vm2616_vm5 = vcmp.ge.f32.partialorder %v6343_v14, 0.0 }
 0x1b1   :  { %5955 = vst [vmem:[%s7457_s2 + $0x3b8] sm:$0xff] %v5795_v15   ;;  %v5790_v24 = vpack.c.bf16 %v3123_v20, %v3122_v18  ;;  %v3000_v25 = vsel %vm2488_vm4, %v6215_v13, %v2744_v17  ;;  %v2742_v26 = vmul.f32 0.2, %v1799_v22  ;;  %vm2486_vm6 = vcmp.ge.f32.partialorder %v1799_v22, 0.0 }
 0x1b2   :  { %5890 = vst [vmem:[%s7457_s2 + $0x1b0] sm:$0xff] %v5470_v19   ;;  %v6216_v27 = vpop.f32.mrf.mxu0  ;;  %v6344_v28 = vpop.f32.mrf.mxu1  ;;  %v3128_v30 = vsel %vm2616_vm5, %v6343_v14, %v2872_v21  ;;  %vm2614_vm9 = vcmp.ge.f32.partialorder %v2311_v23, 0.0  ;;  %v2870_v31 = vmul.f32 0.2, %v2311_v23 }
 0x1b3   :  { %5954 = vst [vmem:[%s7457_s2 + $0x3b0] sm:$0xff] %v5790_v24   ;;  %vm2489_vm7 = vcmp.ge.f32.partialorder %v6216_v27, 0.0  ;;  %v2745_v29 = vmul.f32 0.2, %v6216_v27  ;;  %vm2617_vm8 = vcmp.ge.f32.partialorder %v6344_v28, 0.0  ;;  %v2998_v37 = vsel %vm2486_vm6, %v1799_v22, %v2742_v26 }
 0x1b4   :  { %v2873_v32 = vmul.f32 0.2, %v6344_v28  ;;  %v1802_v33 = vpop.f32.mrf.mxu0  ;;  %v2314_v34 = vpop.f32.mrf.mxu1  ;;  %v3126_v46 = vsel %vm2614_vm9, %v2311_v23, %v2870_v31 }
 0x1b5   :  { %v3001_v35 = vsel %vm2489_vm7, %v6216_v27, %v2745_v29  ;;  %vm2487_vm10 = vcmp.ge.f32.partialorder %v1802_v33, 0.0  ;;  %v2743_v36 = vmul.f32 0.2, %v1802_v33  ;;  %vm2615_vm11 = vcmp.ge.f32.partialorder %v2314_v34, 0.0 }
 0x1b6   :  { %v5485_v38 = vpack.c.bf16 %v3001_v35, %v3000_v25  ;;  %v3129_v39 = vsel %vm2617_vm8, %v6344_v28, %v2873_v32  ;;  %v2871_v40 = vmul.f32 0.2, %v2314_v34  ;;  %v6219_v41 = vpop.f32.mrf.mxu0  ;;  %v6347_v42 = vpop.f32.mrf.mxu1 }
 0x1b7   :  { %v5805_v43 = vpack.c.bf16 %v3129_v39, %v3128_v30  ;;  %v2999_v44 = vsel %vm2487_vm10, %v1802_v33, %v2743_v36  ;;  %vm2492_vm12 = vcmp.ge.f32.partialorder %v6219_v41, 0.0  ;;  %v2748_v45 = vmul.f32 0.2, %v6219_v41 }
 0x1b8   :  { %5893 = vst [vmem:[%s7457_s2 + $0x1c8] sm:$0xff] %v5485_v38   ;;  %v5480_v47 = vpack.c.bf16 %v2999_v44, %v2998_v37  ;;  %v3127_v48 = vsel %vm2615_vm11, %v2314_v34, %v2871_v40  ;;  %v2876_v49 = vmul.f32 0.2, %v6347_v42  ;;  %v1815_v50 = vpop.f32.mrf.mxu0  ;;  %v2327_v51 = vpop.f32.mrf.mxu1  ;;  %vm2620_vm0 = vcmp.ge.f32.partialorder %v6347_v42, 0.0 }
 0x1b9   :  { %5957 = vst [vmem:[%s7457_s2 + $0x3c8] sm:$0xff] %v5805_v43   ;;  %v5800_v52 = vpack.c.bf16 %v3127_v48, %v3126_v46  ;;  %v3004_v53 = vsel %vm2492_vm12, %v6219_v41, %v2748_v45  ;;  %v2746_v54 = vmul.f32 0.2, %v1815_v50  ;;  %vm2490_vm13 = vcmp.ge.f32.partialorder %v1815_v50, 0.0 }
 0x1ba   :  { %5892 = vst [vmem:[%s7457_s2 + $0x1c0] sm:$0xff] %v5480_v47   ;;  %v6220_v55 = vpop.f32.mrf.mxu0  ;;  %v6348_v56 = vpop.f32.mrf.mxu1  ;;  %v3132_v58 = vsel %vm2620_vm0, %v6347_v42, %v2876_v49  ;;  %vm2618_vm1 = vcmp.ge.f32.partialorder %v2327_v51, 0.0  ;;  %v2874_v59 = vmul.f32 0.2, %v2327_v51 }
 0x1bb   :  { %5956 = vst [vmem:[%s7457_s2 + $0x3c0] sm:$0xff] %v5800_v52   ;;  %vm2493_vm14 = vcmp.ge.f32.partialorder %v6220_v55, 0.0  ;;  %v2749_v57 = vmul.f32 0.2, %v6220_v55  ;;  %vm2621_vm15 = vcmp.ge.f32.partialorder %v6348_v56, 0.0  ;;  %v3002_v1 = vsel %vm2490_vm13, %v1815_v50, %v2746_v54 }
 0x1bc   :  { %v2877_v60 = vmul.f32 0.2, %v6348_v56  ;;  %v1818_v61 = vpop.f32.mrf.mxu0  ;;  %v2330_v62 = vpop.f32.mrf.mxu1  ;;  %v3130_v10 = vsel %vm2618_vm1, %v2327_v51, %v2874_v59 }
 0x1bd   :  { %v3005_v63 = vsel %vm2493_vm14, %v6220_v55, %v2749_v57  ;;  %vm2491_vm2 = vcmp.ge.f32.partialorder %v1818_v61, 0.0  ;;  %v2747_v0 = vmul.f32 0.2, %v1818_v61  ;;  %vm2619_vm3 = vcmp.ge.f32.partialorder %v2330_v62, 0.0 }
 0x1be   :  { %v5495_v2 = vpack.c.bf16 %v3005_v63, %v3004_v53  ;;  %v3133_v3 = vsel %vm2621_vm15, %v6348_v56, %v2877_v60  ;;  %v2875_v4 = vmul.f32 0.2, %v2330_v62  ;;  %v6223_v5 = vpop.f32.mrf.mxu0  ;;  %v6351_v6 = vpop.f32.mrf.mxu1 }
 0x1bf   :  { %v5815_v7 = vpack.c.bf16 %v3133_v3, %v3132_v58  ;;  %v3003_v8 = vsel %vm2491_vm2, %v1818_v61, %v2747_v0  ;;  %vm2496_vm4 = vcmp.ge.f32.partialorder %v6223_v5, 0.0  ;;  %v2752_v9 = vmul.f32 0.2, %v6223_v5 }
 0x1c0   :  { %5895 = vst [vmem:[%s7457_s2 + $0x1d8] sm:$0xff] %v5495_v2   ;;  %v5490_v11 = vpack.c.bf16 %v3003_v8, %v3002_v1  ;;  %v3131_v12 = vsel %vm2619_vm3, %v2330_v62, %v2875_v4  ;;  %v2880_v13 = vmul.f32 0.2, %v6351_v6  ;;  %v1831_v14 = vpop.f32.mrf.mxu0  ;;  %v2343_v15 = vpop.f32.mrf.mxu1  ;;  %vm2624_vm5 = vcmp.ge.f32.partialorder %v6351_v6, 0.0 }
 0x1c1   :  { %5959 = vst [vmem:[%s7457_s2 + $0x3d8] sm:$0xff] %v5815_v7   ;;  %v5810_v16 = vpack.c.bf16 %v3131_v12, %v3130_v10  ;;  %v3008_v17 = vsel %vm2496_vm4, %v6223_v5, %v2752_v9  ;;  %v2750_v18 = vmul.f32 0.2, %v1831_v14  ;;  %vm2494_vm6 = vcmp.ge.f32.partialorder %v1831_v14, 0.0 }
 0x1c2   :  { %5894 = vst [vmem:[%s7457_s2 + $0x1d0] sm:$0xff] %v5490_v11   ;;  %v6224_v19 = vpop.f32.mrf.mxu0  ;;  %v6352_v20 = vpop.f32.mrf.mxu1  ;;  %v3136_v22 = vsel %vm2624_vm5, %v6351_v6, %v2880_v13  ;;  %vm2622_vm9 = vcmp.ge.f32.partialorder %v2343_v15, 0.0  ;;  %v2878_v23 = vmul.f32 0.2, %v2343_v15 }
 0x1c3   :  { %5958 = vst [vmem:[%s7457_s2 + $0x3d0] sm:$0xff] %v5810_v16   ;;  %vm2497_vm7 = vcmp.ge.f32.partialorder %v6224_v19, 0.0  ;;  %v2753_v21 = vmul.f32 0.2, %v6224_v19  ;;  %vm2625_vm8 = vcmp.ge.f32.partialorder %v6352_v20, 0.0  ;;  %v3006_v29 = vsel %vm2494_vm6, %v1831_v14, %v2750_v18 }
 0x1c4   :  { %v2881_v24 = vmul.f32 0.2, %v6352_v20  ;;  %v1834_v25 = vpop.f32.mrf.mxu0  ;;  %v2346_v26 = vpop.f32.mrf.mxu1  ;;  %v3134_v38 = vsel %vm2622_vm9, %v2343_v15, %v2878_v23 }
 0x1c5   :  { %v3009_v27 = vsel %vm2497_vm7, %v6224_v19, %v2753_v21  ;;  %vm2495_vm10 = vcmp.ge.f32.partialorder %v1834_v25, 0.0  ;;  %v2751_v28 = vmul.f32 0.2, %v1834_v25  ;;  %vm2623_vm11 = vcmp.ge.f32.partialorder %v2346_v26, 0.0 }
 0x1c6   :  { %v5505_v30 = vpack.c.bf16 %v3009_v27, %v3008_v17  ;;  %v3137_v31 = vsel %vm2625_vm8, %v6352_v20, %v2881_v24  ;;  %v2879_v32 = vmul.f32 0.2, %v2346_v26  ;;  %v6227_v33 = vpop.f32.mrf.mxu0  ;;  %v6355_v34 = vpop.f32.mrf.mxu1 }
 0x1c7   :  { %v5825_v35 = vpack.c.bf16 %v3137_v31, %v3136_v22  ;;  %v3007_v36 = vsel %vm2495_vm10, %v1834_v25, %v2751_v28  ;;  %vm2500_vm12 = vcmp.ge.f32.partialorder %v6227_v33, 0.0  ;;  %v2756_v37 = vmul.f32 0.2, %v6227_v33 }
 0x1c8   :  { %5897 = vst [vmem:[%s7457_s2 + $0x1e8] sm:$0xff] %v5505_v30   ;;  %v5500_v39 = vpack.c.bf16 %v3007_v36, %v3006_v29  ;;  %v3135_v40 = vsel %vm2623_vm11, %v2346_v26, %v2879_v32  ;;  %v1847_v41 = vpop.f32.mrf.mxu0  ;;  %v2359_v42 = vpop.f32.mrf.mxu1  ;;  %vm2628_vm0 = vcmp.ge.f32.partialorder %v6355_v34, 0.0  ;;  %v2884_v45 = vmul.f32 0.2, %v6355_v34 }
 0x1c9   :  { %5961 = vst [vmem:[%s7457_s2 + $0x3e8] sm:$0xff] %v5825_v35   ;;  %v5820_v43 = vpack.c.bf16 %v3135_v40, %v3134_v38  ;;  %v3012_v44 = vsel %vm2500_vm12, %v6227_v33, %v2756_v37  ;;  %v2754_v48 = vmul.f32 0.2, %v1847_v41  ;;  %vm2498_vm15 = vcmp.ge.f32.partialorder %v1847_v41, 0.0 }
 0x1ca   :  { %5896 = vst [vmem:[%s7457_s2 + $0x1e0] sm:$0xff] %v5500_v39   ;;  %v6228_v46 = vpop.f32.mrf.mxu0  ;;  %v6356_v47 = vpop.f32.mrf.mxu1  ;;  %vm2626_vm1 = vcmp.ge.f32.partialorder %v2359_v42, 0.0  ;;  %v2882_v50 = vmul.f32 0.2, %v2359_v42  ;;  %v3140_v56 = vsel %vm2628_vm0, %v6355_v34, %v2884_v45 }
 0x1cb   :  { %5960 = vst [vmem:[%s7457_s2 + $0x3e0] sm:$0xff] %v5820_v43   ;;  %vm2501_vm13 = vcmp.ge.f32.partialorder %v6228_v46, 0.0  ;;  %v2757_v49 = vmul.f32 0.2, %v6228_v46  ;;  %vm2629_vm14 = vcmp.ge.f32.partialorder %v6356_v47, 0.0  ;;  %v3010_v60 = vsel %vm2498_vm15, %v1847_v41, %v2754_v48 }
 0x1cc   :  { %v2885_v51 = vmul.f32 0.2, %v6356_v47  ;;  %v1850_v52 = vpop.f32.mrf.mxu0  ;;  %v2362_v53 = vpop.f32.mrf.mxu1  ;;  %v3138_v63 = vsel %vm2626_vm1, %v2359_v42, %v2882_v50 }
 0x1cd   :  { %v3013_v54 = vsel %vm2501_vm13, %v6228_v46, %v2757_v49  ;;  %vm2499_vm2 = vcmp.ge.f32.partialorder %v1850_v52, 0.0  ;;  %v2755_v55 = vmul.f32 0.2, %v1850_v52  ;;  %vm2627_vm3 = vcmp.ge.f32.partialorder %v2362_v53, 0.0 }
 0x1ce   :  { %v5515_v57 = vpack.c.bf16 %v3013_v54, %v3012_v44  ;;  %v3141_v58 = vsel %vm2629_vm14, %v6356_v47, %v2885_v51  ;;  %v2883_v59 = vmul.f32 0.2, %v2362_v53 }
 0x1cf   :  { %v5835_v61 = vpack.c.bf16 %v3141_v58, %v3140_v56  ;;  %v3011_v62 = vsel %vm2499_vm2, %v1850_v52, %v2755_v55 }
 0x1d0   :  { %5899 = vst [vmem:[%s7457_s2 + $0x1f8] sm:$0xff] %v5515_v57   ;;  %v5510_v0 = vpack.c.bf16 %v3011_v62, %v3010_v60  ;;  %v3139_v1 = vsel %vm2627_vm3, %v2362_v53, %v2883_v59 }
 0x1d1   :  { %5963 = vst [vmem:[%s7457_s2 + $0x3f8] sm:$0xff] %v5835_v61   ;;  %v5830_v2 = vpack.c.bf16 %v3139_v1, %v3138_v63 }
 0x1d2   :  { %5898 = vst [vmem:[%s7457_s2 + $0x1f0] sm:$0xff] %v5510_v0  }
 0x1d3   :  { %5962 = vst [vmem:[%s7457_s2 + $0x3f0] sm:$0xff] %v5830_v2  }

// kernel: discriminator_forward.9
= control target key start
LH: loop header
LB: loop body
LE: loop exit
PB: predicated region body
PF: predicated region fallthrough
CT: control target
= control target key end

     0   :  { %s2124_s1 = inlined_call_operand.vmem [shape: bf16[128,128], index: 1, kind: input, shape index: {}]   ;;  %s2125_s0 = inlined_call_operand.vmem [shape: bf16[512,128], index: 0, kind: input, shape index: {}]   ;;  %s2126_s2 = inlined_call_operand.vmem [shape: bf16[512,128], index: 2, kind: output, shape index: {0}]   ;;  %s2127_s3 = inlined_call_operand.vmem [shape: f32[1,2,128], index: 3, kind: output, shape index: {1}]  }
   0x1   :  { %v1650_v0 = vld [vmem:[%s2124_s1 + $0x38] sm:$0xff]   ;;  %v1651_v1 = vld [vmem:[%s2124_s1 + $0x30] sm:$0xff]   ;;  %v1652_v2 = vld [vmem:[%s2124_s1 + $0x28] sm:$0xff]  }
   0x2   :  { %1554 = vmatprep.subr.bf16.mxu0 %v1650_v0  ;;  %1634 = vmatprep.subr.bf16.mxu1 %v1650_v0  ;;  %v1653_v3 = vld [vmem:[%s2124_s1 + $0x20] sm:$0xff]   ;;  %v1654_v5 = vld [vmem:[%s2124_s1 + $0x18] sm:$0xff]   ;;  %v1655_v6 = vld [vmem:[%s2124_s1 + $0x10] sm:$0xff]  }
   0x3   :  { %1555 = vmatpush3.bf16.msra.mxu0 %v1650_v0  ;;  %1642 = vmatpush3.bf16.msra.mxu1 %v1650_v0  ;;  %v1658_v4 = vld [vmem:[%s2125_s0] sm:$0xff]   ;;  %v1656_v7 = vld [vmem:[%s2124_s1 + $0x8] sm:$0xff]   ;;  %v1660_v11 = vld [vmem:[%s2125_s0 + $0x10] sm:$0xff]  }
   0x4   :  { %1556 = vmatprep.subr.bf16.mxu0 %v1651_v1  ;;  %1635 = vmatprep.subr.bf16.mxu1 %v1651_v1  ;;  %v1657_v8 = vld [vmem:[%s2124_s1] sm:$0xff]   ;;  %v1659_v10 = vld [vmem:[%s2125_s0 + $0x8] sm:$0xff]   ;;  %v1676_v13 = vld [vmem:[%s2125_s0 + $0x90] sm:$0xff]  }
   0x5   :  { %1570 = vmatprep.mubr.bf16.mxu0 %v1658_v4  ;;  %v1674_v9 = vld [vmem:[%s2125_s0 + $0x80] sm:$0xff]   ;;  %v1675_v12 = vld [vmem:[%s2125_s0 + $0x88] sm:$0xff]   ;;  %v1661_v14 = vld [vmem:[%s2125_s0 + $0x18] sm:$0xff]  }
   0x6   :  { %1602 = vmatprep.mubr.bf16.mxu1 %v1674_v9  ;;  %v1662_v15 = vld [vmem:[%s2125_s0 + $0x20] sm:$0xff]   ;;  %v1677_v16 = vld [vmem:[%s2125_s0 + $0x98] sm:$0xff]   ;;  %v1663_v18 = vld [vmem:[%s2125_s0 + $0x28] sm:$0xff]  }
   0x7   :  { %1557 = vmatpush3.bf16.msra.mxu0 %v1651_v1  ;;  %1643 = vmatpush3.bf16.msra.mxu1 %v1651_v1  ;;  %v1678_v17 = vld [vmem:[%s2125_s0 + $0xa0] sm:$0xff]   ;;  %v1679_v19 = vld [vmem:[%s2125_s0 + $0xa8] sm:$0xff]   ;;  %v1664_v20 = vld [vmem:[%s2125_s0 + $0x30] sm:$0xff]  }
   0x8   :  { %1558 = vmatprep.subr.bf16.mxu0 %v1652_v2  ;;  %1636 = vmatprep.subr.bf16.mxu1 %v1652_v2  ;;  %v1680_v21 = vld [vmem:[%s2125_s0 + $0xb0] sm:$0xff]   ;;  %v1665_v22 = vld [vmem:[%s2125_s0 + $0x38] sm:$0xff]   ;;  %v1666_v24 = vld [vmem:[%s2125_s0 + $0x40] sm:$0xff]  }
   0x9   :  { %v1681_v23 = vld [vmem:[%s2125_s0 + $0xb8] sm:$0xff]   ;;  %v1682_v25 = vld [vmem:[%s2125_s0 + $0xc0] sm:$0xff]   ;;  %v1667_v26 = vld [vmem:[%s2125_s0 + $0x48] sm:$0xff]  }
   0xa   :  { %v1683_v27 = vld [vmem:[%s2125_s0 + $0xc8] sm:$0xff]   ;;  %v1668_v28 = vld [vmem:[%s2125_s0 + $0x50] sm:$0xff]   ;;  %v1669_v30 = vld [vmem:[%s2125_s0 + $0x58] sm:$0xff]  }
   0xb   :  { %1559 = vmatpush3.bf16.msra.mxu0 %v1652_v2  ;;  %1644 = vmatpush3.bf16.msra.mxu1 %v1652_v2  ;;  %v1684_v29 = vld [vmem:[%s2125_s0 + $0xd0] sm:$0xff]   ;;  %v1685_v31 = vld [vmem:[%s2125_s0 + $0xd8] sm:$0xff]   ;;  %v1670_v32 = vld [vmem:[%s2125_s0 + $0x60] sm:$0xff]  }
   0xc   :  { %1560 = vmatprep.subr.bf16.mxu0 %v1653_v3  ;;  %1637 = vmatprep.subr.bf16.mxu1 %v1653_v3  ;;  %v1686_v33 = vld [vmem:[%s2125_s0 + $0xe0] sm:$0xff]   ;;  %v1671_v34 = vld [vmem:[%s2125_s0 + $0x68] sm:$0xff]   ;;  %v1672_v36 = vld [vmem:[%s2125_s0 + $0x70] sm:$0xff]  }
   0xd   :  { %v1687_v35 = vld [vmem:[%s2125_s0 + $0xe8] sm:$0xff]   ;;  %v1688_v37 = vld [vmem:[%s2125_s0 + $0xf0] sm:$0xff]   ;;  %v1673_v38 = vld [vmem:[%s2125_s0 + $0x78] sm:$0xff]  }
   0xe   :  { %v1689_v39 = vld [vmem:[%s2125_s0 + $0xf8] sm:$0xff]  }
   0xf   :  { %1561 = vmatpush3.bf16.msra.mxu0 %v1653_v3  ;;  %1645 = vmatpush3.bf16.msra.mxu1 %v1653_v3 }
  0x10   :  { %1562 = vmatprep.subr.bf16.mxu0 %v1654_v5  ;;  %1638 = vmatprep.subr.bf16.mxu1 %v1654_v5 }
  0x13   :  { %1563 = vmatpush3.bf16.msra.mxu0 %v1654_v5  ;;  %1646 = vmatpush3.bf16.msra.mxu1 %v1654_v5 }
  0x14   :  { %1564 = vmatprep.subr.bf16.mxu0 %v1655_v6  ;;  %1639 = vmatprep.subr.bf16.mxu1 %v1655_v6 }
  0x17   :  { %1565 = vmatpush3.bf16.msra.mxu0 %v1655_v6  ;;  %1647 = vmatpush3.bf16.msra.mxu1 %v1655_v6 }
  0x18   :  { %1566 = vmatprep.subr.bf16.mxu0 %v1656_v7  ;;  %1640 = vmatprep.subr.bf16.mxu1 %v1656_v7 }
  0x1b   :  { %1567 = vmatpush3.bf16.msra.mxu0 %v1656_v7  ;;  %1648 = vmatpush3.bf16.msra.mxu1 %v1656_v7 }
  0x1c   :  { %1568 = vmatprep.subr.bf16.mxu0 %v1657_v8  ;;  %1641 = vmatprep.subr.bf16.mxu1 %v1657_v8 }
  0x1f   :  { %1569 = vmatpush3.bf16.msra.mxu0 %v1657_v8  ;;  %1649 = vmatpush3.bf16.msra.mxu1 %v1657_v8 }
  0x22   :  { %1571 = vmatmul.mubr.bf16.vlgmr.msra.gmra.mxu0 %v1659_v10  ;;  %1603 = vmatmul.mubr.bf16.vlgmr.msra.gmra.mxu1 %v1675_v12 }
  0x23   :  { %1574 = vmatprep.mubr.bf16.mxu0 %v1660_v11  ;;  %1606 = vmatprep.mubr.bf16.mxu1 %v1676_v13 }
  0x2a   :  { %1575 = vmatmul.mubr.bf16.gmra.mxu0 %v1661_v14  ;;  %1607 = vmatmul.mubr.bf16.gmra.mxu1 %v1677_v16 }
  0x2b   :  { %1578 = vmatprep.mubr.bf16.mxu0 %v1662_v15  ;;  %1610 = vmatprep.mubr.bf16.mxu1 %v1678_v17 }
  0x32   :  { %1579 = vmatmul.mubr.bf16.gmra.mxu0 %v1663_v18  ;;  %1611 = vmatmul.mubr.bf16.gmra.mxu1 %v1679_v19 }
  0x33   :  { %1582 = vmatprep.mubr.bf16.mxu0 %v1664_v20  ;;  %1614 = vmatprep.mubr.bf16.mxu1 %v1680_v21 }
  0x3a   :  { %1583 = vmatmul.mubr.bf16.gmra.mxu0 %v1665_v22  ;;  %1615 = vmatmul.mubr.bf16.gmra.mxu1 %v1681_v23 }
  0x3b   :  { %1586 = vmatprep.mubr.bf16.mxu0 %v1666_v24  ;;  %1618 = vmatprep.mubr.bf16.mxu1 %v1682_v25 }
  0x42   :  { %1587 = vmatmul.mubr.bf16.gmra.mxu0 %v1667_v26  ;;  %1619 = vmatmul.mubr.bf16.gmra.mxu1 %v1683_v27 }
  0x43   :  { %1590 = vmatprep.mubr.bf16.mxu0 %v1668_v28  ;;  %1622 = vmatprep.mubr.bf16.mxu1 %v1684_v29 }
  0x4a   :  { %1591 = vmatmul.mubr.bf16.gmra.mxu0 %v1669_v30  ;;  %1623 = vmatmul.mubr.bf16.gmra.mxu1 %v1685_v31 }
  0x4b   :  { %1594 = vmatprep.mubr.bf16.mxu0 %v1670_v32  ;;  %1626 = vmatprep.mubr.bf16.mxu1 %v1686_v33 }
  0x52   :  { %1595 = vmatmul.mubr.bf16.gmra.mxu0 %v1671_v34  ;;  %1627 = vmatmul.mubr.bf16.gmra.mxu1 %v1687_v35 }
  0x53   :  { %1598 = vmatprep.mubr.bf16.mxu0 %v1672_v36  ;;  %1630 = vmatprep.mubr.bf16.mxu1 %v1688_v37 }
  0x5a   :  { %1599 = vmatmul.mubr.bf16.gmra.mxu0 %v1673_v38  ;;  %1631 = vmatmul.mubr.bf16.gmra.mxu1 %v1689_v39 }
  0xe2   :  { %v1572_v40 = vpop.f32.mrf.mxu0  ;;  %v1830_v41 = vpop.f32.mrf.mxu1 }
  0xe3   :  { %v1015_v57 = vmul.f32 %v1572_v40, %v1572_v40 }
  0xe4   :  { %v368_v42 = vpop.f32.mrf.mxu0  ;;  %v1832_v43 = vpop.f32.mrf.mxu1 }
  0xe5   :  { %v1013_v48 = vmul.f32 %v368_v42, %v368_v42 }
  0xe6   :  { %v1573_v44 = vpop.f32.mrf.mxu0  ;;  %v1834_v45 = vpop.f32.mrf.mxu1 }
  0xe7   :  { %v1331_v46 = vpack.c.bf16 %v1573_v44, %v1572_v40  ;;  %v1411_v47 = vpack.c.bf16 %v1834_v45, %v1830_v41  ;;  %v1016_v62 = vmul.f32 %v1573_v44, %v1573_v44 }
  0xe8   :  { %v371_v49 = vpop.f32.mrf.mxu0  ;;  %v1838_v50 = vpop.f32.mrf.mxu1 }
  0xe9   :  { %1483 = vst [vmem:[%s2126_s2 + $0x8] sm:$0xff] %v1331_v46   ;;  %v1326_v51 = vpack.c.bf16 %v371_v49, %v368_v42  ;;  %v943_v52 = vadd.f32 %v371_v49, %v368_v42  ;;  %v1014_v53 = vmul.f32 %v371_v49, %v371_v49  ;;  %1499 = vst [vmem:[%s2126_s2 + $0x88] sm:$0xff] %v1411_v47  }
  0xea   :  { %v1406_v54 = vpack.c.bf16 %v1838_v50, %v1832_v43  ;;  %v1576_v55 = vpop.f32.mrf.mxu0  ;;  %v1848_v56 = vpop.f32.mrf.mxu1 }
  0xeb   :  { %1327 = vst [vmem:[%s2126_s2] sm:$0xff] %v1326_v51   ;;  %v944_v58 = vadd.f32 %v1572_v40, %v943_v52  ;;  %v1077_v59 = vadd.f32 %v1014_v53, %v1013_v48  ;;  %v1019_v17 = vmul.f32 %v1576_v55, %v1576_v55 }
  0xec   :  { %1498 = vst [vmem:[%s2126_s2 + $0x80] sm:$0xff] %v1406_v54   ;;  %v384_v60 = vpop.f32.mrf.mxu0  ;;  %v1856_v61 = vpop.f32.mrf.mxu1 }
  0xed   :  { %v1078_v63 = vadd.f32 %v1077_v59, %v1015_v57  ;;  %v945_v0 = vadd.f32 %v1573_v44, %v944_v58  ;;  %v1017_v4 = vmul.f32 %v384_v60, %v384_v60 }
  0xee   :  { %v1577_v1 = vpop.f32.mrf.mxu0  ;;  %v1858_v2 = vpop.f32.mrf.mxu1 }
  0xef   :  { %v946_v3 = vadd.f32 %v945_v0, %v384_v60  ;;  %v1079_v5 = vadd.f32 %v1078_v63, %v1016_v62  ;;  %v1341_v6 = vpack.c.bf16 %v1577_v1, %v1576_v55  ;;  %v1421_v8 = vpack.c.bf16 %v1858_v2, %v1848_v56 }
  0xf0   :  { %v387_v7 = vpop.f32.mrf.mxu0  ;;  %v1862_v9 = vpop.f32.mrf.mxu1  ;;  %v1020_v22 = vmul.f32 %v1577_v1, %v1577_v1 }
  0xf1   :  { %v1080_v10 = vadd.f32 %v1079_v5, %v1017_v4  ;;  %1485 = vst [vmem:[%s2126_s2 + $0x18] sm:$0xff] %v1341_v6   ;;  %v1336_v11 = vpack.c.bf16 %v387_v7, %v384_v60  ;;  %v947_v12 = vadd.f32 %v946_v3, %v387_v7  ;;  %v1018_v13 = vmul.f32 %v387_v7, %v387_v7 }
  0xf2   :  { %v1580_v14 = vpop.f32.mrf.mxu0  ;;  %1501 = vst [vmem:[%s2126_s2 + $0x98] sm:$0xff] %v1421_v8   ;;  %v1416_v15 = vpack.c.bf16 %v1862_v9, %v1856_v61  ;;  %v1872_v16 = vpop.f32.mrf.mxu1 }
  0xf3   :  { %1484 = vst [vmem:[%s2126_s2 + $0x10] sm:$0xff] %v1336_v11   ;;  %v948_v18 = vadd.f32 %v1576_v55, %v947_v12  ;;  %v1081_v19 = vadd.f32 %v1080_v10, %v1018_v13  ;;  %v1023_v42 = vmul.f32 %v1580_v14, %v1580_v14 }
  0xf4   :  { %v400_v20 = vpop.f32.mrf.mxu0  ;;  %1500 = vst [vmem:[%s2126_s2 + $0x90] sm:$0xff] %v1416_v15   ;;  %v1880_v21 = vpop.f32.mrf.mxu1 }
  0xf5   :  { %v1082_v23 = vadd.f32 %v1081_v19, %v1019_v17  ;;  %v949_v24 = vadd.f32 %v1577_v1, %v948_v18  ;;  %v1021_v28 = vmul.f32 %v400_v20, %v400_v20 }
  0xf6   :  { %v1581_v25 = vpop.f32.mrf.mxu0  ;;  %v1882_v26 = vpop.f32.mrf.mxu1 }
  0xf7   :  { %v950_v27 = vadd.f32 %v949_v24, %v400_v20  ;;  %v1083_v29 = vadd.f32 %v1082_v23, %v1020_v22  ;;  %v1351_v30 = vpack.c.bf16 %v1581_v25, %v1580_v14  ;;  %v1431_v32 = vpack.c.bf16 %v1882_v26, %v1872_v16 }
  0xf8   :  { %v403_v31 = vpop.f32.mrf.mxu0  ;;  %v1886_v33 = vpop.f32.mrf.mxu1  ;;  %v1024_v49 = vmul.f32 %v1581_v25, %v1581_v25 }
  0xf9   :  { %v1084_v34 = vadd.f32 %v1083_v29, %v1021_v28  ;;  %1487 = vst [vmem:[%s2126_s2 + $0x28] sm:$0xff] %v1351_v30   ;;  %v1346_v35 = vpack.c.bf16 %v403_v31, %v400_v20  ;;  %v951_v36 = vadd.f32 %v950_v27, %v403_v31  ;;  %v1022_v37 = vmul.f32 %v403_v31, %v403_v31 }
  0xfa   :  { %v1584_v38 = vpop.f32.mrf.mxu0  ;;  %1503 = vst [vmem:[%s2126_s2 + $0xa8] sm:$0xff] %v1431_v32   ;;  %v1426_v39 = vpack.c.bf16 %v1886_v33, %v1880_v21  ;;  %v1896_v40 = vpop.f32.mrf.mxu1 }
  0xfb   :  { %1486 = vst [vmem:[%s2126_s2 + $0x20] sm:$0xff] %v1346_v35   ;;  %v952_v44 = vadd.f32 %v1580_v14, %v951_v36  ;;  %v1085_v46 = vadd.f32 %v1084_v34, %v1022_v37  ;;  %v1027_v8 = vmul.f32 %v1584_v38, %v1584_v38 }
  0xfc   :  { %v416_v47 = vpop.f32.mrf.mxu0  ;;  %1502 = vst [vmem:[%s2126_s2 + $0xa0] sm:$0xff] %v1426_v39   ;;  %v1904_v48 = vpop.f32.mrf.mxu1 }
  0xfd   :  { %v1086_v51 = vadd.f32 %v1085_v46, %v1023_v42  ;;  %v953_v52 = vadd.f32 %v1581_v25, %v952_v44  ;;  %v1025_v57 = vmul.f32 %v416_v47, %v416_v47 }
  0xfe   :  { %v1585_v53 = vpop.f32.mrf.mxu0  ;;  %v1906_v54 = vpop.f32.mrf.mxu1 }
  0xff   :  { %v954_v55 = vadd.f32 %v953_v52, %v416_v47  ;;  %v1087_v58 = vadd.f32 %v1086_v51, %v1024_v49  ;;  %v1361_v59 = vpack.c.bf16 %v1585_v53, %v1584_v38  ;;  %v1441_v62 = vpack.c.bf16 %v1906_v54, %v1896_v40 }
 0x100   :  { %v419_v60 = vpop.f32.mrf.mxu0  ;;  %v1910_v63 = vpop.f32.mrf.mxu1  ;;  %v1028_v14 = vmul.f32 %v1585_v53, %v1585_v53 }
 0x101   :  { %v1088_v0 = vadd.f32 %v1087_v58, %v1025_v57  ;;  %1489 = vst [vmem:[%s2126_s2 + $0x38] sm:$0xff] %v1361_v59   ;;  %v1356_v1 = vpack.c.bf16 %v419_v60, %v416_v47  ;;  %v955_v3 = vadd.f32 %v954_v55, %v419_v60  ;;  %v1026_v4 = vmul.f32 %v419_v60, %v419_v60 }
 0x102   :  { %v1588_v5 = vpop.f32.mrf.mxu0  ;;  %1505 = vst [vmem:[%s2126_s2 + $0xb8] sm:$0xff] %v1441_v62   ;;  %v1436_v6 = vpack.c.bf16 %v1910_v63, %v1904_v48  ;;  %v1920_v7 = vpop.f32.mrf.mxu1 }
 0x103   :  { %1488 = vst [vmem:[%s2126_s2 + $0x30] sm:$0xff] %v1356_v1   ;;  %v956_v10 = vadd.f32 %v1584_v38, %v955_v3  ;;  %v1089_v11 = vadd.f32 %v1088_v0, %v1026_v4  ;;  %v1031_v37 = vmul.f32 %v1588_v5, %v1588_v5 }
 0x104   :  { %v432_v12 = vpop.f32.mrf.mxu0  ;;  %1504 = vst [vmem:[%s2126_s2 + $0xb0] sm:$0xff] %v1436_v6   ;;  %v1928_v13 = vpop.f32.mrf.mxu1 }
 0x105   :  { %v1090_v15 = vadd.f32 %v1089_v11, %v1027_v8  ;;  %v957_v17 = vadd.f32 %v1585_v53, %v956_v10  ;;  %v1029_v22 = vmul.f32 %v432_v12, %v432_v12 }
 0x106   :  { %v1589_v18 = vpop.f32.mrf.mxu0  ;;  %v1930_v19 = vpop.f32.mrf.mxu1 }
 0x107   :  { %v958_v20 = vadd.f32 %v957_v17, %v432_v12  ;;  %v1091_v23 = vadd.f32 %v1090_v15, %v1028_v14  ;;  %v1371_v24 = vpack.c.bf16 %v1589_v18, %v1588_v5  ;;  %v1451_v27 = vpack.c.bf16 %v1930_v19, %v1920_v7 }
 0x108   :  { %v435_v25 = vpop.f32.mrf.mxu0  ;;  %v1934_v28 = vpop.f32.mrf.mxu1  ;;  %v1032_v46 = vmul.f32 %v1589_v18, %v1589_v18 }
 0x109   :  { %v1092_v29 = vadd.f32 %v1091_v23, %v1029_v22  ;;  %1491 = vst [vmem:[%s2126_s2 + $0x48] sm:$0xff] %v1371_v24   ;;  %v1366_v30 = vpack.c.bf16 %v435_v25, %v432_v12  ;;  %v959_v31 = vadd.f32 %v958_v20, %v435_v25  ;;  %v1030_v32 = vmul.f32 %v435_v25, %v435_v25 }
 0x10a   :  { %v1592_v34 = vpop.f32.mrf.mxu0  ;;  %1507 = vst [vmem:[%s2126_s2 + $0xc8] sm:$0xff] %v1451_v27   ;;  %v1446_v35 = vpack.c.bf16 %v1934_v28, %v1928_v13  ;;  %v1944_v36 = vpop.f32.mrf.mxu1 }
 0x10b   :  { %1490 = vst [vmem:[%s2126_s2 + $0x40] sm:$0xff] %v1366_v30   ;;  %v960_v38 = vadd.f32 %v1588_v5, %v959_v31  ;;  %v1093_v39 = vadd.f32 %v1092_v29, %v1030_v32  ;;  %v1035_v10 = vmul.f32 %v1592_v34, %v1592_v34 }
 0x10c   :  { %v448_v42 = vpop.f32.mrf.mxu0  ;;  %1506 = vst [vmem:[%s2126_s2 + $0xc0] sm:$0xff] %v1446_v35   ;;  %v1952_v44 = vpop.f32.mrf.mxu1 }
 0x10d   :  { %v1094_v47 = vadd.f32 %v1093_v39, %v1031_v37  ;;  %v961_v49 = vadd.f32 %v1589_v18, %v960_v38  ;;  %v1033_v55 = vmul.f32 %v448_v42, %v448_v42 }
 0x10e   :  { %v1593_v51 = vpop.f32.mrf.mxu0  ;;  %v1954_v52 = vpop.f32.mrf.mxu1 }
 0x10f   :  { %v962_v53 = vadd.f32 %v961_v49, %v448_v42  ;;  %v1095_v57 = vadd.f32 %v1094_v47, %v1032_v46  ;;  %v1381_v58 = vpack.c.bf16 %v1593_v51, %v1592_v34  ;;  %v1461_v60 = vpack.c.bf16 %v1954_v52, %v1944_v36 }
 0x110   :  { %v451_v59 = vpop.f32.mrf.mxu0  ;;  %v1958_v62 = vpop.f32.mrf.mxu1  ;;  %v1036_v17 = vmul.f32 %v1593_v51, %v1593_v51 }
 0x111   :  { %v1096_v0 = vadd.f32 %v1095_v57, %v1033_v55  ;;  %1493 = vst [vmem:[%s2126_s2 + $0x58] sm:$0xff] %v1381_v58   ;;  %v1376_v1 = vpack.c.bf16 %v451_v59, %v448_v42  ;;  %v963_v3 = vadd.f32 %v962_v53, %v451_v59  ;;  %v1034_v4 = vmul.f32 %v451_v59, %v451_v59 }
 0x112   :  { %v1596_v5 = vpop.f32.mrf.mxu0  ;;  %1509 = vst [vmem:[%s2126_s2 + $0xd8] sm:$0xff] %v1461_v60   ;;  %v1456_v6 = vpack.c.bf16 %v1958_v62, %v1952_v44  ;;  %v1968_v8 = vpop.f32.mrf.mxu1 }
 0x113   :  { %1492 = vst [vmem:[%s2126_s2 + $0x50] sm:$0xff] %v1376_v1   ;;  %v964_v11 = vadd.f32 %v1592_v34, %v963_v3  ;;  %v1097_v12 = vadd.f32 %v1096_v0, %v1034_v4  ;;  %v1039_v47 = vmul.f32 %v1596_v5, %v1596_v5 }
 0x114   :  { %v464_v14 = vpop.f32.mrf.mxu0  ;;  %1508 = vst [vmem:[%s2126_s2 + $0xd0] sm:$0xff] %v1456_v6   ;;  %v1976_v15 = vpop.f32.mrf.mxu1 }
 0x115   :  { %v1098_v18 = vadd.f32 %v1097_v12, %v1035_v10  ;;  %v965_v20 = vadd.f32 %v1593_v51, %v964_v11  ;;  %v1037_v25 = vmul.f32 %v464_v14, %v464_v14 }
 0x116   :  { %v1597_v22 = vpop.f32.mrf.mxu0  ;;  %v1978_v23 = vpop.f32.mrf.mxu1 }
 0x117   :  { %v966_v24 = vadd.f32 %v965_v20, %v464_v14  ;;  %v1099_v27 = vadd.f32 %v1098_v18, %v1036_v17  ;;  %v1391_v29 = vpack.c.bf16 %v1597_v22, %v1596_v5  ;;  %v1471_v31 = vpack.c.bf16 %v1978_v23, %v1968_v8 }
 0x118   :  { %v467_v30 = vpop.f32.mrf.mxu0  ;;  %v1982_v32 = vpop.f32.mrf.mxu1  ;;  %v1040_v57 = vmul.f32 %v1597_v22, %v1597_v22 }
 0x119   :  { %v1100_v34 = vadd.f32 %v1099_v27, %v1037_v25  ;;  %1495 = vst [vmem:[%s2126_s2 + $0x68] sm:$0xff] %v1391_v29   ;;  %v1386_v35 = vpack.c.bf16 %v467_v30, %v464_v14  ;;  %v967_v37 = vadd.f32 %v966_v24, %v467_v30  ;;  %v1038_v38 = vmul.f32 %v467_v30, %v467_v30 }
 0x11a   :  { %v1600_v39 = vpop.f32.mrf.mxu0  ;;  %1511 = vst [vmem:[%s2126_s2 + $0xe8] sm:$0xff] %v1471_v31   ;;  %v1466_v42 = vpack.c.bf16 %v1982_v32, %v1976_v15  ;;  %v1992_v46 = vpop.f32.mrf.mxu1  ;;  %v1045_v31 = vmul.f32 %v1832_v43, %v1832_v43 }
 0x11b   :  { %1494 = vst [vmem:[%s2126_s2 + $0x60] sm:$0xff] %v1386_v35   ;;  %v968_v49 = vadd.f32 %v1596_v5, %v967_v37  ;;  %v1101_v51 = vadd.f32 %v1100_v34, %v1038_v38  ;;  %v1046_v38 = vmul.f32 %v1838_v50, %v1838_v50 }
 0x11c   :  { %v480_v53 = vpop.f32.mrf.mxu0  ;;  %1510 = vst [vmem:[%s2126_s2 + $0xe0] sm:$0xff] %v1466_v42   ;;  %v2000_v55 = vpop.f32.mrf.mxu1  ;;  %v1047_v42 = vmul.f32 %v1830_v41, %v1830_v41 }
 0x11d   :  { %v1102_v58 = vadd.f32 %v1101_v51, %v1039_v47  ;;  %v969_v59 = vadd.f32 %v1597_v22, %v968_v49  ;;  %v1041_v3 = vmul.f32 %v480_v53, %v480_v53  ;;  %v1043_v22 = vmul.f32 %v1600_v39, %v1600_v39 }
 0x11e   :  { %v1601_v60 = vpop.f32.mrf.mxu0  ;;  %v2002_v0 = vpop.f32.mrf.mxu1  ;;  %v1048_v51 = vmul.f32 %v1834_v45, %v1834_v45 }
 0x11f   :  { %v970_v1 = vadd.f32 %v969_v59, %v480_v53  ;;  %v1103_v4 = vadd.f32 %v1102_v58, %v1040_v57  ;;  %v1401_v6 = vpack.c.bf16 %v1601_v60, %v1600_v39  ;;  %v1481_v5 = vpack.c.bf16 %v2002_v0, %v1992_v46 }
 0x120   :  { %v483_v10 = vpop.f32.mrf.mxu0  ;;  %v2006_v11 = vpop.f32.mrf.mxu1  ;;  %v1044_v27 = vmul.f32 %v1601_v60, %v1601_v60  ;;  %v1049_v58 = vmul.f32 %v1856_v61, %v1856_v61 }
 0x121   :  { %v1104_v12 = vadd.f32 %v1103_v4, %v1041_v3  ;;  %1497 = vst [vmem:[%s2126_s2 + $0x78] sm:$0xff] %v1401_v6   ;;  %v1396_v14 = vpack.c.bf16 %v483_v10, %v480_v53  ;;  %v971_v17 = vadd.f32 %v970_v1, %v483_v10  ;;  %v1042_v18 = vmul.f32 %v483_v10, %v483_v10 }
 0x122   :  { %1513 = vst [vmem:[%s2126_s2 + $0xf8] sm:$0xff] %v1481_v5   ;;  %v1476_v20 = vpack.c.bf16 %v2006_v11, %v2000_v55  ;;  %v1050_v1 = vmul.f32 %v1862_v9, %v1862_v9  ;;  %v1053_v5 = vmul.f32 %v1880_v21, %v1880_v21 }
 0x123   :  { %1496 = vst [vmem:[%s2126_s2 + $0x70] sm:$0xff] %v1396_v14   ;;  %v972_v24 = vadd.f32 %v1600_v39, %v971_v17  ;;  %v1105_v25 = vadd.f32 %v1104_v12, %v1042_v18  ;;  %v1054_v17 = vmul.f32 %v1886_v33, %v1886_v33 }
 0x124   :  { %1512 = vst [vmem:[%s2126_s2 + $0xf0] sm:$0xff] %v1476_v20  }
 0x125   :  { %v973_v29 = vadd.f32 %v1601_v60, %v972_v24  ;;  %v1106_v30 = vadd.f32 %v1105_v25, %v1043_v22  ;;  %v1057_v25 = vmul.f32 %v1904_v48, %v1904_v48 }
 0x127   :  { %v1107_v34 = vadd.f32 %v1106_v30, %v1044_v27  ;;  %v974_v35 = vadd.f32 %v973_v29, %v1832_v43  ;;  %v1058_v30 = vmul.f32 %v1910_v63, %v1910_v63 }
 0x129   :  { %v975_v37 = vadd.f32 %v974_v35, %v1838_v50  ;;  %v1108_v39 = vadd.f32 %v1107_v34, %v1045_v31 }
 0x12b   :  { %v976_v47 = vadd.f32 %v1830_v41, %v975_v37  ;;  %v1109_v49 = vadd.f32 %v1108_v39, %v1046_v38  ;;  %v1051_v41 = vmul.f32 %v1848_v56, %v1848_v56  ;;  %v1061_v38 = vmul.f32 %v1928_v13, %v1928_v13 }
 0x12d   :  { %v1110_v53 = vadd.f32 %v1109_v49, %v1047_v42  ;;  %v977_v57 = vadd.f32 %v1834_v45, %v976_v47  ;;  %v1052_v45 = vmul.f32 %v1858_v2, %v1858_v2  ;;  %v1062_v47 = vmul.f32 %v1934_v28, %v1934_v28 }
 0x12f   :  { %v978_v43 = vadd.f32 %v977_v57, %v1856_v61  ;;  %v1111_v59 = vadd.f32 %v1110_v53, %v1048_v51 }
 0x131   :  { %v1112_v50 = vadd.f32 %v1111_v59, %v1049_v58  ;;  %v979_v60 = vadd.f32 %v978_v43, %v1862_v9  ;;  %v1065_v43 = vmul.f32 %v1952_v44, %v1952_v44 }
 0x133   :  { %v980_v3 = vadd.f32 %v1848_v56, %v979_v60  ;;  %v1113_v4 = vadd.f32 %v1112_v50, %v1050_v1  ;;  %v1055_v56 = vmul.f32 %v1872_v16, %v1872_v16  ;;  %v1066_v50 = vmul.f32 %v1958_v62, %v1958_v62 }
 0x135   :  { %v1114_v6 = vadd.f32 %v1113_v4, %v1051_v41  ;;  %v981_v10 = vadd.f32 %v1858_v2, %v980_v3  ;;  %v1056_v2 = vmul.f32 %v1882_v26, %v1882_v26  ;;  %v1069_v4 = vmul.f32 %v1976_v15, %v1976_v15 }
 0x137   :  { %v982_v61 = vadd.f32 %v981_v10, %v1880_v21  ;;  %v1115_v12 = vadd.f32 %v1114_v6, %v1052_v45  ;;  %v1070_v10 = vmul.f32 %v1982_v32, %v1982_v32 }
 0x139   :  { %v1116_v14 = vadd.f32 %v1115_v12, %v1053_v5  ;;  %v983_v9 = vadd.f32 %v982_v61, %v1886_v33 }
 0x13b   :  { %v984_v18 = vadd.f32 %v1872_v16, %v983_v9  ;;  %v1117_v20 = vadd.f32 %v1116_v14, %v1054_v17  ;;  %v1059_v16 = vmul.f32 %v1896_v40, %v1896_v40  ;;  %v1073_v9 = vmul.f32 %v2000_v55, %v2000_v55 }
 0x13d   :  { %v1118_v22 = vadd.f32 %v1117_v20, %v1055_v56  ;;  %v985_v24 = vadd.f32 %v1882_v26, %v984_v18  ;;  %v1060_v26 = vmul.f32 %v1906_v54, %v1906_v54  ;;  %v1074_v18 = vmul.f32 %v2006_v11, %v2006_v11 }
 0x13f   :  { %v986_v21 = vadd.f32 %v985_v24, %v1904_v48  ;;  %v1119_v27 = vadd.f32 %v1118_v22, %v1056_v2 }
 0x141   :  { %v1120_v29 = vadd.f32 %v1119_v27, %v1057_v25  ;;  %v987_v33 = vadd.f32 %v986_v21, %v1910_v63 }
 0x143   :  { %v988_v31 = vadd.f32 %v1896_v40, %v987_v33  ;;  %v1121_v34 = vadd.f32 %v1120_v29, %v1058_v30  ;;  %v1063_v40 = vmul.f32 %v1920_v7, %v1920_v7 }
 0x145   :  { %v1122_v35 = vadd.f32 %v1121_v34, %v1059_v16  ;;  %v989_v37 = vadd.f32 %v1906_v54, %v988_v31  ;;  %v1064_v54 = vmul.f32 %v1930_v19, %v1930_v19 }
 0x147   :  { %v990_v48 = vadd.f32 %v989_v37, %v1928_v13  ;;  %v1123_v39 = vadd.f32 %v1122_v35, %v1060_v26 }
 0x149   :  { %v1124_v42 = vadd.f32 %v1123_v39, %v1061_v38  ;;  %v991_v63 = vadd.f32 %v990_v48, %v1934_v28 }
 0x14b   :  { %v992_v49 = vadd.f32 %v1920_v7, %v991_v63  ;;  %v1125_v51 = vadd.f32 %v1124_v42, %v1062_v47  ;;  %v1067_v7 = vmul.f32 %v1944_v36, %v1944_v36 }
 0x14d   :  { %v1126_v53 = vadd.f32 %v1125_v51, %v1063_v40  ;;  %v993_v57 = vadd.f32 %v1930_v19, %v992_v49  ;;  %v1068_v19 = vmul.f32 %v1954_v52, %v1954_v52 }
 0x14f   :  { %v994_v13 = vadd.f32 %v993_v57, %v1952_v44  ;;  %v1127_v58 = vadd.f32 %v1126_v53, %v1064_v54 }
 0x151   :  { %v1128_v59 = vadd.f32 %v1127_v58, %v1065_v43  ;;  %v995_v28 = vadd.f32 %v994_v13, %v1958_v62 }
 0x153   :  { %v996_v60 = vadd.f32 %v1944_v36, %v995_v28  ;;  %v1129_v1 = vadd.f32 %v1128_v59, %v1066_v50  ;;  %v1071_v36 = vmul.f32 %v1968_v8, %v1968_v8 }
 0x155   :  { %v1130_v41 = vadd.f32 %v1129_v1, %v1067_v7  ;;  %v997_v3 = vadd.f32 %v1954_v52, %v996_v60  ;;  %v1072_v52 = vmul.f32 %v1978_v23, %v1978_v23 }
 0x157   :  { %v998_v44 = vadd.f32 %v997_v3, %v1976_v15  ;;  %v1131_v45 = vadd.f32 %v1130_v41, %v1068_v19 }
 0x159   :  { %v1132_v6 = vadd.f32 %v1131_v45, %v1069_v4  ;;  %v999_v62 = vadd.f32 %v998_v44, %v1982_v32 }
 0x15b   :  { %v1000_v61 = vadd.f32 %v1968_v8, %v999_v62  ;;  %v1133_v5 = vadd.f32 %v1132_v6, %v1070_v10  ;;  %v1075_v8 = vmul.f32 %v1992_v46, %v1992_v46 }
 0x15d   :  { %v1134_v12 = vadd.f32 %v1133_v5, %v1071_v36  ;;  %v1001_v14 = vadd.f32 %v1978_v23, %v1000_v61  ;;  %v1076_v23 = vmul.f32 %v2002_v0, %v2002_v0 }
 0x15f   :  { %v1002_v15 = vadd.f32 %v1001_v14, %v2000_v55  ;;  %v1135_v17 = vadd.f32 %v1134_v12, %v1072_v52 }
 0x161   :  { %v1136_v56 = vadd.f32 %v1135_v17, %v1073_v9  ;;  %v1003_v32 = vadd.f32 %v1002_v15, %v2006_v11 }
 0x163   :  { %v1004_v20 = vadd.f32 %v1992_v46, %v1003_v32  ;;  %v1137_v2 = vadd.f32 %v1136_v56, %v1074_v18 }
 0x165   :  { %v1005_v22 = vadd.f32 %v2002_v0, %v1004_v20  ;;  %v1138_v24 = vadd.f32 %v1137_v2, %v1075_v8 }
 0x167   :  { %v1006_v55 = vrot.slane %v1005_v22, 4  ;;  %v1139_v21 = vadd.f32 %v1138_v24, %v1076_v23 }
 0x169   :  { %v1007_v25 = vadd.f32 %v1006_v55, %v1005_v22  ;;  %v1140_v27 = vrot.slane %v1139_v21, 4 }
 0x16b   :  { %v1008_v29 = vrot.slane %v1007_v25, 2  ;;  %v1141_v33 = vadd.f32 %v1140_v27, %v1139_v21 }
 0x16d   :  { %v1009_v30 = vadd.f32 %v1008_v29, %v1007_v25  ;;  %v1142_v11 = vrot.slane %v1141_v33, 2 }
 0x16f   :  { %v1010_v16 = vrot.slane %v1009_v30, 1  ;;  %v1143_v31 = vadd.f32 %v1142_v11, %v1141_v33 }
 0x171   :  { %v1011_v34 = vadd.f32 %v1010_v16, %v1009_v30  ;;  %v1144_v26 = vrot.slane %v1143_v31, 1 }
 0x173   :  { %1012 = vst [vmem:[%s2127_s3] sm:$0x1] %v1011_v34  ;;  %v1145_v46 = vadd.f32 %v1144_v26, %v1143_v31 }
 0x175   :  { %1146 = vst [vmem:[%s2127_s3 + $0x1] sm:$0x1] %v1145_v46 }

// kernel: discriminator_forward.10
= control target key start
LH: loop header
LB: loop body
LE: loop exit
PB: predicated region body
PF: predicated region fallthrough
CT: control target
= control target key end

     0   :  { %s1631_s0 = inlined_call_operand.vmem [shape: bf16[512,128], index: 0, kind: input, shape index: {}]   ;;  %s1632_s1 = inlined_call_operand.vmem [shape: f32[1,128], index: 1, kind: input, shape index: {}]   ;;  %s1633_s2 = inlined_call_operand.vmem [shape: f32[1,128], index: 2, kind: input, shape index: {}]   ;;  %s1634_s3 = inlined_call_operand.vmem [shape: bf16[512,128], index: 3, kind: output, shape index: {}]  }
   0x1   :  { %v931_v0 = vld [vmem:[%s1631_s0] sm:$0xff]   ;;  %v1218_v4 = vld [vmem:[%s1631_s0 + $0x8] sm:$0xff]   ;;  %v1219_v5 = vld [vmem:[%s1631_s0 + $0x10] sm:$0xff]  }
   0x2   :  { %v1306_v1 = vld [vmem:[%s1632_s1] ss:$0 sm:$0xff]  ;;  %v932_v2 = vunpack.c.l.bf16 %v931_v0  ;;  %v933_v3 = vunpack.c.h.bf16 %v931_v0  ;;  %v1220_v6 = vld [vmem:[%s1631_s0 + $0x18] sm:$0xff]   ;;  %v936_v8 = vunpack.c.l.bf16 %v1218_v4  ;;  %v937_v9 = vunpack.c.h.bf16 %v1218_v4  ;;  %v1222_v35 = vld [vmem:[%s1631_s0 + $0x28] sm:$0xff]  }
   0x3   :  { %v1320_v7 = vld [vmem:[%s1633_s2] ss:$0 sm:$0xff]  ;;  %v940_v10 = vunpack.c.l.bf16 %v1219_v5  ;;  %v941_v11 = vunpack.c.h.bf16 %v1219_v5  ;;  %v944_v14 = vunpack.c.l.bf16 %v1220_v6  ;;  %v945_v15 = vunpack.c.h.bf16 %v1220_v6  ;;  %v1223_v48 = vld [vmem:[%s1631_s0 + $0x30] sm:$0xff]   ;;  %v1224_v4 = vld [vmem:[%s1631_s0 + $0x38] sm:$0xff]  }
   0x4   :  { %v149_v12 = vmul.f32 %v932_v2, %v1306_v1  ;;  %v150_v13 = vmul.f32 %v933_v3, %v1306_v1  ;;  %v151_v16 = vmul.f32 %v936_v8, %v1306_v1  ;;  %v152_v17 = vmul.f32 %v937_v9, %v1306_v1  ;;  %v1221_v34 = vld [vmem:[%s1631_s0 + $0x20] sm:$0xff]  }
   0x5   :  { %v153_v18 = vmul.f32 %v940_v10, %v1306_v1  ;;  %v154_v19 = vmul.f32 %v941_v11, %v1306_v1  ;;  %v155_v22 = vmul.f32 %v944_v14, %v1306_v1  ;;  %v156_v23 = vmul.f32 %v945_v15, %v1306_v1  ;;  %v1225_v15 = vld [vmem:[%s1631_s0 + $0x40] sm:$0xff]  }
   0x6   :  { %v220_v20 = vadd.f32 %v1320_v7, %v149_v12  ;;  %v221_v21 = vadd.f32 %v1320_v7, %v150_v13  ;;  %v222_v24 = vadd.f32 %v1320_v7, %v151_v16  ;;  %v223_v25 = vadd.f32 %v1320_v7, %v152_v17 }
   0x7   :  { %v224_v26 = vadd.f32 %v1320_v7, %v153_v18  ;;  %v225_v27 = vadd.f32 %v1320_v7, %v154_v19  ;;  %v226_v42 = vadd.f32 %v1320_v7, %v155_v22  ;;  %v227_v43 = vadd.f32 %v1320_v7, %v156_v23 }
   0x8   :  { %vm284_vm0 = vcmp.ge.f32.partialorder %v220_v20, 0.0  ;;  %vm285_vm1 = vcmp.ge.f32.partialorder %v221_v21, 0.0  ;;  %v348_v28 = vmul.f32 0.2, %v220_v20  ;;  %v349_v29 = vmul.f32 0.2, %v221_v21 }
   0x9   :  { %vm286_vm2 = vcmp.ge.f32.partialorder %v222_v24, 0.0  ;;  %vm287_vm3 = vcmp.ge.f32.partialorder %v223_v25, 0.0  ;;  %v350_v30 = vmul.f32 0.2, %v222_v24  ;;  %v351_v31 = vmul.f32 0.2, %v223_v25 }
   0xa   :  { %v412_v32 = vsel %vm284_vm0, %v220_v20, %v348_v28  ;;  %v413_v33 = vsel %vm285_vm1, %v221_v21, %v349_v29  ;;  %vm288_vm4 = vcmp.ge.f32.partialorder %v224_v26, 0.0  ;;  %vm289_vm5 = vcmp.ge.f32.partialorder %v225_v27, 0.0 }
   0xb   :  { %v1061_v36 = vpack.c.bf16 %v413_v33, %v412_v32  ;;  %v414_v37 = vsel %vm286_vm2, %v222_v24, %v350_v30  ;;  %v415_v38 = vsel %vm287_vm3, %v223_v25, %v351_v31  ;;  %v352_v39 = vmul.f32 0.2, %v224_v26 }
   0xc   :  { %v1066_v40 = vpack.c.bf16 %v415_v38, %v414_v37  ;;  %v353_v41 = vmul.f32 0.2, %v225_v27  ;;  %v948_v45 = vunpack.c.l.bf16 %v1221_v34  ;;  %v949_v46 = vunpack.c.h.bf16 %v1221_v34 }
   0xd   :  { %1062 = vst [vmem:[%s1634_s3] sm:$0xff] %v1061_v36   ;;  %v416_v44 = vsel %vm288_vm4, %v224_v26, %v352_v39  ;;  %v952_v47 = vunpack.c.l.bf16 %v1222_v35  ;;  %vm290_vm6 = vcmp.ge.f32.partialorder %v226_v42, 0.0  ;;  %vm291_vm7 = vcmp.ge.f32.partialorder %v227_v43, 0.0  ;;  %v1226_v26 = vld [vmem:[%s1631_s0 + $0x48] sm:$0xff]  }
   0xe   :  { %1249 = vst [vmem:[%s1634_s3 + $0x8] sm:$0xff] %v1066_v40   ;;  %v417_v49 = vsel %vm289_vm5, %v225_v27, %v353_v41  ;;  %v354_v50 = vmul.f32 0.2, %v226_v42  ;;  %v355_v52 = vmul.f32 0.2, %v227_v43  ;;  %v157_v53 = vmul.f32 %v948_v45, %v1306_v1  ;;  %v1227_v27 = vld [vmem:[%s1631_s0 + $0x50] sm:$0xff]  }
   0xf   :  { %v1071_v51 = vpack.c.bf16 %v417_v49, %v416_v44  ;;  %v158_v54 = vmul.f32 %v949_v46, %v1306_v1  ;;  %v953_v56 = vunpack.c.h.bf16 %v1222_v35  ;;  %v159_v57 = vmul.f32 %v952_v47, %v1306_v1 }
  0x10   :  { %v418_v55 = vsel %vm290_vm6, %v226_v42, %v354_v50  ;;  %v956_v58 = vunpack.c.l.bf16 %v1223_v48  ;;  %v419_v59 = vsel %vm291_vm7, %v227_v43, %v355_v52  ;;  %v228_v60 = vadd.f32 %v1320_v7, %v157_v53 }
  0x11   :  { %1250 = vst [vmem:[%s1634_s3 + $0x10] sm:$0xff] %v1071_v51   ;;  %v229_v61 = vadd.f32 %v1320_v7, %v158_v54  ;;  %v957_v62 = vunpack.c.h.bf16 %v1223_v48  ;;  %v1076_v63 = vpack.c.bf16 %v419_v59, %v418_v55  ;;  %v160_v0 = vmul.f32 %v953_v56, %v1306_v1  ;;  %v1228_v55 = vld [vmem:[%s1631_s0 + $0x58] sm:$0xff]  }
  0x12   :  { %v230_v2 = vadd.f32 %v1320_v7, %v159_v57  ;;  %v161_v3 = vmul.f32 %v956_v58, %v1306_v1  ;;  %vm292_vm8 = vcmp.ge.f32.partialorder %v228_v60, 0.0  ;;  %v356_v5 = vmul.f32 0.2, %v228_v60 }
  0x13   :  { %vm293_vm9 = vcmp.ge.f32.partialorder %v229_v61, 0.0  ;;  %v357_v6 = vmul.f32 0.2, %v229_v61  ;;  %1251 = vst [vmem:[%s1634_s3 + $0x18] sm:$0xff] %v1076_v63   ;;  %v231_v8 = vadd.f32 %v1320_v7, %v160_v0  ;;  %v162_v10 = vmul.f32 %v957_v62, %v1306_v1 }
  0x14   :  { %vm294_vm10 = vcmp.ge.f32.partialorder %v230_v2, 0.0  ;;  %v358_v9 = vmul.f32 0.2, %v230_v2  ;;  %v420_v11 = vsel %vm292_vm8, %v228_v60, %v356_v5  ;;  %v232_v13 = vadd.f32 %v1320_v7, %v161_v3  ;;  %v1229_v60 = vld [vmem:[%s1631_s0 + $0x60] sm:$0xff]  }
  0x15   :  { %v421_v12 = vsel %vm293_vm9, %v229_v61, %v357_v6  ;;  %v960_v14 = vunpack.c.l.bf16 %v1224_v4  ;;  %vm295_vm11 = vcmp.ge.f32.partialorder %v231_v8, 0.0  ;;  %v359_v17 = vmul.f32 0.2, %v231_v8 }
  0x16   :  { %v1081_v16 = vpack.c.bf16 %v421_v12, %v420_v11  ;;  %v422_v18 = vsel %vm294_vm10, %v230_v2, %v358_v9  ;;  %v233_v19 = vadd.f32 %v1320_v7, %v162_v10  ;;  %vm296_vm12 = vcmp.ge.f32.partialorder %v232_v13, 0.0  ;;  %v1230_v9 = vld [vmem:[%s1631_s0 + $0x68] sm:$0xff]  }
  0x17   :  { %v360_v20 = vmul.f32 0.2, %v232_v13  ;;  %v961_v21 = vunpack.c.h.bf16 %v1224_v4  ;;  %v423_v22 = vsel %vm295_vm11, %v231_v8, %v359_v17  ;;  %v163_v23 = vmul.f32 %v960_v14, %v1306_v1 }
  0x18   :  { %1252 = vst [vmem:[%s1634_s3 + $0x20] sm:$0xff] %v1081_v16   ;;  %v964_v24 = vunpack.c.l.bf16 %v1225_v15  ;;  %v965_v25 = vunpack.c.h.bf16 %v1225_v15  ;;  %v1086_v28 = vpack.c.bf16 %v423_v22, %v422_v18  ;;  %vm297_vm13 = vcmp.ge.f32.partialorder %v233_v19, 0.0 }
  0x19   :  { %v361_v29 = vmul.f32 0.2, %v233_v19  ;;  %v424_v30 = vsel %vm296_vm12, %v232_v13, %v360_v20  ;;  %v164_v31 = vmul.f32 %v961_v21, %v1306_v1  ;;  %v234_v32 = vadd.f32 %v1320_v7, %v163_v23 }
  0x1a   :  { %v165_v33 = vmul.f32 %v964_v24, %v1306_v1  ;;  %v166_v34 = vmul.f32 %v965_v25, %v1306_v1  ;;  %1253 = vst [vmem:[%s1634_s3 + $0x28] sm:$0xff] %v1086_v28   ;;  %v968_v36 = vunpack.c.l.bf16 %v1226_v26  ;;  %v969_v37 = vunpack.c.h.bf16 %v1226_v26  ;;  %v1231_v28 = vld [vmem:[%s1631_s0 + $0x70] sm:$0xff]  }
  0x1b   :  { %v425_v35 = vsel %vm297_vm13, %v233_v19, %v361_v29  ;;  %v972_v38 = vunpack.c.l.bf16 %v1227_v27  ;;  %v235_v40 = vadd.f32 %v1320_v7, %v164_v31  ;;  %vm298_vm14 = vcmp.ge.f32.partialorder %v234_v32, 0.0 }
  0x1c   :  { %v1091_v39 = vpack.c.bf16 %v425_v35, %v424_v30  ;;  %v362_v41 = vmul.f32 0.2, %v234_v32  ;;  %v236_v42 = vadd.f32 %v1320_v7, %v165_v33  ;;  %v237_v43 = vadd.f32 %v1320_v7, %v166_v34 }
  0x1d   :  { %v167_v44 = vmul.f32 %v968_v36, %v1306_v1  ;;  %v168_v45 = vmul.f32 %v969_v37, %v1306_v1  ;;  %vm299_vm15 = vcmp.ge.f32.partialorder %v235_v40, 0.0  ;;  %v363_v46 = vmul.f32 0.2, %v235_v40  ;;  %v1232_v37 = vld [vmem:[%s1631_s0 + $0x78] sm:$0xff]  }
  0x1e   :  { %1254 = vst [vmem:[%s1634_s3 + $0x30] sm:$0xff] %v1091_v39   ;;  %v426_v47 = vsel %vm298_vm14, %v234_v32, %v362_v41  ;;  %v973_v48 = vunpack.c.h.bf16 %v1227_v27  ;;  %vm300_vm0 = vcmp.ge.f32.partialorder %v236_v42, 0.0  ;;  %vm301_vm1 = vcmp.ge.f32.partialorder %v237_v43, 0.0 }
  0x1f   :  { %v364_v49 = vmul.f32 0.2, %v236_v42  ;;  %v365_v50 = vmul.f32 0.2, %v237_v43  ;;  %v427_v51 = vsel %vm299_vm15, %v235_v40, %v363_v46  ;;  %v238_v52 = vadd.f32 %v1320_v7, %v167_v44 }
  0x20   :  { %v239_v53 = vadd.f32 %v1320_v7, %v168_v45  ;;  %v169_v54 = vmul.f32 %v972_v38, %v1306_v1  ;;  %v1096_v56 = vpack.c.bf16 %v427_v51, %v426_v47  ;;  %v170_v59 = vmul.f32 %v973_v48, %v1306_v1 }
  0x21   :  { %v428_v57 = vsel %vm300_vm0, %v236_v42, %v364_v49  ;;  %v429_v58 = vsel %vm301_vm1, %v237_v43, %v365_v50  ;;  %vm302_vm2 = vcmp.ge.f32.partialorder %v238_v52, 0.0  ;;  %v366_v62 = vmul.f32 0.2, %v238_v52  ;;  %v1233_v42 = vld [vmem:[%s1631_s0 + $0x80] sm:$0xff]   ;;  %v1234_v50 = vld [vmem:[%s1631_s0 + $0x88] sm:$0xff]  }
  0x22   :  { %v1101_v61 = vpack.c.bf16 %v429_v58, %v428_v57  ;;  %vm303_vm3 = vcmp.ge.f32.partialorder %v239_v53, 0.0  ;;  %1255 = vst [vmem:[%s1634_s3 + $0x38] sm:$0xff] %v1096_v56   ;;  %v367_v63 = vmul.f32 0.2, %v239_v53  ;;  %v240_v0 = vadd.f32 %v1320_v7, %v169_v54 }
  0x23   :  { %v241_v2 = vadd.f32 %v1320_v7, %v170_v59  ;;  %v976_v3 = vunpack.c.l.bf16 %v1228_v55  ;;  %v430_v4 = vsel %vm302_vm2, %v238_v52, %v366_v62  ;;  %v977_v5 = vunpack.c.h.bf16 %v1228_v55 }
  0x24   :  { %1256 = vst [vmem:[%s1634_s3 + $0x40] sm:$0xff] %v1101_v61   ;;  %v980_v6 = vunpack.c.l.bf16 %v1229_v60  ;;  %v981_v8 = vunpack.c.h.bf16 %v1229_v60  ;;  %v431_v10 = vsel %vm303_vm3, %v239_v53, %v367_v63  ;;  %vm304_vm4 = vcmp.ge.f32.partialorder %v240_v0, 0.0 }
  0x25   :  { %vm305_vm5 = vcmp.ge.f32.partialorder %v241_v2, 0.0  ;;  %v368_v11 = vmul.f32 0.2, %v240_v0  ;;  %v1106_v12 = vpack.c.bf16 %v431_v10, %v430_v4  ;;  %v369_v13 = vmul.f32 0.2, %v241_v2 }
  0x26   :  { %v171_v14 = vmul.f32 %v976_v3, %v1306_v1  ;;  %v172_v15 = vmul.f32 %v977_v5, %v1306_v1  ;;  %v173_v17 = vmul.f32 %v980_v6, %v1306_v1  ;;  %v174_v18 = vmul.f32 %v981_v8, %v1306_v1 }
  0x27   :  { %v432_v16 = vsel %vm304_vm4, %v240_v0, %v368_v11  ;;  %v984_v19 = vunpack.c.l.bf16 %v1230_v9  ;;  %1257 = vst [vmem:[%s1634_s3 + $0x48] sm:$0xff] %v1106_v12   ;;  %v433_v20 = vsel %vm305_vm5, %v241_v2, %v369_v13  ;;  %v985_v23 = vunpack.c.h.bf16 %v1230_v9 }
  0x28   :  { %v242_v21 = vadd.f32 %v1320_v7, %v171_v14  ;;  %v243_v22 = vadd.f32 %v1320_v7, %v172_v15  ;;  %v1111_v24 = vpack.c.bf16 %v433_v20, %v432_v16  ;;  %v244_v25 = vadd.f32 %v1320_v7, %v173_v17  ;;  %v1235_v15 = vld [vmem:[%s1631_s0 + $0x90] sm:$0xff]   ;;  %v1236_v20 = vld [vmem:[%s1631_s0 + $0x98] sm:$0xff]  }
  0x29   :  { %v245_v26 = vadd.f32 %v1320_v7, %v174_v18  ;;  %v175_v27 = vmul.f32 %v984_v19, %v1306_v1  ;;  %v176_v35 = vmul.f32 %v985_v23, %v1306_v1  ;;  %v988_v41 = vunpack.c.l.bf16 %v1231_v28 }
  0x2a   :  { %vm306_vm6 = vcmp.ge.f32.partialorder %v242_v21, 0.0  ;;  %vm307_vm7 = vcmp.ge.f32.partialorder %v243_v22, 0.0  ;;  %v370_v29 = vmul.f32 0.2, %v242_v21  ;;  %v371_v30 = vmul.f32 0.2, %v243_v22 }
  0x2b   :  { %1258 = vst [vmem:[%s1634_s3 + $0x50] sm:$0xff] %v1111_v24   ;;  %vm308_vm8 = vcmp.ge.f32.partialorder %v244_v25, 0.0  ;;  %vm309_vm9 = vcmp.ge.f32.partialorder %v245_v26, 0.0  ;;  %v372_v31 = vmul.f32 0.2, %v244_v25  ;;  %v246_v36 = vadd.f32 %v1320_v7, %v175_v27 }
  0x2c   :  { %v373_v32 = vmul.f32 0.2, %v245_v26  ;;  %v434_v33 = vsel %vm306_vm6, %v242_v21, %v370_v29  ;;  %v435_v34 = vsel %vm307_vm7, %v243_v22, %v371_v30  ;;  %v247_v44 = vadd.f32 %v1320_v7, %v176_v35  ;;  %v1237_v21 = vld [vmem:[%s1631_s0 + $0xa0] sm:$0xff]  }
  0x2d   :  { %v1116_v38 = vpack.c.bf16 %v435_v34, %v434_v33  ;;  %v436_v39 = vsel %vm308_vm8, %v244_v25, %v372_v31  ;;  %vm310_vm10 = vcmp.ge.f32.partialorder %v246_v36, 0.0  ;;  %v374_v45 = vmul.f32 0.2, %v246_v36 }
  0x2e   :  { %v437_v40 = vsel %vm309_vm9, %v245_v26, %v373_v32  ;;  %v989_v46 = vunpack.c.h.bf16 %v1231_v28  ;;  %v177_v47 = vmul.f32 %v988_v41, %v1306_v1  ;;  %v992_v48 = vunpack.c.l.bf16 %v1232_v37 }
  0x2f   :  { %v1121_v43 = vpack.c.bf16 %v437_v40, %v436_v39  ;;  %1259 = vst [vmem:[%s1634_s3 + $0x58] sm:$0xff] %v1116_v38   ;;  %v993_v49 = vunpack.c.h.bf16 %v1232_v37  ;;  %vm311_vm11 = vcmp.ge.f32.partialorder %v247_v44, 0.0  ;;  %v375_v51 = vmul.f32 0.2, %v247_v44  ;;  %v1238_v40 = vld [vmem:[%s1631_s0 + $0xa8] sm:$0xff]  }
  0x30   :  { %v438_v52 = vsel %vm310_vm10, %v246_v36, %v374_v45  ;;  %v996_v53 = vunpack.c.l.bf16 %v1233_v42  ;;  %v178_v54 = vmul.f32 %v989_v46, %v1306_v1  ;;  %v248_v55 = vadd.f32 %v1320_v7, %v177_v47 }
  0x31   :  { %1260 = vst [vmem:[%s1634_s3 + $0x60] sm:$0xff] %v1121_v43   ;;  %v179_v56 = vmul.f32 %v992_v48, %v1306_v1  ;;  %v180_v57 = vmul.f32 %v993_v49, %v1306_v1  ;;  %v439_v58 = vsel %vm311_vm11, %v247_v44, %v375_v51  ;;  %v997_v59 = vunpack.c.h.bf16 %v1233_v42 }
  0x32   :  { %v181_v60 = vmul.f32 %v996_v53, %v1306_v1  ;;  %v1000_v61 = vunpack.c.l.bf16 %v1234_v50  ;;  %v1126_v62 = vpack.c.bf16 %v439_v58, %v438_v52  ;;  %v249_v63 = vadd.f32 %v1320_v7, %v178_v54 }
  0x33   :  { %vm312_vm12 = vcmp.ge.f32.partialorder %v248_v55, 0.0  ;;  %v376_v0 = vmul.f32 0.2, %v248_v55  ;;  %v250_v2 = vadd.f32 %v1320_v7, %v179_v56  ;;  %v251_v3 = vadd.f32 %v1320_v7, %v180_v57 }
  0x34   :  { %v182_v4 = vmul.f32 %v997_v59, %v1306_v1  ;;  %v252_v5 = vadd.f32 %v1320_v7, %v181_v60  ;;  %1261 = vst [vmem:[%s1634_s3 + $0x68] sm:$0xff] %v1126_v62   ;;  %vm313_vm13 = vcmp.ge.f32.partialorder %v249_v63, 0.0  ;;  %v377_v6 = vmul.f32 0.2, %v249_v63 }
  0x35   :  { %v440_v8 = vsel %vm312_vm12, %v248_v55, %v376_v0  ;;  %v1001_v9 = vunpack.c.h.bf16 %v1234_v50  ;;  %vm314_vm14 = vcmp.ge.f32.partialorder %v250_v2, 0.0  ;;  %vm315_vm15 = vcmp.ge.f32.partialorder %v251_v3, 0.0  ;;  %v1239_v0 = vld [vmem:[%s1631_s0 + $0xb0] sm:$0xff]  }
  0x36   :  { %v378_v10 = vmul.f32 0.2, %v250_v2  ;;  %v379_v11 = vmul.f32 0.2, %v251_v3  ;;  %v441_v12 = vsel %vm313_vm13, %v249_v63, %v377_v6  ;;  %v253_v13 = vadd.f32 %v1320_v7, %v182_v4 }
  0x37   :  { %vm316_vm0 = vcmp.ge.f32.partialorder %v252_v5, 0.0  ;;  %v380_v14 = vmul.f32 0.2, %v252_v5  ;;  %v1131_v16 = vpack.c.bf16 %v441_v12, %v440_v8  ;;  %v183_v19 = vmul.f32 %v1000_v61, %v1306_v1 }
  0x38   :  { %v442_v17 = vsel %vm314_vm14, %v250_v2, %v378_v10  ;;  %v443_v18 = vsel %vm315_vm15, %v251_v3, %v379_v11  ;;  %vm317_vm1 = vcmp.ge.f32.partialorder %v253_v13, 0.0  ;;  %v381_v23 = vmul.f32 0.2, %v253_v13  ;;  %v1240_v2 = vld [vmem:[%s1631_s0 + $0xb8] sm:$0xff]  }
  0x39   :  { %v1136_v22 = vpack.c.bf16 %v443_v18, %v442_v17  ;;  %v444_v24 = vsel %vm316_vm0, %v252_v5, %v380_v14  ;;  %1262 = vst [vmem:[%s1634_s3 + $0x70] sm:$0xff] %v1131_v16   ;;  %v184_v25 = vmul.f32 %v1001_v9, %v1306_v1  ;;  %v254_v26 = vadd.f32 %v1320_v7, %v183_v19  ;;  %v1241_v18 = vld [vmem:[%s1631_s0 + $0xc0] sm:$0xff]  }
  0x3a   :  { %v1004_v27 = vunpack.c.l.bf16 %v1235_v15  ;;  %v1005_v28 = vunpack.c.h.bf16 %v1235_v15  ;;  %v445_v29 = vsel %vm317_vm1, %v253_v13, %v381_v23  ;;  %v1008_v30 = vunpack.c.l.bf16 %v1236_v20 }
  0x3b   :  { %1263 = vst [vmem:[%s1634_s3 + $0x78] sm:$0xff] %v1136_v22   ;;  %v1009_v31 = vunpack.c.h.bf16 %v1236_v20  ;;  %v1012_v32 = vunpack.c.l.bf16 %v1237_v21  ;;  %v1141_v33 = vpack.c.bf16 %v445_v29, %v444_v24  ;;  %v255_v34 = vadd.f32 %v1320_v7, %v184_v25 }
  0x3c   :  { %vm318_vm2 = vcmp.ge.f32.partialorder %v254_v26, 0.0  ;;  %v382_v35 = vmul.f32 0.2, %v254_v26  ;;  %v185_v36 = vmul.f32 %v1004_v27, %v1306_v1  ;;  %v186_v37 = vmul.f32 %v1005_v28, %v1306_v1 }
  0x3d   :  { %v187_v38 = vmul.f32 %v1008_v30, %v1306_v1  ;;  %v188_v39 = vmul.f32 %v1009_v31, %v1306_v1  ;;  %1264 = vst [vmem:[%s1634_s3 + $0x80] sm:$0xff] %v1141_v33   ;;  %vm319_vm3 = vcmp.ge.f32.partialorder %v255_v34, 0.0  ;;  %v383_v41 = vmul.f32 0.2, %v255_v34 }
  0x3e   :  { %v446_v42 = vsel %vm318_vm2, %v254_v26, %v382_v35  ;;  %v1013_v43 = vunpack.c.h.bf16 %v1237_v21  ;;  %v256_v44 = vadd.f32 %v1320_v7, %v185_v36  ;;  %v257_v45 = vadd.f32 %v1320_v7, %v186_v37  ;;  %v1242_v36 = vld [vmem:[%s1631_s0 + $0xc8] sm:$0xff]  }
  0x3f   :  { %v258_v46 = vadd.f32 %v1320_v7, %v187_v38  ;;  %v259_v47 = vadd.f32 %v1320_v7, %v188_v39  ;;  %v447_v48 = vsel %vm319_vm3, %v255_v34, %v383_v41  ;;  %v189_v49 = vmul.f32 %v1012_v32, %v1306_v1 }
  0x40   :  { %v190_v50 = vmul.f32 %v1013_v43, %v1306_v1  ;;  %v1016_v51 = vunpack.c.l.bf16 %v1238_v40  ;;  %v1146_v52 = vpack.c.bf16 %v447_v48, %v446_v42  ;;  %vm320_vm4 = vcmp.ge.f32.partialorder %v256_v44, 0.0  ;;  %v1243_v42 = vld [vmem:[%s1631_s0 + $0xd0] sm:$0xff]  }
  0x41   :  { %vm321_vm5 = vcmp.ge.f32.partialorder %v257_v45, 0.0  ;;  %v384_v53 = vmul.f32 0.2, %v256_v44  ;;  %v385_v54 = vmul.f32 0.2, %v257_v45  ;;  %vm322_vm6 = vcmp.ge.f32.partialorder %v258_v46, 0.0 }
  0x42   :  { %vm323_vm7 = vcmp.ge.f32.partialorder %v259_v47, 0.0  ;;  %v386_v55 = vmul.f32 0.2, %v258_v46  ;;  %1265 = vst [vmem:[%s1634_s3 + $0x88] sm:$0xff] %v1146_v52   ;;  %v387_v57 = vmul.f32 0.2, %v259_v47  ;;  %v260_v58 = vadd.f32 %v1320_v7, %v189_v49 }
  0x43   :  { %v448_v56 = vsel %vm320_vm4, %v256_v44, %v384_v53  ;;  %v261_v59 = vadd.f32 %v1320_v7, %v190_v50  ;;  %v449_v60 = vsel %vm321_vm5, %v257_v45, %v385_v54  ;;  %v1017_v62 = vunpack.c.h.bf16 %v1238_v40 }
  0x44   :  { %v450_v61 = vsel %vm322_vm6, %v258_v46, %v386_v55  ;;  %v191_v63 = vmul.f32 %v1016_v51, %v1306_v1  ;;  %v1151_v3 = vpack.c.bf16 %v449_v60, %v448_v56  ;;  %v451_v4 = vsel %vm323_vm7, %v259_v47, %v387_v57  ;;  %v1244_v55 = vld [vmem:[%s1631_s0 + $0xd8] sm:$0xff]  }
  0x45   :  { %vm324_vm8 = vcmp.ge.f32.partialorder %v260_v58, 0.0  ;;  %vm325_vm9 = vcmp.ge.f32.partialorder %v261_v59, 0.0  ;;  %v1156_v5 = vpack.c.bf16 %v451_v4, %v450_v61  ;;  %v388_v6 = vmul.f32 0.2, %v260_v58 }
  0x46   :  { %v389_v8 = vmul.f32 0.2, %v261_v59  ;;  %v192_v9 = vmul.f32 %v1017_v62, %v1306_v1  ;;  %1266 = vst [vmem:[%s1634_s3 + $0x90] sm:$0xff] %v1151_v3   ;;  %v262_v10 = vadd.f32 %v1320_v7, %v191_v63  ;;  %v1020_v11 = vunpack.c.l.bf16 %v1239_v0 }
  0x47   :  { %v1021_v12 = vunpack.c.h.bf16 %v1239_v0  ;;  %v1024_v13 = vunpack.c.l.bf16 %v1240_v2  ;;  %1267 = vst [vmem:[%s1634_s3 + $0x98] sm:$0xff] %v1156_v5   ;;  %v452_v14 = vsel %vm324_vm8, %v260_v58, %v388_v6  ;;  %v1025_v17 = vunpack.c.h.bf16 %v1240_v2 }
  0x48   :  { %v453_v15 = vsel %vm325_vm9, %v261_v59, %v389_v8  ;;  %v263_v16 = vadd.f32 %v1320_v7, %v192_v9  ;;  %vm326_vm10 = vcmp.ge.f32.partialorder %v262_v10, 0.0  ;;  %v390_v20 = vmul.f32 0.2, %v262_v10 }
  0x49   :  { %v1161_v19 = vpack.c.bf16 %v453_v15, %v452_v14  ;;  %v193_v21 = vmul.f32 %v1020_v11, %v1306_v1  ;;  %v194_v23 = vmul.f32 %v1021_v12, %v1306_v1  ;;  %v195_v24 = vmul.f32 %v1024_v13, %v1306_v1  ;;  %v1246_v14 = vld [vmem:[%s1631_s0 + $0xe8] sm:$0xff]  }
  0x4a   :  { %vm327_vm11 = vcmp.ge.f32.partialorder %v263_v16, 0.0  ;;  %v391_v22 = vmul.f32 0.2, %v263_v16  ;;  %v454_v25 = vsel %vm326_vm10, %v262_v10, %v390_v20  ;;  %v196_v27 = vmul.f32 %v1025_v17, %v1306_v1  ;;  %v1245_v10 = vld [vmem:[%s1631_s0 + $0xe0] sm:$0xff]  }
  0x4b   :  { %1268 = vst [vmem:[%s1634_s3 + $0xa0] sm:$0xff] %v1161_v19   ;;  %v264_v26 = vadd.f32 %v1320_v7, %v193_v21  ;;  %v1028_v28 = vunpack.c.l.bf16 %v1241_v18  ;;  %v265_v30 = vadd.f32 %v1320_v7, %v194_v23  ;;  %v266_v31 = vadd.f32 %v1320_v7, %v195_v24 }
  0x4c   :  { %v455_v29 = vsel %vm327_vm11, %v263_v16, %v391_v22  ;;  %v1029_v32 = vunpack.c.h.bf16 %v1241_v18  ;;  %v267_v35 = vadd.f32 %v1320_v7, %v196_v27  ;;  %v1032_v46 = vunpack.c.l.bf16 %v1242_v36 }
  0x4d   :  { %v1166_v33 = vpack.c.bf16 %v455_v29, %v454_v25  ;;  %vm328_vm12 = vcmp.ge.f32.partialorder %v264_v26, 0.0  ;;  %v392_v34 = vmul.f32 0.2, %v264_v26  ;;  %vm329_vm13 = vcmp.ge.f32.partialorder %v265_v30, 0.0 }
  0x4e   :  { %v393_v37 = vmul.f32 0.2, %v265_v30  ;;  %vm330_vm14 = vcmp.ge.f32.partialorder %v266_v31, 0.0  ;;  %v394_v38 = vmul.f32 0.2, %v266_v31  ;;  %vm331_vm15 = vcmp.ge.f32.partialorder %v267_v35, 0.0 }
  0x4f   :  { %1269 = vst [vmem:[%s1634_s3 + $0xa8] sm:$0xff] %v1166_v33   ;;  %v456_v39 = vsel %vm328_vm12, %v264_v26, %v392_v34  ;;  %v395_v40 = vmul.f32 0.2, %v267_v35  ;;  %v197_v41 = vmul.f32 %v1028_v28, %v1306_v1  ;;  %v198_v45 = vmul.f32 %v1029_v32, %v1306_v1 }
  0x50   :  { %v457_v43 = vsel %vm329_vm13, %v265_v30, %v393_v37  ;;  %v458_v44 = vsel %vm330_vm14, %v266_v31, %v394_v38  ;;  %v1033_v50 = vunpack.c.h.bf16 %v1242_v36  ;;  %v199_v53 = vmul.f32 %v1032_v46, %v1306_v1  ;;  %v1247_v30 = vld [vmem:[%s1631_s0 + $0xf0] sm:$0xff]  }
  0x51   :  { %v1171_v47 = vpack.c.bf16 %v457_v43, %v456_v39  ;;  %v459_v48 = vsel %vm331_vm15, %v267_v35, %v395_v40  ;;  %v268_v49 = vadd.f32 %v1320_v7, %v197_v41  ;;  %v269_v52 = vadd.f32 %v1320_v7, %v198_v45 }
  0x52   :  { %v1176_v51 = vpack.c.bf16 %v459_v48, %v458_v44  ;;  %v1036_v54 = vunpack.c.l.bf16 %v1243_v42  ;;  %v200_v57 = vmul.f32 %v1033_v50, %v1306_v1  ;;  %v1037_v58 = vunpack.c.h.bf16 %v1243_v42  ;;  %v1248_v44 = vld [vmem:[%s1631_s0 + $0xf8] sm:$0xff]  }
  0x53   :  { %1270 = vst [vmem:[%s1634_s3 + $0xb0] sm:$0xff] %v1171_v47   ;;  %vm332_vm0 = vcmp.ge.f32.partialorder %v268_v49, 0.0  ;;  %v396_v56 = vmul.f32 0.2, %v268_v49  ;;  %vm333_vm1 = vcmp.ge.f32.partialorder %v269_v52, 0.0  ;;  %v270_v60 = vadd.f32 %v1320_v7, %v199_v53 }
  0x54   :  { %1271 = vst [vmem:[%s1634_s3 + $0xb8] sm:$0xff] %v1176_v51   ;;  %v397_v59 = vmul.f32 0.2, %v269_v52  ;;  %v201_v61 = vmul.f32 %v1036_v54, %v1306_v1  ;;  %v271_v63 = vadd.f32 %v1320_v7, %v200_v57  ;;  %v202_v0 = vmul.f32 %v1037_v58, %v1306_v1 }
  0x55   :  { %v460_v62 = vsel %vm332_vm0, %v268_v49, %v396_v56  ;;  %v1040_v2 = vunpack.c.l.bf16 %v1244_v55  ;;  %vm334_vm2 = vcmp.ge.f32.partialorder %v270_v60, 0.0  ;;  %v398_v4 = vmul.f32 0.2, %v270_v60 }
  0x56   :  { %v461_v3 = vsel %vm333_vm1, %v269_v52, %v397_v59  ;;  %v272_v5 = vadd.f32 %v1320_v7, %v201_v61  ;;  %vm335_vm3 = vcmp.ge.f32.partialorder %v271_v63, 0.0  ;;  %v399_v8 = vmul.f32 0.2, %v271_v63 }
  0x57   :  { %v1181_v6 = vpack.c.bf16 %v461_v3, %v460_v62  ;;  %v273_v9 = vadd.f32 %v1320_v7, %v202_v0  ;;  %v462_v11 = vsel %vm334_vm2, %v270_v60, %v398_v4  ;;  %v1041_v13 = vunpack.c.h.bf16 %v1244_v55 }
  0x58   :  { %vm336_vm4 = vcmp.ge.f32.partialorder %v272_v5, 0.0  ;;  %v400_v12 = vmul.f32 0.2, %v272_v5  ;;  %v463_v15 = vsel %vm335_vm3, %v271_v63, %v399_v8  ;;  %v203_v17 = vmul.f32 %v1040_v2, %v1306_v1 }
  0x59   :  { %1272 = vst [vmem:[%s1634_s3 + $0xc0] sm:$0xff] %v1181_v6   ;;  %vm337_vm5 = vcmp.ge.f32.partialorder %v273_v9, 0.0  ;;  %v401_v16 = vmul.f32 0.2, %v273_v9  ;;  %v1186_v18 = vpack.c.bf16 %v463_v15, %v462_v11  ;;  %v204_v20 = vmul.f32 %v1041_v13, %v1306_v1 }
  0x5a   :  { %v464_v19 = vsel %vm336_vm4, %v272_v5, %v400_v12  ;;  %v1044_v21 = vunpack.c.l.bf16 %v1245_v10  ;;  %v274_v23 = vadd.f32 %v1320_v7, %v203_v17  ;;  %v1045_v24 = vunpack.c.h.bf16 %v1245_v10 }
  0x5b   :  { %v465_v22 = vsel %vm337_vm5, %v273_v9, %v401_v16  ;;  %v1048_v25 = vunpack.c.l.bf16 %v1246_v14  ;;  %1273 = vst [vmem:[%s1634_s3 + $0xc8] sm:$0xff] %v1186_v18   ;;  %v275_v27 = vadd.f32 %v1320_v7, %v204_v20  ;;  %v1049_v29 = vunpack.c.h.bf16 %v1246_v14 }
  0x5c   :  { %v1191_v26 = vpack.c.bf16 %v465_v22, %v464_v19  ;;  %v205_v28 = vmul.f32 %v1044_v21, %v1306_v1  ;;  %vm338_vm6 = vcmp.ge.f32.partialorder %v274_v23, 0.0  ;;  %v402_v31 = vmul.f32 0.2, %v274_v23 }
  0x5d   :  { %v206_v32 = vmul.f32 %v1045_v24, %v1306_v1  ;;  %v207_v33 = vmul.f32 %v1048_v25, %v1306_v1  ;;  %vm339_vm7 = vcmp.ge.f32.partialorder %v275_v27, 0.0  ;;  %v403_v34 = vmul.f32 0.2, %v275_v27 }
  0x5e   :  { %1274 = vst [vmem:[%s1634_s3 + $0xd0] sm:$0xff] %v1191_v26   ;;  %v276_v35 = vadd.f32 %v1320_v7, %v205_v28  ;;  %v208_v36 = vmul.f32 %v1049_v29, %v1306_v1  ;;  %v466_v37 = vsel %vm338_vm6, %v274_v23, %v402_v31  ;;  %v1052_v40 = vunpack.c.l.bf16 %v1247_v30 }
  0x5f   :  { %v277_v38 = vadd.f32 %v1320_v7, %v206_v32  ;;  %v278_v39 = vadd.f32 %v1320_v7, %v207_v33  ;;  %v467_v41 = vsel %vm339_vm7, %v275_v27, %v403_v34  ;;  %v1053_v51 = vunpack.c.h.bf16 %v1247_v30 }
  0x60   :  { %vm340_vm8 = vcmp.ge.f32.partialorder %v276_v35, 0.0  ;;  %v404_v42 = vmul.f32 0.2, %v276_v35  ;;  %v279_v43 = vadd.f32 %v1320_v7, %v208_v36  ;;  %v1196_v45 = vpack.c.bf16 %v467_v41, %v466_v37 }
  0x61   :  { %vm341_vm9 = vcmp.ge.f32.partialorder %v277_v38, 0.0  ;;  %v405_v46 = vmul.f32 0.2, %v277_v38  ;;  %vm342_vm10 = vcmp.ge.f32.partialorder %v278_v39, 0.0  ;;  %v406_v48 = vmul.f32 0.2, %v278_v39 }
  0x62   :  { %v468_v47 = vsel %vm340_vm8, %v276_v35, %v404_v42  ;;  %vm343_vm11 = vcmp.ge.f32.partialorder %v279_v43, 0.0  ;;  %v407_v49 = vmul.f32 0.2, %v279_v43  ;;  %1275 = vst [vmem:[%s1634_s3 + $0xd8] sm:$0xff] %v1196_v45   ;;  %v209_v52 = vmul.f32 %v1052_v40, %v1306_v1 }
  0x63   :  { %v469_v50 = vsel %vm341_vm9, %v277_v38, %v405_v46  ;;  %v1056_v53 = vunpack.c.l.bf16 %v1248_v44  ;;  %v470_v55 = vsel %vm342_vm10, %v278_v39, %v406_v48  ;;  %v1057_v57 = vunpack.c.h.bf16 %v1248_v44 }
  0x64   :  { %v1201_v54 = vpack.c.bf16 %v469_v50, %v468_v47  ;;  %v471_v56 = vsel %vm343_vm11, %v279_v43, %v407_v49  ;;  %v210_v59 = vmul.f32 %v1053_v51, %v1306_v1  ;;  %v280_v60 = vadd.f32 %v1320_v7, %v209_v52 }
  0x65   :  { %v1206_v58 = vpack.c.bf16 %v471_v56, %v470_v55  ;;  %v211_v61 = vmul.f32 %v1056_v53, %v1306_v1  ;;  %v212_v62 = vmul.f32 %v1057_v57, %v1306_v1 }
  0x66   :  { %1276 = vst [vmem:[%s1634_s3 + $0xe0] sm:$0xff] %v1201_v54   ;;  %v281_v63 = vadd.f32 %v1320_v7, %v210_v59  ;;  %vm344_vm12 = vcmp.ge.f32.partialorder %v280_v60, 0.0  ;;  %v408_v0 = vmul.f32 0.2, %v280_v60 }
  0x67   :  { %1277 = vst [vmem:[%s1634_s3 + $0xe8] sm:$0xff] %v1206_v58   ;;  %v282_v2 = vadd.f32 %v1320_v7, %v211_v61  ;;  %v283_v3 = vadd.f32 %v1320_v7, %v212_v62 }
  0x68   :  { %vm345_vm13 = vcmp.ge.f32.partialorder %v281_v63, 0.0  ;;  %v409_v4 = vmul.f32 0.2, %v281_v63  ;;  %v472_v5 = vsel %vm344_vm12, %v280_v60, %v408_v0 }
  0x69   :  { %vm346_vm14 = vcmp.ge.f32.partialorder %v282_v2, 0.0  ;;  %vm347_vm15 = vcmp.ge.f32.partialorder %v283_v3, 0.0  ;;  %v410_v6 = vmul.f32 0.2, %v282_v2  ;;  %v411_v8 = vmul.f32 0.2, %v283_v3 }
  0x6a   :  { %v473_v1 = vsel %vm345_vm13, %v281_v63, %v409_v4 }
  0x6b   :  { %v1211_v9 = vpack.c.bf16 %v473_v1, %v472_v5  ;;  %v474_v10 = vsel %vm346_vm14, %v282_v2, %v410_v6  ;;  %v475_v11 = vsel %vm347_vm15, %v283_v3, %v411_v8 }
  0x6c   :  { %v1216_v12 = vpack.c.bf16 %v475_v11, %v474_v10 }
  0x6d   :  { %1278 = vst [vmem:[%s1634_s3 + $0xf0] sm:$0xff] %v1211_v9  }
  0x6e   :  { %1279 = vst [vmem:[%s1634_s3 + $0xf8] sm:$0xff] %v1216_v12  }

// kernel: discriminator_forward.11
= control target key start
LH: loop header
LB: loop body
LE: loop exit
PB: predicated region body
PF: predicated region fallthrough
CT: control target
= control target key end

     0   :  { %s884_s1 = inlined_call_operand.vmem [shape: bf16[256,128], index: 1, kind: input, shape index: {}]   ;;  %s885_s0 = inlined_call_operand.vmem [shape: bf16[128,256], index: 0, kind: input, shape index: {}]   ;;  %s886_s2 = inlined_call_operand.vmem [shape: bf16[128,128], index: 2, kind: output, shape index: {0}]   ;;  %s887_s3 = inlined_call_operand.vmem [shape: f32[1,2,128], index: 3, kind: output, shape index: {1}]  }
   0x1   :  { %v674_v0 = vld [vmem:[%s884_s1 + $0x78] sm:$0xff]   ;;  %v676_v2 = vld [vmem:[%s884_s1 + $0x70] sm:$0xff]   ;;  %v678_v4 = vld [vmem:[%s884_s1 + $0x68] sm:$0xff]  }
   0x2   :  { %v675_v1 = vld [vmem:[%s884_s1 + $0x38] sm:$0xff]   ;;  %594 = vmatprep.subr.bf16.mxu0 %v674_v0  ;;  %658 = vmatprep.subr.bf16.mxu1 %v674_v0  ;;  %v677_v3 = vld [vmem:[%s884_s1 + $0x30] sm:$0xff]   ;;  %v679_v5 = vld [vmem:[%s884_s1 + $0x28] sm:$0xff]  }
   0x3   :  { %595 = vmatpush3.bf16.msra.mxu0 %v675_v1  ;;  %666 = vmatpush3.bf16.msra.mxu1 %v675_v1  ;;  %v680_v6 = vld [vmem:[%s884_s1 + $0x60] sm:$0xff]   ;;  %v682_v8 = vld [vmem:[%s884_s1 + $0x58] sm:$0xff]   ;;  %v684_v10 = vld [vmem:[%s884_s1 + $0x50] sm:$0xff]  }
   0x4   :  { %596 = vmatprep.subr.bf16.mxu0 %v676_v2  ;;  %659 = vmatprep.subr.bf16.mxu1 %v676_v2  ;;  %v681_v7 = vld [vmem:[%s884_s1 + $0x20] sm:$0xff]   ;;  %v683_v9 = vld [vmem:[%s884_s1 + $0x18] sm:$0xff]   ;;  %v685_v12 = vld [vmem:[%s884_s1 + $0x10] sm:$0xff]  }
   0x5   :  { %v692_v11 = vld [vmem:[%s885_s0 + $0x4] ss:$8 sps:$4 sm:$0xff]   ;;  %v690_v18 = vld [vmem:[%s885_s0] ss:$8 sps:$4 sm:$0xff]   ;;  %v693_v20 = vld [vmem:[%s885_s0 + $0x14] ss:$8 sps:$4 sm:$0xff]  }
   0x6   :  { %v698_v13 = vld [vmem:[%s885_s0 + $0x44] ss:$8 sps:$4 sm:$0xff]   ;;  %270 = vmatprep.mubr.bf16.mxu0 %v692_v11  ;;  %v696_v19 = vld [vmem:[%s885_s0 + $0x40] ss:$8 sps:$4 sm:$0xff]   ;;  %v702_v21 = vld [vmem:[%s885_s0 + $0x54] ss:$8 sps:$4 sm:$0xff]  }
   0x7   :  { %597 = vmatpush3.bf16.msra.mxu0 %v677_v3  ;;  %667 = vmatpush3.bf16.msra.mxu1 %v677_v3  ;;  %v686_v14 = vld [vmem:[%s884_s1 + $0x48] sm:$0xff]   ;;  %v688_v16 = vld [vmem:[%s884_s1 + $0x40] sm:$0xff]   ;;  %v695_v22 = vld [vmem:[%s885_s0 + $0x10] ss:$8 sps:$4 sm:$0xff]  }
   0x8   :  { %598 = vmatprep.subr.bf16.mxu0 %v678_v4  ;;  %660 = vmatprep.subr.bf16.mxu1 %v678_v4  ;;  %v687_v15 = vld [vmem:[%s884_s1 + $0x8] sm:$0xff]   ;;  %v689_v17 = vld [vmem:[%s884_s1] sm:$0xff]   ;;  %v704_v23 = vld [vmem:[%s885_s0 + $0x50] ss:$8 sps:$4 sm:$0xff]  }
   0x9   :  { %302 = vmatprep.mubr.bf16.mxu1 %v698_v13  ;;  %v699_v24 = vld [vmem:[%s885_s0 + $0x24] ss:$8 sps:$4 sm:$0xff]   ;;  %v701_v26 = vld [vmem:[%s885_s0 + $0x20] ss:$8 sps:$4 sm:$0xff]   ;;  %v705_v28 = vld [vmem:[%s885_s0 + $0x34] ss:$8 sps:$4 sm:$0xff]  }
   0xa   :  { %v708_v25 = vld [vmem:[%s885_s0 + $0x64] ss:$8 sps:$4 sm:$0xff]   ;;  %v710_v27 = vld [vmem:[%s885_s0 + $0x60] ss:$8 sps:$4 sm:$0xff]   ;;  %v711_v29 = vld [vmem:[%s885_s0 + $0x74] ss:$8 sps:$4 sm:$0xff]  }
   0xb   :  { %599 = vmatpush3.bf16.msra.mxu0 %v679_v5  ;;  %668 = vmatpush3.bf16.msra.mxu1 %v679_v5  ;;  %v707_v30 = vld [vmem:[%s885_s0 + $0x30] ss:$8 sps:$4 sm:$0xff]  }
   0xc   :  { %600 = vmatprep.subr.bf16.mxu0 %v680_v6  ;;  %661 = vmatprep.subr.bf16.mxu1 %v680_v6  ;;  %v713_v31 = vld [vmem:[%s885_s0 + $0x70] ss:$8 sps:$4 sm:$0xff]  }
   0xf   :  { %601 = vmatpush3.bf16.msra.mxu0 %v681_v7  ;;  %669 = vmatpush3.bf16.msra.mxu1 %v681_v7 }
  0x10   :  { %602 = vmatprep.subr.bf16.mxu0 %v682_v8  ;;  %662 = vmatprep.subr.bf16.mxu1 %v682_v8 }
  0x13   :  { %603 = vmatpush3.bf16.msra.mxu0 %v683_v9  ;;  %670 = vmatpush3.bf16.msra.mxu1 %v683_v9 }
  0x14   :  { %604 = vmatprep.subr.bf16.mxu0 %v684_v10  ;;  %663 = vmatprep.subr.bf16.mxu1 %v684_v10 }
  0x17   :  { %605 = vmatpush3.bf16.msra.mxu0 %v685_v12  ;;  %671 = vmatpush3.bf16.msra.mxu1 %v685_v12 }
  0x18   :  { %606 = vmatprep.subr.bf16.mxu0 %v686_v14  ;;  %664 = vmatprep.subr.bf16.mxu1 %v686_v14 }
  0x1b   :  { %607 = vmatpush3.bf16.msra.mxu0 %v687_v15  ;;  %672 = vmatpush3.bf16.msra.mxu1 %v687_v15 }
  0x1c   :  { %608 = vmatprep.subr.bf16.mxu0 %v688_v16  ;;  %665 = vmatprep.subr.bf16.mxu1 %v688_v16 }
  0x1f   :  { %609 = vmatpush3.bf16.msra.mxu0 %v689_v17  ;;  %673 = vmatpush3.bf16.msra.mxu1 %v689_v17 }
  0x22   :  { %271 = vmatmul.mubr.bf16.vlgmr.msra.gmra.mxu0 %v690_v18  ;;  %303 = vmatmul.mubr.bf16.vlgmr.msra.gmra.mxu1 %v696_v19 }
  0x23   :  { %278 = vmatprep.mubr.bf16.mxu0 %v693_v20  ;;  %310 = vmatprep.mubr.bf16.mxu1 %v702_v21 }
  0x2a   :  { %279 = vmatmul.mubr.bf16.gmra.mxu0 %v695_v22  ;;  %311 = vmatmul.mubr.bf16.gmra.mxu1 %v704_v23 }
  0x2b   :  { %286 = vmatprep.mubr.bf16.mxu0 %v699_v24  ;;  %318 = vmatprep.mubr.bf16.mxu1 %v708_v25 }
  0x32   :  { %287 = vmatmul.mubr.bf16.gmra.mxu0 %v701_v26  ;;  %319 = vmatmul.mubr.bf16.gmra.mxu1 %v710_v27 }
  0x33   :  { %294 = vmatprep.mubr.bf16.mxu0 %v705_v28  ;;  %326 = vmatprep.mubr.bf16.mxu1 %v711_v29 }
  0x3a   :  { %295 = vmatmul.mubr.bf16.gmra.mxu0 %v707_v30  ;;  %327 = vmatmul.mubr.bf16.gmra.mxu1 %v713_v31 }
  0xe2   :  { %v610_v32 = vpop.f32.mrf.mxu0  ;;  %v634_v33 = vpop.f32.mrf.mxu1 }
  0xe4   :  { %v611_v34 = vpop.f32.mrf.mxu0  ;;  %v635_v35 = vpop.f32.mrf.mxu1 }
  0xe5   :  { %v830_v38 = vadd.f32 %v635_v35, %v634_v33  ;;  %v612_v41 = vadd.f32 %v611_v34, %v610_v32 }
  0xe6   :  { %v613_v36 = vpop.f32.mrf.mxu0  ;;  %v637_v37 = vpop.f32.mrf.mxu1 }
  0xe7   :  { %v437_v1 = vmul.f32 %v612_v41, %v612_v41 }
  0xe8   :  { %v614_v39 = vpop.f32.mrf.mxu0  ;;  %v638_v40 = vpop.f32.mrf.mxu1 }
  0xe9   :  { %v615_v42 = vadd.f32 %v614_v39, %v613_v36  ;;  %v832_v43 = vadd.f32 %v638_v40, %v637_v37 }
  0xea   :  { %v616_v44 = vpop.f32.mrf.mxu0  ;;  %v640_v45 = vpop.f32.mrf.mxu1 }
  0xeb   :  { %v550_v46 = vpack.c.bf16 %v615_v42, %v612_v41  ;;  %v570_v47 = vpack.c.bf16 %v832_v43, %v830_v38  ;;  %v438_v62 = vmul.f32 %v615_v42, %v615_v42  ;;  %v415_v6 = vadd.f32 %v615_v42, %v612_v41 }
  0xec   :  { %v617_v48 = vpop.f32.mrf.mxu0  ;;  %v641_v49 = vpop.f32.mrf.mxu1 }
  0xed   :  { %551 = vst [vmem:[%s886_s2] sm:$0xff] %v550_v46   ;;  %590 = vst [vmem:[%s886_s2 + $0x20] sm:$0xff] %v570_v47   ;;  %v842_v52 = vadd.f32 %v641_v49, %v640_v45  ;;  %v618_v55 = vadd.f32 %v617_v48, %v616_v44  ;;  %v453_v8 = vadd.f32 %v438_v62, %v437_v1 }
  0xee   :  { %v619_v50 = vpop.f32.mrf.mxu0  ;;  %v643_v51 = vpop.f32.mrf.mxu1  ;;  %v445_v47 = vmul.f32 %v830_v38, %v830_v38 }
  0xef   :  { %v439_v2 = vmul.f32 %v618_v55, %v618_v55  ;;  %v416_v12 = vadd.f32 %v618_v55, %v415_v6 }
  0xf0   :  { %v620_v53 = vpop.f32.mrf.mxu0  ;;  %v644_v54 = vpop.f32.mrf.mxu1 }
  0xf1   :  { %v621_v56 = vadd.f32 %v620_v53, %v619_v50  ;;  %v844_v57 = vadd.f32 %v644_v54, %v643_v51  ;;  %v454_v15 = vadd.f32 %v453_v8, %v439_v2  ;;  %v446_v50 = vmul.f32 %v832_v43, %v832_v43 }
  0xf2   :  { %v622_v58 = vpop.f32.mrf.mxu0  ;;  %v646_v59 = vpop.f32.mrf.mxu1  ;;  %v447_v54 = vmul.f32 %v842_v52, %v842_v52 }
  0xf3   :  { %v555_v60 = vpack.c.bf16 %v621_v56, %v618_v55  ;;  %v575_v61 = vpack.c.bf16 %v844_v57, %v842_v52  ;;  %v440_v9 = vmul.f32 %v621_v56, %v621_v56  ;;  %v417_v19 = vadd.f32 %v621_v56, %v416_v12 }
  0xf4   :  { %v623_v63 = vpop.f32.mrf.mxu0  ;;  %v647_v0 = vpop.f32.mrf.mxu1 }
  0xf5   :  { %587 = vst [vmem:[%s886_s2 + $0x8] sm:$0xff] %v555_v60   ;;  %591 = vst [vmem:[%s886_s2 + $0x28] sm:$0xff] %v575_v61   ;;  %v624_v3 = vadd.f32 %v623_v63, %v622_v58  ;;  %v648_v7 = vadd.f32 %v647_v0, %v646_v59  ;;  %v455_v22 = vadd.f32 %v454_v15, %v440_v9 }
  0xf6   :  { %v625_v4 = vpop.f32.mrf.mxu0  ;;  %v649_v5 = vpop.f32.mrf.mxu1 }
  0xf7   :  { %v441_v16 = vmul.f32 %v624_v3, %v624_v3  ;;  %v418_v26 = vadd.f32 %v624_v3, %v417_v19  ;;  %v449_v60 = vmul.f32 %v648_v7, %v648_v7 }
  0xf8   :  { %v626_v10 = vpop.f32.mrf.mxu0  ;;  %v650_v11 = vpop.f32.mrf.mxu1 }
  0xf9   :  { %v627_v13 = vadd.f32 %v626_v10, %v625_v4  ;;  %v651_v14 = vadd.f32 %v650_v11, %v649_v5  ;;  %v456_v28 = vadd.f32 %v455_v22, %v441_v16 }
  0xfa   :  { %v628_v17 = vpop.f32.mrf.mxu0  ;;  %v652_v18 = vpop.f32.mrf.mxu1 }
  0xfb   :  { %v560_v20 = vpack.c.bf16 %v627_v13, %v624_v3  ;;  %v580_v21 = vpack.c.bf16 %v651_v14, %v648_v7  ;;  %v442_v23 = vmul.f32 %v627_v13, %v627_v13  ;;  %v419_v31 = vadd.f32 %v627_v13, %v418_v26 }
  0xfc   :  { %v629_v24 = vpop.f32.mrf.mxu0  ;;  %v653_v25 = vpop.f32.mrf.mxu1  ;;  %v450_v0 = vmul.f32 %v651_v14, %v651_v14 }
  0xfd   :  { %588 = vst [vmem:[%s886_s2 + $0x10] sm:$0xff] %v560_v20   ;;  %v630_v27 = vadd.f32 %v629_v24, %v628_v17  ;;  %592 = vst [vmem:[%s886_s2 + $0x30] sm:$0xff] %v580_v21   ;;  %v654_v33 = vadd.f32 %v653_v25, %v652_v18  ;;  %v457_v34 = vadd.f32 %v456_v28, %v442_v23 }
  0xfe   :  { %v631_v29 = vpop.f32.mrf.mxu0  ;;  %v655_v30 = vpop.f32.mrf.mxu1 }
  0xff   :  { %v443_v32 = vmul.f32 %v630_v27, %v630_v27  ;;  %v420_v37 = vadd.f32 %v630_v27, %v419_v31  ;;  %v451_v3 = vmul.f32 %v654_v33, %v654_v33 }
 0x100   :  { %v632_v35 = vpop.f32.mrf.mxu0  ;;  %v656_v36 = vpop.f32.mrf.mxu1 }
 0x101   :  { %v633_v39 = vadd.f32 %v632_v35, %v631_v29  ;;  %v657_v40 = vadd.f32 %v656_v36, %v655_v30  ;;  %v458_v41 = vadd.f32 %v457_v34, %v443_v32 }
 0x103   :  { %v565_v42 = vpack.c.bf16 %v633_v39, %v630_v27  ;;  %v421_v44 = vadd.f32 %v633_v39, %v420_v37  ;;  %v444_v45 = vmul.f32 %v633_v39, %v633_v39  ;;  %v585_v46 = vpack.c.bf16 %v657_v40, %v654_v33 }
 0x104   :  { %v452_v6 = vmul.f32 %v657_v40, %v657_v40 }
 0x105   :  { %589 = vst [vmem:[%s886_s2 + $0x18] sm:$0xff] %v565_v42   ;;  %v422_v48 = vadd.f32 %v830_v38, %v421_v44  ;;  %v459_v49 = vadd.f32 %v458_v41, %v444_v45  ;;  %593 = vst [vmem:[%s886_s2 + $0x38] sm:$0xff] %v585_v46   ;;  %v448_v38 = vmul.f32 %v844_v57, %v844_v57 }
 0x107   :  { %v423_v51 = vadd.f32 %v832_v43, %v422_v48  ;;  %v460_v53 = vadd.f32 %v459_v49, %v445_v47 }
 0x109   :  { %v461_v55 = vadd.f32 %v460_v53, %v446_v50  ;;  %v424_v56 = vadd.f32 %v842_v52, %v423_v51 }
 0x10b   :  { %v425_v58 = vadd.f32 %v844_v57, %v424_v56  ;;  %v462_v59 = vadd.f32 %v461_v55, %v447_v54 }
 0x10d   :  { %v426_v61 = vadd.f32 %v648_v7, %v425_v58  ;;  %v463_v62 = vadd.f32 %v462_v59, %v448_v38 }
 0x10f   :  { %v427_v63 = vadd.f32 %v651_v14, %v426_v61  ;;  %v464_v1 = vadd.f32 %v463_v62, %v449_v60 }
 0x111   :  { %v465_v43 = vadd.f32 %v464_v1, %v450_v0  ;;  %v428_v2 = vadd.f32 %v654_v33, %v427_v63 }
 0x113   :  { %v466_v4 = vadd.f32 %v465_v43, %v451_v3  ;;  %v429_v5 = vadd.f32 %v657_v40, %v428_v2 }
 0x115   :  { %v430_v8 = vrot.slane %v429_v5, 4  ;;  %v467_v52 = vadd.f32 %v466_v4, %v452_v6 }
 0x117   :  { %v431_v9 = vadd.f32 %v430_v8, %v429_v5  ;;  %v468_v10 = vrot.slane %v467_v52, 4 }
 0x119   :  { %v432_v11 = vrot.slane %v431_v9, 2  ;;  %v469_v12 = vadd.f32 %v468_v10, %v467_v52 }
 0x11b   :  { %v433_v57 = vadd.f32 %v432_v11, %v431_v9  ;;  %v470_v13 = vrot.slane %v469_v12, 2 }
 0x11d   :  { %v434_v15 = vrot.slane %v433_v57, 1  ;;  %v471_v7 = vadd.f32 %v470_v13, %v469_v12 }
 0x11f   :  { %v435_v16 = vadd.f32 %v434_v15, %v433_v57  ;;  %v472_v17 = vrot.slane %v471_v7, 1 }
 0x121   :  { %436 = vst [vmem:[%s887_s3] sm:$0x1] %v435_v16  ;;  %v473_v14 = vadd.f32 %v472_v17, %v471_v7 }
 0x123   :  { %474 = vst [vmem:[%s887_s3 + $0x1] sm:$0x1] %v473_v14 }

// kernel: discriminator_forward.12
= control target key start
LH: loop header
LB: loop body
LE: loop exit
PB: predicated region body
PF: predicated region fallthrough
CT: control target
= control target key end

     0   :  { %s455_s0 = inlined_call_operand.vmem [shape: bf16[128,128], index: 0, kind: input, shape index: {}]   ;;  %s456_s1 = inlined_call_operand.vmem [shape: f32[1,128], index: 1, kind: input, shape index: {}]   ;;  %s457_s2 = inlined_call_operand.vmem [shape: f32[1,128], index: 2, kind: input, shape index: {}]   ;;  %s458_s3 = inlined_call_operand.vmem [shape: bf16[128,128], index: 3, kind: output, shape index: {}]  }
   0x1   :  { %v259_v0 = vld [vmem:[%s455_s0] sm:$0xff]   ;;  %v330_v4 = vld [vmem:[%s455_s0 + $0x8] sm:$0xff]   ;;  %v331_v5 = vld [vmem:[%s455_s0 + $0x10] sm:$0xff]  }
   0x2   :  { %v370_v1 = vld [vmem:[%s456_s1] ss:$0 sm:$0xff]  ;;  %v260_v2 = vunpack.c.l.bf16 %v259_v0  ;;  %v261_v3 = vunpack.c.h.bf16 %v259_v0  ;;  %v332_v6 = vld [vmem:[%s455_s0 + $0x18] sm:$0xff]   ;;  %v264_v8 = vunpack.c.l.bf16 %v330_v4  ;;  %v265_v9 = vunpack.c.h.bf16 %v330_v4  ;;  %v334_v35 = vld [vmem:[%s455_s0 + $0x28] sm:$0xff]  }
   0x3   :  { %v384_v7 = vld [vmem:[%s457_s2] ss:$0 sm:$0xff]  ;;  %v268_v10 = vunpack.c.l.bf16 %v331_v5  ;;  %v269_v11 = vunpack.c.h.bf16 %v331_v5  ;;  %v272_v14 = vunpack.c.l.bf16 %v332_v6  ;;  %v273_v15 = vunpack.c.h.bf16 %v332_v6  ;;  %v335_v48 = vld [vmem:[%s455_s0 + $0x30] sm:$0xff]   ;;  %v336_v4 = vld [vmem:[%s455_s0 + $0x38] sm:$0xff]  }
   0x4   :  { %v53_v12 = vmul.f32 %v260_v2, %v370_v1  ;;  %v54_v13 = vmul.f32 %v261_v3, %v370_v1  ;;  %v55_v16 = vmul.f32 %v264_v8, %v370_v1  ;;  %v56_v17 = vmul.f32 %v265_v9, %v370_v1  ;;  %v333_v34 = vld [vmem:[%s455_s0 + $0x20] sm:$0xff]  }
   0x5   :  { %v57_v18 = vmul.f32 %v268_v10, %v370_v1  ;;  %v58_v19 = vmul.f32 %v269_v11, %v370_v1  ;;  %v59_v22 = vmul.f32 %v272_v14, %v370_v1  ;;  %v60_v23 = vmul.f32 %v273_v15, %v370_v1 }
   0x6   :  { %v76_v20 = vadd.f32 %v384_v7, %v53_v12  ;;  %v77_v21 = vadd.f32 %v384_v7, %v54_v13  ;;  %v78_v24 = vadd.f32 %v384_v7, %v55_v16  ;;  %v79_v25 = vadd.f32 %v384_v7, %v56_v17 }
   0x7   :  { %v80_v26 = vadd.f32 %v384_v7, %v57_v18  ;;  %v81_v27 = vadd.f32 %v384_v7, %v58_v19  ;;  %v82_v42 = vadd.f32 %v384_v7, %v59_v22  ;;  %v83_v43 = vadd.f32 %v384_v7, %v60_v23 }
   0x8   :  { %vm92_vm0 = vcmp.ge.f32.partialorder %v76_v20, 0.0  ;;  %vm93_vm1 = vcmp.ge.f32.partialorder %v77_v21, 0.0  ;;  %v108_v28 = vmul.f32 0.2, %v76_v20  ;;  %v109_v29 = vmul.f32 0.2, %v77_v21 }
   0x9   :  { %vm94_vm2 = vcmp.ge.f32.partialorder %v78_v24, 0.0  ;;  %vm95_vm3 = vcmp.ge.f32.partialorder %v79_v25, 0.0  ;;  %v110_v30 = vmul.f32 0.2, %v78_v24  ;;  %v111_v31 = vmul.f32 0.2, %v79_v25 }
   0xa   :  { %v124_v32 = vsel %vm92_vm0, %v76_v20, %v108_v28  ;;  %v125_v33 = vsel %vm93_vm1, %v77_v21, %v109_v29  ;;  %vm96_vm4 = vcmp.ge.f32.partialorder %v80_v26, 0.0  ;;  %vm97_vm5 = vcmp.ge.f32.partialorder %v81_v27, 0.0 }
   0xb   :  { %v293_v36 = vpack.c.bf16 %v125_v33, %v124_v32  ;;  %v126_v37 = vsel %vm94_vm2, %v78_v24, %v110_v30  ;;  %v127_v38 = vsel %vm95_vm3, %v79_v25, %v111_v31  ;;  %v112_v39 = vmul.f32 0.2, %v80_v26 }
   0xc   :  { %v298_v40 = vpack.c.bf16 %v127_v38, %v126_v37  ;;  %v113_v41 = vmul.f32 0.2, %v81_v27  ;;  %v276_v45 = vunpack.c.l.bf16 %v333_v34  ;;  %v277_v46 = vunpack.c.h.bf16 %v333_v34 }
   0xd   :  { %294 = vst [vmem:[%s458_s3] sm:$0xff] %v293_v36   ;;  %v128_v44 = vsel %vm96_vm4, %v80_v26, %v112_v39  ;;  %v280_v47 = vunpack.c.l.bf16 %v334_v35  ;;  %vm98_vm6 = vcmp.ge.f32.partialorder %v82_v42, 0.0  ;;  %vm99_vm7 = vcmp.ge.f32.partialorder %v83_v43, 0.0 }
   0xe   :  { %337 = vst [vmem:[%s458_s3 + $0x8] sm:$0xff] %v298_v40   ;;  %v129_v49 = vsel %vm97_vm5, %v81_v27, %v113_v41  ;;  %v114_v50 = vmul.f32 0.2, %v82_v42  ;;  %v115_v52 = vmul.f32 0.2, %v83_v43  ;;  %v61_v53 = vmul.f32 %v276_v45, %v370_v1 }
   0xf   :  { %v303_v51 = vpack.c.bf16 %v129_v49, %v128_v44  ;;  %v62_v54 = vmul.f32 %v277_v46, %v370_v1  ;;  %v281_v56 = vunpack.c.h.bf16 %v334_v35  ;;  %v63_v57 = vmul.f32 %v280_v47, %v370_v1 }
  0x10   :  { %v130_v55 = vsel %vm98_vm6, %v82_v42, %v114_v50  ;;  %v284_v58 = vunpack.c.l.bf16 %v335_v48  ;;  %v131_v59 = vsel %vm99_vm7, %v83_v43, %v115_v52  ;;  %v84_v60 = vadd.f32 %v384_v7, %v61_v53 }
  0x11   :  { %338 = vst [vmem:[%s458_s3 + $0x10] sm:$0xff] %v303_v51   ;;  %v85_v61 = vadd.f32 %v384_v7, %v62_v54  ;;  %v285_v62 = vunpack.c.h.bf16 %v335_v48  ;;  %v308_v63 = vpack.c.bf16 %v131_v59, %v130_v55  ;;  %v64_v0 = vmul.f32 %v281_v56, %v370_v1 }
  0x12   :  { %v86_v2 = vadd.f32 %v384_v7, %v63_v57  ;;  %v65_v3 = vmul.f32 %v284_v58, %v370_v1  ;;  %vm100_vm8 = vcmp.ge.f32.partialorder %v84_v60, 0.0  ;;  %v116_v5 = vmul.f32 0.2, %v84_v60 }
  0x13   :  { %vm101_vm9 = vcmp.ge.f32.partialorder %v85_v61, 0.0  ;;  %v117_v6 = vmul.f32 0.2, %v85_v61  ;;  %339 = vst [vmem:[%s458_s3 + $0x18] sm:$0xff] %v308_v63   ;;  %v87_v8 = vadd.f32 %v384_v7, %v64_v0  ;;  %v66_v10 = vmul.f32 %v285_v62, %v370_v1 }
  0x14   :  { %vm102_vm10 = vcmp.ge.f32.partialorder %v86_v2, 0.0  ;;  %v118_v9 = vmul.f32 0.2, %v86_v2  ;;  %v132_v11 = vsel %vm100_vm8, %v84_v60, %v116_v5  ;;  %v88_v13 = vadd.f32 %v384_v7, %v65_v3 }
  0x15   :  { %v133_v12 = vsel %vm101_vm9, %v85_v61, %v117_v6  ;;  %v288_v14 = vunpack.c.l.bf16 %v336_v4  ;;  %vm103_vm11 = vcmp.ge.f32.partialorder %v87_v8, 0.0  ;;  %v119_v16 = vmul.f32 0.2, %v87_v8 }
  0x16   :  { %v313_v15 = vpack.c.bf16 %v133_v12, %v132_v11  ;;  %v134_v17 = vsel %vm102_vm10, %v86_v2, %v118_v9  ;;  %v89_v18 = vadd.f32 %v384_v7, %v66_v10  ;;  %vm104_vm12 = vcmp.ge.f32.partialorder %v88_v13, 0.0 }
  0x17   :  { %v120_v19 = vmul.f32 0.2, %v88_v13  ;;  %v289_v20 = vunpack.c.h.bf16 %v336_v4  ;;  %v135_v21 = vsel %vm103_vm11, %v87_v8, %v119_v16  ;;  %v67_v22 = vmul.f32 %v288_v14, %v370_v1 }
  0x18   :  { %340 = vst [vmem:[%s458_s3 + $0x20] sm:$0xff] %v313_v15   ;;  %v318_v23 = vpack.c.bf16 %v135_v21, %v134_v17  ;;  %vm105_vm13 = vcmp.ge.f32.partialorder %v89_v18, 0.0  ;;  %v121_v24 = vmul.f32 0.2, %v89_v18 }
  0x19   :  { %v136_v25 = vsel %vm104_vm12, %v88_v13, %v120_v19  ;;  %v68_v26 = vmul.f32 %v289_v20, %v370_v1  ;;  %v90_v27 = vadd.f32 %v384_v7, %v67_v22 }
  0x1a   :  { %341 = vst [vmem:[%s458_s3 + $0x28] sm:$0xff] %v318_v23   ;;  %v137_v28 = vsel %vm105_vm13, %v89_v18, %v121_v24 }
  0x1b   :  { %v323_v29 = vpack.c.bf16 %v137_v28, %v136_v25  ;;  %v91_v30 = vadd.f32 %v384_v7, %v68_v26  ;;  %vm106_vm14 = vcmp.ge.f32.partialorder %v90_v27, 0.0  ;;  %v122_v31 = vmul.f32 0.2, %v90_v27 }
  0x1d   :  { %342 = vst [vmem:[%s458_s3 + $0x30] sm:$0xff] %v323_v29   ;;  %vm107_vm15 = vcmp.ge.f32.partialorder %v91_v30, 0.0  ;;  %v123_v32 = vmul.f32 0.2, %v91_v30  ;;  %v138_v33 = vsel %vm106_vm14, %v90_v27, %v122_v31 }
  0x1f   :  { %v139_v1 = vsel %vm107_vm15, %v91_v30, %v123_v32 }
  0x20   :  { %v328_v34 = vpack.c.bf16 %v139_v1, %v138_v33 }
  0x22   :  { %343 = vst [vmem:[%s458_s3 + $0x38] sm:$0xff] %v328_v34  }

// kernel: discriminator_forward.14
= control target key start
LH: loop header
LB: loop body
LE: loop exit
PB: predicated region body
PF: predicated region fallthrough
CT: control target
= control target key end

     0   :  { %s148_s0 = inlined_call_operand.vmem [shape: bf16[32,128], index: 0, kind: input, shape index: {}]   ;;  %s149_s1 = inlined_call_operand.vmem [shape: f32[1,128], index: 1, kind: input, shape index: {}]   ;;  %s150_s2 = inlined_call_operand.vmem [shape: f32[1,128], index: 2, kind: input, shape index: {}]   ;;  %s151_s3 = inlined_call_operand.vmem [shape: bf16[32,128], index: 3, kind: output, shape index: {}]  }
   0x1   :  { %v91_v0 = vld [vmem:[%s148_s0] sm:$0xff]   ;;  %v108_v4 = vld [vmem:[%s148_s0 + $0x8] sm:$0xff]  }
   0x2   :  { %v80_v1 = vld [vmem:[%s149_s1] ss:$0 sm:$0xff]  ;;  %v92_v2 = vunpack.c.l.bf16 %v91_v0  ;;  %v93_v3 = vunpack.c.h.bf16 %v91_v0  ;;  %v96_v6 = vunpack.c.l.bf16 %v108_v4  ;;  %v97_v7 = vunpack.c.h.bf16 %v108_v4 }
   0x3   :  { %v81_v5 = vld [vmem:[%s150_s2] ss:$0 sm:$0xff] }
   0x4   :  { %v29_v8 = vmul.f32 %v92_v2, %v80_v1  ;;  %v30_v9 = vmul.f32 %v93_v3, %v80_v1  ;;  %v31_v10 = vmul.f32 %v96_v6, %v80_v1  ;;  %v32_v11 = vmul.f32 %v97_v7, %v80_v1 }
   0x6   :  { %v40_v12 = vadd.f32 %v81_v5, %v29_v8  ;;  %v41_v13 = vadd.f32 %v81_v5, %v30_v9  ;;  %v42_v14 = vadd.f32 %v81_v5, %v31_v10  ;;  %v43_v15 = vadd.f32 %v81_v5, %v32_v11 }
   0x8   :  { %vm44_vm0 = vcmp.ge.f32.partialorder %v40_v12, 0.0  ;;  %vm45_vm1 = vcmp.ge.f32.partialorder %v41_v13, 0.0  ;;  %v48_v16 = vmul.f32 0.2, %v40_v12  ;;  %v49_v17 = vmul.f32 0.2, %v41_v13 }
   0x9   :  { %vm46_vm2 = vcmp.ge.f32.partialorder %v42_v14, 0.0  ;;  %vm47_vm3 = vcmp.ge.f32.partialorder %v43_v15, 0.0  ;;  %v50_v18 = vmul.f32 0.2, %v42_v14  ;;  %v51_v19 = vmul.f32 0.2, %v43_v15 }
   0xa   :  { %v52_v20 = vsel %vm44_vm0, %v40_v12, %v48_v16  ;;  %v53_v21 = vsel %vm45_vm1, %v41_v13, %v49_v17 }
   0xb   :  { %v101_v22 = vpack.c.bf16 %v53_v21, %v52_v20  ;;  %v54_v23 = vsel %vm46_vm2, %v42_v14, %v50_v18  ;;  %v55_v24 = vsel %vm47_vm3, %v43_v15, %v51_v19 }
   0xc   :  { %v106_v25 = vpack.c.bf16 %v55_v24, %v54_v23 }
   0xd   :  { %102 = vst [vmem:[%s151_s3] sm:$0xff] %v101_v22  }
   0xe   :  { %109 = vst [vmem:[%s151_s3 + $0x8] sm:$0xff] %v106_v25  }

// kernel: discriminator_forward.13
= control target key start
LH: loop header
LB: loop body
LE: loop exit
PB: predicated region body
PF: predicated region fallthrough
CT: control target
= control target key end

     0   :  { %s779_s1 = inlined_call_operand.vmem [shape: bf16[512,128], index: 1, kind: input, shape index: {}]   ;;  %s780_s0 = inlined_call_operand.vmem [shape: bf16[32,512], index: 0, kind: input, shape index: {}]   ;;  %s781_s2 = inlined_call_operand.vmem [shape: bf16[32,128], index: 2, kind: output, shape index: {0}]   ;;  %s782_s3 = inlined_call_operand.vmem [shape: f32[1,2,128], index: 3, kind: output, shape index: {1}]  }
   0x1   :  { %v583_v0 = vld [vmem:[%s779_s1 + $0x78] sm:$0xff]   ;;  %v587_v4 = vld [vmem:[%s779_s1 + $0x70] sm:$0xff]   ;;  %v591_v8 = vld [vmem:[%s779_s1 + $0x68] sm:$0xff]  }
   0x2   :  { %v584_v1 = vld [vmem:[%s779_s1 + $0xf8] sm:$0xff]   ;;  %527 = vmatprep.subr.bf16.mxu0 %v583_v0  ;;  %v588_v5 = vld [vmem:[%s779_s1 + $0xf0] sm:$0xff]   ;;  %v592_v9 = vld [vmem:[%s779_s1 + $0xe8] sm:$0xff]  }
   0x3   :  { %v585_v2 = vld [vmem:[%s779_s1 + $0x38] sm:$0xff]   ;;  %555 = vmatprep.subr.bf16.mxu1 %v584_v1  ;;  %v589_v6 = vld [vmem:[%s779_s1 + $0x30] sm:$0xff]   ;;  %v593_v10 = vld [vmem:[%s779_s1 + $0x28] sm:$0xff]  }
   0x4   :  { %v586_v3 = vld [vmem:[%s779_s1 + $0xb8] sm:$0xff]   ;;  %528 = vmatpush3.bf16.msra.mxu0 %v585_v2  ;;  %v590_v7 = vld [vmem:[%s779_s1 + $0xb0] sm:$0xff]   ;;  %v594_v11 = vld [vmem:[%s779_s1 + $0xa8] sm:$0xff]  }
   0x5   :  { %556 = vmatpush3.bf16.msra.mxu1 %v586_v3  ;;  %529 = vmatprep.subr.bf16.mxu0 %v587_v4  ;;  %v595_v12 = vld [vmem:[%s779_s1 + $0x60] sm:$0xff]   ;;  %v599_v16 = vld [vmem:[%s779_s1 + $0x58] sm:$0xff]   ;;  %v603_v20 = vld [vmem:[%s779_s1 + $0x50] sm:$0xff]  }
   0x6   :  { %557 = vmatprep.subr.bf16.mxu1 %v588_v5  ;;  %v596_v13 = vld [vmem:[%s779_s1 + $0xe0] sm:$0xff]   ;;  %v600_v17 = vld [vmem:[%s779_s1 + $0xd8] sm:$0xff]   ;;  %v604_v21 = vld [vmem:[%s779_s1 + $0xd0] sm:$0xff]  }
   0x7   :  { %v597_v14 = vld [vmem:[%s779_s1 + $0x20] sm:$0xff]   ;;  %v601_v18 = vld [vmem:[%s779_s1 + $0x18] sm:$0xff]   ;;  %v605_v22 = vld [vmem:[%s779_s1 + $0x10] sm:$0xff]  }
   0x8   :  { %530 = vmatpush3.bf16.msra.mxu0 %v589_v6  ;;  %v598_v15 = vld [vmem:[%s779_s1 + $0xa0] sm:$0xff]   ;;  %v602_v19 = vld [vmem:[%s779_s1 + $0x98] sm:$0xff]   ;;  %v606_v23 = vld [vmem:[%s779_s1 + $0x90] sm:$0xff]  }
   0x9   :  { %558 = vmatpush3.bf16.msra.mxu1 %v590_v7  ;;  %531 = vmatprep.subr.bf16.mxu0 %v591_v8  ;;  %v607_v24 = vld [vmem:[%s779_s1 + $0x48] sm:$0xff]   ;;  %v611_v28 = vld [vmem:[%s779_s1 + $0x40] sm:$0xff]  }
   0xa   :  { %559 = vmatprep.subr.bf16.mxu1 %v592_v9  ;;  %v608_v25 = vld [vmem:[%s779_s1 + $0xc8] sm:$0xff]   ;;  %v612_v29 = vld [vmem:[%s779_s1 + $0xc0] sm:$0xff]  }
   0xb   :  { %v609_v26 = vld [vmem:[%s779_s1 + $0x8] sm:$0xff]   ;;  %v613_v30 = vld [vmem:[%s779_s1] sm:$0xff]  }
   0xc   :  { %532 = vmatpush3.bf16.msra.mxu0 %v593_v10  ;;  %v610_v27 = vld [vmem:[%s779_s1 + $0x88] sm:$0xff]   ;;  %v614_v31 = vld [vmem:[%s779_s1 + $0x80] sm:$0xff]  }
   0xd   :  { %560 = vmatpush3.bf16.msra.mxu1 %v594_v11  ;;  %533 = vmatprep.subr.bf16.mxu0 %v595_v12  ;;  %v615_v32 = vld [vmem:[%s780_s0] ss:$16 sps:$4 sm:$0xff]   ;;  %v617_v33 = vld [vmem:[%s780_s0 + $0x4] ss:$16 sps:$4 sm:$0xff]   ;;  %v618_v34 = vld [vmem:[%s780_s0 + $0x8] ss:$16 sps:$4 sm:$0xff]  }
   0xe   :  { %561 = vmatprep.subr.bf16.mxu1 %v596_v13  ;;  %v620_v35 = vld [vmem:[%s780_s0 + $0xc] ss:$16 sps:$4 sm:$0xff]   ;;  %350 = vmatprep.mubr.bf16.mxu0 %v617_v33  ;;  %v621_v36 = vld [vmem:[%s780_s0 + $0x24] ss:$16 sps:$4 sm:$0xff]   ;;  %v625_v38 = vld [vmem:[%s780_s0 + $0x20] ss:$16 sps:$4 sm:$0xff]  }
   0xf   :  { %399 = vmatprep.mubr.bf16.mxu1 %v620_v35  ;;  %v623_v37 = vld [vmem:[%s780_s0 + $0x2c] ss:$16 sps:$4 sm:$0xff]   ;;  %v626_v39 = vld [vmem:[%s780_s0 + $0x28] ss:$16 sps:$4 sm:$0xff]  }
  0x10   :  { %534 = vmatpush3.bf16.msra.mxu0 %v597_v14 }
  0x11   :  { %562 = vmatpush3.bf16.msra.mxu1 %v598_v15  ;;  %535 = vmatprep.subr.bf16.mxu0 %v599_v16 }
  0x12   :  { %563 = vmatprep.subr.bf16.mxu1 %v600_v17 }
  0x14   :  { %536 = vmatpush3.bf16.msra.mxu0 %v601_v18 }
  0x15   :  { %564 = vmatpush3.bf16.msra.mxu1 %v602_v19  ;;  %537 = vmatprep.subr.bf16.mxu0 %v603_v20 }
  0x16   :  { %565 = vmatprep.subr.bf16.mxu1 %v604_v21 }
  0x18   :  { %538 = vmatpush3.bf16.msra.mxu0 %v605_v22 }
  0x19   :  { %566 = vmatpush3.bf16.msra.mxu1 %v606_v23  ;;  %539 = vmatprep.subr.bf16.mxu0 %v607_v24 }
  0x1a   :  { %567 = vmatprep.subr.bf16.mxu1 %v608_v25 }
  0x1c   :  { %540 = vmatpush3.bf16.msra.mxu0 %v609_v26 }
  0x1d   :  { %568 = vmatpush3.bf16.msra.mxu1 %v610_v27  ;;  %541 = vmatprep.subr.bf16.mxu0 %v611_v28 }
  0x1e   :  { %569 = vmatprep.subr.bf16.mxu1 %v612_v29 }
  0x20   :  { %542 = vmatpush3.bf16.msra.mxu0 %v613_v30 }
  0x21   :  { %570 = vmatpush3.bf16.msra.mxu1 %v614_v31 }
  0x23   :  { %351 = vmatmul.mubr.bf16.vlgmr.msra.gmra.mxu0 %v615_v32 }
  0x24   :  { %400 = vmatmul.mubr.bf16.vlgmr.msra.gmra.mxu1 %v618_v34  ;;  %358 = vmatprep.mubr.bf16.mxu0 %v621_v36 }
  0x25   :  { %407 = vmatprep.mubr.bf16.mxu1 %v623_v37 }
  0x2b   :  { %359 = vmatmul.mubr.bf16.gmra.mxu0 %v625_v38 }
  0x2c   :  { %408 = vmatmul.mubr.bf16.gmra.mxu1 %v626_v39 }
  0xe3   :  { %v543_v40 = vpop.f32.mrf.mxu0 }
  0xe4   :  { %v571_v41 = vpop.f32.mrf.mxu1 }
  0xe5   :  { %v544_v42 = vpop.f32.mrf.mxu0 }
  0xe6   :  { %v572_v43 = vpop.f32.mrf.mxu1  ;;  %v545_v46 = vadd.f32 %v544_v42, %v543_v40 }
  0xe7   :  { %v546_v44 = vpop.f32.mrf.mxu0  ;;  %v573_v47 = vadd.f32 %v572_v43, %v571_v41 }
  0xe8   :  { %v574_v45 = vpop.f32.mrf.mxu1 }
  0xe9   :  { %v547_v48 = vpop.f32.mrf.mxu0  ;;  %v402_v54 = vadd.f32 %v573_v47, %v545_v46 }
  0xea   :  { %v548_v49 = vadd.f32 %v547_v48, %v546_v44  ;;  %v575_v50 = vpop.f32.mrf.mxu1 }
  0xeb   :  { %v576_v51 = vadd.f32 %v575_v50, %v574_v45  ;;  %v549_v52 = vpop.f32.mrf.mxu0  ;;  %v446_v4 = vmul.f32 %v402_v54, %v402_v54 }
  0xec   :  { %v577_v53 = vpop.f32.mrf.mxu1 }
  0xed   :  { %v405_v55 = vadd.f32 %v576_v51, %v548_v49  ;;  %v550_v56 = vpop.f32.mrf.mxu0 }
  0xee   :  { %v551_v57 = vadd.f32 %v550_v56, %v549_v52  ;;  %v578_v58 = vpop.f32.mrf.mxu1 }
  0xef   :  { %v519_v59 = vpack.c.bf16 %v405_v55, %v402_v54  ;;  %v579_v60 = vadd.f32 %v578_v58, %v577_v53  ;;  %v552_v61 = vpop.f32.mrf.mxu0  ;;  %v447_v63 = vmul.f32 %v405_v55, %v405_v55  ;;  %v436_v5 = vadd.f32 %v405_v55, %v402_v54 }
  0xf0   :  { %v580_v62 = vpop.f32.mrf.mxu1 }
  0xf1   :  { %520 = vst [vmem:[%s781_s2] sm:$0xff] %v519_v59   ;;  %v410_v0 = vadd.f32 %v579_v60, %v551_v57  ;;  %v553_v1 = vpop.f32.mrf.mxu0  ;;  %v450_v8 = vadd.f32 %v447_v63, %v446_v4 }
  0xf2   :  { %v554_v2 = vadd.f32 %v553_v1, %v552_v61  ;;  %v581_v3 = vpop.f32.mrf.mxu1 }
  0xf3   :  { %v448_v6 = vmul.f32 %v410_v0, %v410_v0  ;;  %v582_v7 = vadd.f32 %v581_v3, %v580_v62  ;;  %v437_v9 = vadd.f32 %v436_v5, %v410_v0 }
  0xf5   :  { %v413_v10 = vadd.f32 %v582_v7, %v554_v2  ;;  %v451_v11 = vadd.f32 %v450_v8, %v448_v6 }
  0xf7   :  { %v524_v12 = vpack.c.bf16 %v413_v10, %v410_v0  ;;  %v438_v13 = vadd.f32 %v437_v9, %v413_v10  ;;  %v449_v14 = vmul.f32 %v413_v10, %v413_v10 }
  0xf9   :  { %526 = vst [vmem:[%s781_s2 + $0x8] sm:$0xff] %v524_v12   ;;  %v439_v15 = vrot.slane %v438_v13, 4  ;;  %v452_v16 = vadd.f32 %v451_v11, %v449_v14 }
  0xfb   :  { %v440_v17 = vadd.f32 %v439_v15, %v438_v13  ;;  %v453_v18 = vrot.slane %v452_v16, 4 }
  0xfd   :  { %v441_v19 = vrot.slane %v440_v17, 2  ;;  %v454_v20 = vadd.f32 %v453_v18, %v452_v16 }
  0xff   :  { %v442_v21 = vadd.f32 %v441_v19, %v440_v17  ;;  %v455_v22 = vrot.slane %v454_v20, 2 }
 0x101   :  { %v443_v23 = vrot.slane %v442_v21, 1  ;;  %v456_v24 = vadd.f32 %v455_v22, %v454_v20 }
 0x103   :  { %v444_v25 = vadd.f32 %v443_v23, %v442_v21  ;;  %v457_v26 = vrot.slane %v456_v24, 1 }
 0x105   :  { %445 = vst [vmem:[%s782_s3] sm:$0x1] %v444_v25  ;;  %v458_v27 = vadd.f32 %v457_v26, %v456_v24 }
 0x107   :  { %459 = vst [vmem:[%s782_s3 + $0x1] sm:$0x1] %v458_v27 }

// kernel: discriminator_forward.15
= control target key start
LH: loop header
LB: loop body
LE: loop exit
PB: predicated region body
PF: predicated region fallthrough
CT: control target
= control target key end

     0   :  { %s1186_s1 = inlined_call_operand.vmem [shape: bf16[1024,128], index: 1, kind: input, shape index: {}]   ;;  %s1187_s0 = inlined_call_operand.vmem [shape: bf16[8,1024], index: 0, kind: input, shape index: {}]   ;;  %s1188_s2 = inlined_call_operand.vmem [shape: f32[8,128], index: 2, kind: output, shape index: {}]  }
   0x1   :  { %v888_v0 = vld [vmem:[%s1186_s1 + $0x78] sm:$0xff]   ;;  %v892_v4 = vld [vmem:[%s1186_s1 + $0x70] sm:$0xff]   ;;  %v896_v8 = vld [vmem:[%s1186_s1 + $0x68] sm:$0xff]  }
   0x2   :  { %v889_v1 = vld [vmem:[%s1186_s1 + $0xf8] sm:$0xff]   ;;  %800 = vmatprep.subr.bf16.mxu0 %v888_v0  ;;  %v893_v5 = vld [vmem:[%s1186_s1 + $0xf0] sm:$0xff]   ;;  %v897_v9 = vld [vmem:[%s1186_s1 + $0xe8] sm:$0xff]  }
   0x3   :  { %v890_v2 = vld [vmem:[%s1186_s1 + $0x38] sm:$0xff]   ;;  %822 = vmatprep.subr.bf16.mxu1 %v889_v1  ;;  %v894_v6 = vld [vmem:[%s1186_s1 + $0x30] sm:$0xff]   ;;  %v898_v10 = vld [vmem:[%s1186_s1 + $0x28] sm:$0xff]  }
   0x4   :  { %v891_v3 = vld [vmem:[%s1186_s1 + $0xb8] sm:$0xff]   ;;  %801 = vmatpush3.bf16.msra.mxu0 %v890_v2  ;;  %v895_v7 = vld [vmem:[%s1186_s1 + $0xb0] sm:$0xff]   ;;  %v899_v11 = vld [vmem:[%s1186_s1 + $0xa8] sm:$0xff]  }
   0x5   :  { %823 = vmatpush3.bf16.msra.mxu1 %v891_v3  ;;  %802 = vmatprep.subr.bf16.mxu0 %v892_v4  ;;  %v900_v12 = vld [vmem:[%s1186_s1 + $0x60] sm:$0xff]   ;;  %v904_v16 = vld [vmem:[%s1186_s1 + $0x58] sm:$0xff]   ;;  %v908_v20 = vld [vmem:[%s1186_s1 + $0x50] sm:$0xff]  }
   0x6   :  { %824 = vmatprep.subr.bf16.mxu1 %v893_v5  ;;  %v901_v13 = vld [vmem:[%s1186_s1 + $0xe0] sm:$0xff]   ;;  %v905_v17 = vld [vmem:[%s1186_s1 + $0xd8] sm:$0xff]   ;;  %v909_v21 = vld [vmem:[%s1186_s1 + $0xd0] sm:$0xff]  }
   0x7   :  { %v902_v14 = vld [vmem:[%s1186_s1 + $0x20] sm:$0xff]   ;;  %v906_v18 = vld [vmem:[%s1186_s1 + $0x18] sm:$0xff]   ;;  %v910_v22 = vld [vmem:[%s1186_s1 + $0x10] sm:$0xff]  }
   0x8   :  { %803 = vmatpush3.bf16.msra.mxu0 %v894_v6  ;;  %v903_v15 = vld [vmem:[%s1186_s1 + $0xa0] sm:$0xff]   ;;  %v907_v19 = vld [vmem:[%s1186_s1 + $0x98] sm:$0xff]   ;;  %v911_v23 = vld [vmem:[%s1186_s1 + $0x90] sm:$0xff]  }
   0x9   :  { %825 = vmatpush3.bf16.msra.mxu1 %v895_v7  ;;  %804 = vmatprep.subr.bf16.mxu0 %v896_v8  ;;  %v912_v24 = vld [vmem:[%s1186_s1 + $0x48] sm:$0xff]   ;;  %v916_v28 = vld [vmem:[%s1186_s1 + $0x40] sm:$0xff]   ;;  %v924_v38 = vld [vmem:[%s1186_s1 + $0x178] sm:$0xff]  }
   0xa   :  { %826 = vmatprep.subr.bf16.mxu1 %v897_v9  ;;  %v913_v25 = vld [vmem:[%s1186_s1 + $0xc8] sm:$0xff]   ;;  %v917_v29 = vld [vmem:[%s1186_s1 + $0xc0] sm:$0xff]   ;;  %v925_v39 = vld [vmem:[%s1186_s1 + $0x1f8] sm:$0xff]  }
   0xb   :  { %v914_v26 = vld [vmem:[%s1186_s1 + $0x8] sm:$0xff]   ;;  %v918_v30 = vld [vmem:[%s1186_s1] sm:$0xff]   ;;  %v926_v40 = vld [vmem:[%s1186_s1 + $0x138] sm:$0xff]  }
   0xc   :  { %805 = vmatpush3.bf16.msra.mxu0 %v898_v10  ;;  %v915_v27 = vld [vmem:[%s1186_s1 + $0x88] sm:$0xff]   ;;  %v919_v31 = vld [vmem:[%s1186_s1 + $0x80] sm:$0xff]   ;;  %v927_v41 = vld [vmem:[%s1186_s1 + $0x1b8] sm:$0xff]  }
   0xd   :  { %827 = vmatpush3.bf16.msra.mxu1 %v899_v11  ;;  %806 = vmatprep.subr.bf16.mxu0 %v900_v12  ;;  %v12_v32 = vld [vmem:[%s1187_s0] sm:$0xff]  ;;  %v13_v33 = vld [vmem:[%s1187_s0 + $0x8] sm:$0xff]  ;;  %v928_v42 = vld [vmem:[%s1186_s1 + $0x170] sm:$0xff]  }
   0xe   :  { %828 = vmatprep.subr.bf16.mxu1 %v901_v13  ;;  %v727_v34 = vcombine.low %v12_v32, %v12_v32  ;;  %v728_v35 = vcombine.high %v12_v32, %v12_v32  ;;  %v729_v36 = vcombine.low %v13_v33, %v13_v33  ;;  %v730_v37 = vcombine.high %v13_v33, %v13_v33  ;;  %v929_v43 = vld [vmem:[%s1186_s1 + $0x1f0] sm:$0xff]   ;;  %v932_v46 = vld [vmem:[%s1186_s1 + $0x168] sm:$0xff]   ;;  %v936_v50 = vld [vmem:[%s1186_s1 + $0x160] sm:$0xff]  }
   0xf   :  { %v930_v44 = vld [vmem:[%s1186_s1 + $0x130] sm:$0xff]   ;;  %v933_v47 = vld [vmem:[%s1186_s1 + $0x1e8] sm:$0xff]   ;;  %v937_v51 = vld [vmem:[%s1186_s1 + $0x1e0] sm:$0xff]  }
  0x10   :  { %807 = vmatpush3.bf16.msra.mxu0 %v902_v14  ;;  %588 = vmatprep.mubr.bf16.mxu0 %v728_v35  ;;  %v931_v45 = vld [vmem:[%s1186_s1 + $0x1b0] sm:$0xff]   ;;  %v934_v48 = vld [vmem:[%s1186_s1 + $0x128] sm:$0xff]   ;;  %v938_v52 = vld [vmem:[%s1186_s1 + $0x120] sm:$0xff]  }
  0x11   :  { %829 = vmatpush3.bf16.msra.mxu1 %v903_v15  ;;  %808 = vmatprep.subr.bf16.mxu0 %v904_v16  ;;  %v935_v49 = vld [vmem:[%s1186_s1 + $0x1a8] sm:$0xff]   ;;  %v939_v53 = vld [vmem:[%s1186_s1 + $0x1a0] sm:$0xff]   ;;  %v940_v54 = vld [vmem:[%s1186_s1 + $0x158] sm:$0xff]  }
  0x12   :  { %830 = vmatprep.subr.bf16.mxu1 %v905_v17  ;;  %628 = vmatprep.mubr.bf16.mxu1 %v730_v37  ;;  %v941_v55 = vld [vmem:[%s1186_s1 + $0x1d8] sm:$0xff]   ;;  %v944_v58 = vld [vmem:[%s1186_s1 + $0x150] sm:$0xff]   ;;  %v948_v62 = vld [vmem:[%s1186_s1 + $0x148] sm:$0xff]  }
  0x13   :  { %v942_v56 = vld [vmem:[%s1186_s1 + $0x118] sm:$0xff]   ;;  %v945_v59 = vld [vmem:[%s1186_s1 + $0x1d0] sm:$0xff]   ;;  %v949_v63 = vld [vmem:[%s1186_s1 + $0x1c8] sm:$0xff]  }
  0x14   :  { %809 = vmatpush3.bf16.msra.mxu0 %v906_v18  ;;  %v943_v57 = vld [vmem:[%s1186_s1 + $0x198] sm:$0xff]   ;;  %v946_v60 = vld [vmem:[%s1186_s1 + $0x110] sm:$0xff]   ;;  %v950_v0 = vld [vmem:[%s1186_s1 + $0x108] sm:$0xff]  }
  0x15   :  { %831 = vmatpush3.bf16.msra.mxu1 %v907_v19  ;;  %810 = vmatprep.subr.bf16.mxu0 %v908_v20  ;;  %v947_v61 = vld [vmem:[%s1186_s1 + $0x190] sm:$0xff]   ;;  %v951_v1 = vld [vmem:[%s1186_s1 + $0x188] sm:$0xff]   ;;  %v952_v2 = vld [vmem:[%s1186_s1 + $0x140] sm:$0xff]  }
  0x16   :  { %832 = vmatprep.subr.bf16.mxu1 %v909_v21  ;;  %v953_v3 = vld [vmem:[%s1186_s1 + $0x1c0] sm:$0xff]   ;;  %v14_v6 = vld [vmem:[%s1187_s0 + $0x10] sm:$0xff]  ;;  %v15_v9 = vld [vmem:[%s1187_s0 + $0x18] sm:$0xff] }
  0x17   :  { %v954_v4 = vld [vmem:[%s1186_s1 + $0x100] sm:$0xff]   ;;  %v731_v7 = vcombine.low %v14_v6, %v14_v6  ;;  %v732_v8 = vcombine.high %v14_v6, %v14_v6  ;;  %v733_v10 = vcombine.low %v15_v9, %v15_v9  ;;  %v734_v11 = vcombine.high %v15_v9, %v15_v9 }
  0x18   :  { %811 = vmatpush3.bf16.msra.mxu0 %v910_v22  ;;  %v955_v5 = vld [vmem:[%s1186_s1 + $0x180] sm:$0xff]  }
  0x19   :  { %833 = vmatpush3.bf16.msra.mxu1 %v911_v23  ;;  %812 = vmatprep.subr.bf16.mxu0 %v912_v24 }
  0x1a   :  { %834 = vmatprep.subr.bf16.mxu1 %v913_v25 }
  0x1c   :  { %813 = vmatpush3.bf16.msra.mxu0 %v914_v26 }
  0x1d   :  { %835 = vmatpush3.bf16.msra.mxu1 %v915_v27  ;;  %814 = vmatprep.subr.bf16.mxu0 %v916_v28 }
  0x1e   :  { %836 = vmatprep.subr.bf16.mxu1 %v917_v29 }
  0x20   :  { %815 = vmatpush3.bf16.msra.mxu0 %v918_v30 }
  0x21   :  { %837 = vmatpush3.bf16.msra.mxu1 %v919_v31  ;;  %844 = vmatprep.subr.bf16.mxu0 %v924_v38 }
  0x22   :  { %866 = vmatprep.subr.bf16.mxu1 %v925_v39 }
  0x23   :  { %589 = vmatmul.mubr.bf16.vlgmr.msra.gmra.mxu0 %v727_v34 }
  0x24   :  { %629 = vmatmul.mubr.bf16.vlgmr.msra.gmra.mxu1 %v729_v36  ;;  %845 = vmatpush3.bf16.msra.mxu0 %v926_v40 }
  0x25   :  { %867 = vmatpush3.bf16.msra.mxu1 %v927_v41  ;;  %846 = vmatprep.subr.bf16.mxu0 %v928_v42 }
  0x26   :  { %868 = vmatprep.subr.bf16.mxu1 %v929_v43  ;;  %668 = vmatprep.mubr.bf16.mxu0 %v732_v8 }
  0x27   :  { %708 = vmatprep.mubr.bf16.mxu1 %v734_v11 }
  0x28   :  { %847 = vmatpush3.bf16.msra.mxu0 %v930_v44 }
  0x29   :  { %869 = vmatpush3.bf16.msra.mxu1 %v931_v45  ;;  %848 = vmatprep.subr.bf16.mxu0 %v932_v46 }
  0x2a   :  { %870 = vmatprep.subr.bf16.mxu1 %v933_v47 }
  0x2c   :  { %849 = vmatpush3.bf16.msra.mxu0 %v934_v48 }
  0x2d   :  { %871 = vmatpush3.bf16.msra.mxu1 %v935_v49  ;;  %850 = vmatprep.subr.bf16.mxu0 %v936_v50 }
  0x2e   :  { %872 = vmatprep.subr.bf16.mxu1 %v937_v51 }
  0x30   :  { %851 = vmatpush3.bf16.msra.mxu0 %v938_v52 }
  0x31   :  { %873 = vmatpush3.bf16.msra.mxu1 %v939_v53  ;;  %852 = vmatprep.subr.bf16.mxu0 %v940_v54 }
  0x32   :  { %874 = vmatprep.subr.bf16.mxu1 %v941_v55 }
  0x34   :  { %853 = vmatpush3.bf16.msra.mxu0 %v942_v56 }
  0x35   :  { %875 = vmatpush3.bf16.msra.mxu1 %v943_v57  ;;  %854 = vmatprep.subr.bf16.mxu0 %v944_v58 }
  0x36   :  { %876 = vmatprep.subr.bf16.mxu1 %v945_v59 }
  0x38   :  { %855 = vmatpush3.bf16.msra.mxu0 %v946_v60 }
  0x39   :  { %877 = vmatpush3.bf16.msra.mxu1 %v947_v61  ;;  %856 = vmatprep.subr.bf16.mxu0 %v948_v62 }
  0x3a   :  { %878 = vmatprep.subr.bf16.mxu1 %v949_v63 }
  0x3c   :  { %857 = vmatpush3.bf16.msra.mxu0 %v950_v0 }
  0x3d   :  { %879 = vmatpush3.bf16.msra.mxu1 %v951_v1  ;;  %858 = vmatprep.subr.bf16.mxu0 %v952_v2 }
  0x3e   :  { %880 = vmatprep.subr.bf16.mxu1 %v953_v3 }
  0x40   :  { %859 = vmatpush3.bf16.msra.mxu0 %v954_v4 }
  0x41   :  { %881 = vmatpush3.bf16.msra.mxu1 %v955_v5 }
  0x43   :  { %669 = vmatmul.mubr.bf16.vlgmr.msra.gmra.mxu0 %v731_v7 }
  0x44   :  { %709 = vmatmul.mubr.bf16.vlgmr.msra.gmra.mxu1 %v733_v10 }
  0xe3   :  { %v816_v12 = vpop.f32.mrf.mxu0 }
  0xe4   :  { %v838_v13 = vpop.f32.mrf.mxu1 }
  0xe5   :  { %v817_v14 = vpop.f32.mrf.mxu0 }
  0xe6   :  { %v839_v15 = vpop.f32.mrf.mxu1  ;;  %v818_v20 = vadd.f32 %v817_v14, %v816_v12 }
  0xe7   :  { %v819_v16 = vpop.f32.mrf.mxu0  ;;  %v840_v21 = vadd.f32 %v839_v15, %v838_v13 }
  0xe8   :  { %v841_v17 = vpop.f32.mrf.mxu1 }
  0xe9   :  { %v820_v18 = vpop.f32.mrf.mxu0  ;;  %v631_v26 = vadd.f32 %v840_v21, %v818_v20 }
  0xea   :  { %v842_v19 = vpop.f32.mrf.mxu1 }
 0x103   :  { %v860_v22 = vpop.f32.mrf.mxu0 }
 0x104   :  { %v882_v23 = vpop.f32.mrf.mxu1 }
 0x105   :  { %v861_v24 = vpop.f32.mrf.mxu0 }
 0x106   :  { %v883_v25 = vpop.f32.mrf.mxu1  ;;  %v862_v27 = vadd.f32 %v861_v24, %v860_v22 }
 0x107   :  { %v863_v28 = vpop.f32.mrf.mxu0  ;;  %v884_v31 = vadd.f32 %v883_v25, %v882_v23 }
 0x108   :  { %v885_v29 = vpop.f32.mrf.mxu1  ;;  %v671_v30 = vadd.f32 %v862_v27, %v631_v26 }
 0x109   :  { %v864_v32 = vpop.f32.mrf.mxu0 }
 0x10a   :  { %v886_v33 = vpop.f32.mrf.mxu1  ;;  %v711_v34 = vadd.f32 %v884_v31, %v671_v30 }
 0x10c   :  { %v799_v35 = vmul.f32 -1.442695, %v711_v34 }
 0x10e   :  { %960 = vpow2.f32 %v799_v35 }
 0x11b   :  { %v961_v36 = vpop.eup %960 }
 0x11c   :  { %v719_v37 = vadd.f32 1.0, %v961_v36 }
 0x11e   :  { %962 = vrcp.f32 %v719_v37 }
 0x12b   :  { %v963_v38 = vpop.eup %962 }
 0x12c   :  { %722 = vst [vmem:[%s1188_s2] sm:$0xff] %v963_v38 }

</bundles_post_ra>
